<compile_context>
chip_gen: v5e
topology: v5e:2x2
jax: 0.10.0
libtpu: 0.0.40
codegen_flags: <defaults>
</compile_context>

<pallas_src>
import functools
import math

import numpy as np
import jax
import jax.numpy as jnp
from jax import lax
from jax.experimental import pallas as pl
from jax.experimental.pallas import tpu as pltpu

# ----------------------------------------------------------------------------
# Model hyper-parameters (the PyTorch file references these as globals).
# ----------------------------------------------------------------------------
BATCH = 2                  # batch_size
ENC_LEN = 8                # max_encoder_length
PRED_LEN = 4               # prediction_length
D_MODEL = 32               # transformer_size
FF_DIM = 64                # transformer_hidden_dim
NHEAD = 4                  # attention_heads
N_ENC_LAYERS = 2           # num_encoder_layers
N_DEC_LAYERS = 2           # num_decoder_layers
EMB_DIM = 8                # embedding_dim
CAT_CARDS = [6, 10]        # nunique() per categorical column
N_REAL = 3                 # len(real_columns)
TARGET_SIZE = 3
LN_EPS = 1e-5

CAT_EMB_DIMS = [min(EMB_DIM, c) for c in CAT_CARDS]          # [6, 8]
POS_ENC_INPUT = sum(CAT_EMB_DIMS) + EMB_DIM                  # 22
REAL_IN = 5 + N_REAL                                         # 8
HEAD_DIM = D_MODEL // NHEAD                                  # 8

# Fixed ordering of the weight operands fed to the fused kernel.
WEIGHT_KEYS = (
    'cat_w0', 'cat_w1', 'cont_w',
    'e_wqkv', 'e_bqkv', 'e_wo', 'e_bo',
    'e_w1', 'e_b1', 'e_w2', 'e_b2',
    'e_ln1', 'e_ln2', 'e_lnf',
    'dec_in_w',
    'd_wqkv', 'd_bqkv', 'd_wo', 'd_bo',
    'c_wq', 'c_bq', 'c_wkv', 'c_bkv', 'c_wo', 'c_bo',
    'd_w1', 'd_b1', 'd_w2', 'd_b2',
    'd_ln1', 'd_ln2', 'd_ln3', 'd_lnf',
    'out_w', 'out_b',
)


# ----------------------------------------------------------------------------
# In-kernel building blocks (operate on loaded VMEM values; shapes are tiny)
# ----------------------------------------------------------------------------
def _layer_norm(x, ln):
    # ln: (2, D) — row 0 = gamma, row 1 = beta
    g = ln[0:1, :]
    b = ln[1:2, :]
    mu = jnp.mean(x, axis=-1, keepdims=True)
    xc = x - mu
    var = jnp.mean(xc * xc, axis=-1, keepdims=True)
    return xc * lax.rsqrt(var + LN_EPS) * g + b


def _sdpa(q, k, v):
    # q: (Sq, D), k/v: (Sk, D) -> (Sq, D).  Heads are an unrolled static loop
    # (NHEAD=4, head_dim=8): keeps Mosaic lowering simple at these tiny sizes.
    scale = 1.0 / math.sqrt(HEAD_DIM)
    outs = []
    for h in range(NHEAD):
        sl = slice(h * HEAD_DIM, (h + 1) * HEAD_DIM)
        s = jnp.dot(q[:, sl], k[:, sl].T,
                    preferred_element_type=jnp.float32) * scale
        s = s - jnp.max(s, axis=-1, keepdims=True)
        p = jnp.exp(s)
        p = p / jnp.sum(p, axis=-1, keepdims=True)
        outs.append(jnp.dot(p, v[:, sl], preferred_element_type=jnp.float32))
    return jnp.concatenate(outs, axis=-1)


def _self_attn(x, wqkv, bqkv, wo, bo):
    # fused QKV projection: one (S, D) @ (D, 3D) matmul
    qkv = jnp.dot(x, wqkv, preferred_element_type=jnp.float32) + bqkv
    q = qkv[:, 0:D_MODEL]
    k = qkv[:, D_MODEL:2 * D_MODEL]
    v = qkv[:, 2 * D_MODEL:3 * D_MODEL]
    a = _sdpa(q, k, v)
    return jnp.dot(a, wo, preferred_element_type=jnp.float32) + bo


def _cross_attn(x, mem, wq, bq, wkv, bkv, wo, bo):
    q = jnp.dot(x, wq, preferred_element_type=jnp.float32) + bq
    kv = jnp.dot(mem, wkv, preferred_element_type=jnp.float32) + bkv
    k = kv[:, 0:D_MODEL]
    v = kv[:, D_MODEL:2 * D_MODEL]
    a = _sdpa(q, k, v)
    return jnp.dot(a, wo, preferred_element_type=jnp.float32) + bo


def _ffn(x, w1, b1, w2, b2):
    h = jnp.maximum(jnp.dot(x, w1, preferred_element_type=jnp.float32) + b1, 0.0)
    return jnp.dot(h, w2, preferred_element_type=jnp.float32) + b2


# ----------------------------------------------------------------------------
# The single fused kernel: one batch element (sample) per grid step.
# ----------------------------------------------------------------------------
def _fused_transformer_kernel(
        # batched (per-sample) inputs
        cat0_ref, cat1_ref, cont_ref, tgt_ref, enc_bias_ref, dec_bias_ref,
        # weights (full-array, VMEM resident)
        cat_w0_ref, cat_w1_ref, cont_w_ref,
        e_wqkv_ref, e_bqkv_ref, e_wo_ref, e_bo_ref,
        e_w1_ref, e_b1_ref, e_w2_ref, e_b2_ref,
        e_ln1_ref, e_ln2_ref, e_lnf_ref,
        dec_in_w_ref,
        d_wqkv_ref, d_bqkv_ref, d_wo_ref, d_bo_ref,
        c_wq_ref, c_bq_ref, c_wkv_ref, c_bkv_ref, c_wo_ref, c_bo_ref,
        d_w1_ref, d_b1_ref, d_w2_ref, d_b2_ref,
        d_ln1_ref, d_ln2_ref, d_ln3_ref, d_lnf_ref,
        out_w_ref, out_b_ref,
        # output
        o_ref):
    # ------------- embeddings + PE + dimension_shift + ReLU (all folded) ----
    # relu( oh0 @ (tbl0 @ Win0) + oh1 @ (tbl1 @ Win1)
    #     + cont @ (real_w @ Win2) + enc_bias )
    oh0 = (cat0_ref[0] == lax.broadcasted_iota(
        jnp.int32, (ENC_LEN, CAT_CARDS[0]), 1)).astype(jnp.float32)
    oh1 = (cat1_ref[0] == lax.broadcasted_iota(
        jnp.int32, (ENC_LEN, CAT_CARDS[1]), 1)).astype(jnp.float32)

    x = jnp.maximum(
        jnp.dot(oh0, cat_w0_ref[...], preferred_element_type=jnp.float32)
        + jnp.dot(oh1, cat_w1_ref[...], preferred_element_type=jnp.float32)
        + jnp.dot(cont_ref[0], cont_w_ref[...],
                  preferred_element_type=jnp.float32)
        + enc_bias_ref[0], 0.0)                                           # (S,D)

    # ------------------- encoder layers (post-norm, ReLU FFN) ---------------
    for l in range(N_ENC_LAYERS):
        sa = _self_attn(x, e_wqkv_ref[l], e_bqkv_ref[l],
                        e_wo_ref[l], e_bo_ref[l])
        x = _layer_norm(x + sa, e_ln1_ref[l])
        ff = _ffn(x, e_w1_ref[l], e_b1_ref[l], e_w2_ref[l], e_b2_ref[l])
        x = _layer_norm(x + ff, e_ln2_ref[l])
    mem = _layer_norm(x, e_lnf_ref[...])                                  # (S,D)

    # ------------------- decoder --------------------------------------------
    # Reference passes tgt_mask=None -> no causal mask (kept identical here).
    # (target + pe) @ w_resize + b  ==  target * w_resize + dec_bias  (folded)
    y = jnp.maximum(tgt_ref[0] * dec_in_w_ref[...] + dec_bias_ref[0], 0.0)  # (T,D)
    for l in range(N_DEC_LAYERS):
        sa = _self_attn(y, d_wqkv_ref[l], d_bqkv_ref[l],
                        d_wo_ref[l], d_bo_ref[l])
        y = _layer_norm(y + sa, d_ln1_ref[l])
        ca = _cross_attn(y, mem, c_wq_ref[l], c_bq_ref[l], c_wkv_ref[l],
                         c_bkv_ref[l], c_wo_ref[l], c_bo_ref[l])
        y = _layer_norm(y + ca, d_ln2_ref[l])
        ff = _ffn(y, d_w1_ref[l], d_b1_ref[l], d_w2_ref[l], d_b2_ref[l])
        y = _layer_norm(y + ff, d_ln3_ref[l])
    y = _layer_norm(y, d_lnf_ref[...])                                    # (T,D)

    # ------------------- flatten + output linear ----------------------------
    # flatten(y) @ W_out.T + b_out, with W_out pre-transposed to (T*D, TARGET)
    # and the row-major flatten expressed as a sum of per-position matmuls
    # (avoids an in-kernel (T,D)->(1,T*D) relayout).
    out = out_b_ref[...]                                                  # (1,TGT)
    for p in range(PRED_LEN):
        out = out + jnp.dot(
            y[p:p + 1, :],
            out_w_ref[p * D_MODEL:(p + 1) * D_MODEL, :],
            preferred_element_type=jnp.float32)
    o_ref[0] = out


# ----------------------------------------------------------------------------
# Host-side wrapper: one pallas_call for the whole forward pass.
# ----------------------------------------------------------------------------
def transformer_forward(params, x_cat, x_cont, target):
    b = x_cat.shape[0]
    cat0 = x_cat[..., 0:1].astype(jnp.int32)          # (B, S_enc, 1)
    cat1 = x_cat[..., 1:2].astype(jnp.int32)          # (B, S_enc, 1)
    tgt3 = target[..., None].astype(jnp.float32)      # (B, S_dec, 1)

    batched_inputs = [cat0, cat1, x_cont.astype(jnp.float32), tgt3,
                      params['enc_bias'], params['dec_bias']]
    weight_inputs = [params[k] for k in WEIGHT_KEYS]

    def batched_spec(a):
        nd = a.ndim
        return pl.BlockSpec((1,) + a.shape[1:],
                            lambda i, _nd=nd: (i,) + (0,) * (_nd - 1))

    def weight_spec(a):
        nd = a.ndim
        return pl.BlockSpec(a.shape, lambda i, _nd=nd: (0,) * _nd)

    out = pl.pallas_call(
        _fused_transformer_kernel,
        grid=(b,),
        in_specs=[batched_spec(a) for a in batched_inputs]
                 + [weight_spec(a) for a in weight_inputs],
        out_specs=pl.BlockSpec((1, 1, TARGET_SIZE), lambda i: (i, 0, 0)),
        out_shape=jax.ShapeDtypeStruct((b, 1, TARGET_SIZE), jnp.float32),
        compiler_params=pltpu.CompilerParams(
            dimension_semantics=("parallel",)),   # one sample per TC on v7x
    )(*batched_inputs, *weight_inputs)
    return out.reshape(b, TARGET_SIZE)


# ----------------------------------------------------------------------------
# Parameter construction (deterministic, synthetic; weights pre-transposed to
# (in_features, out_features), stacked per layer, and constant-folded where
# the PyTorch graph is affine at inference).
# ----------------------------------------------------------------------------
def build_pe(batch, max_seq_len, d_model=512):
    # Exactly mirrors PositionalEncoder.__init__
    d_model = int(np.ceil(d_model / 2) * 2)
    position = np.arange(max_seq_len // 2, dtype=np.float32)[:, None]
    denominator = np.exp(np.arange(0, d_model, dtype=np.float32)
                         * -(math.log(10000.0) / d_model))
    pe = np.zeros((batch, max_seq_len, d_model), dtype=np.float32)
    pe[:, 0::2, :] = np.sin(position / denominator)
    pe[:, 1::2, :] = np.cos(position / denominator)
    return jnp.asarray(pe)


def init_params(key):
    kit = iter(jax.random.split(key, 40))

    def W(*shape):
        return jax.random.normal(next(kit), shape, jnp.float32) * 0.02

    def Z(*shape):
        return jnp.zeros(shape, jnp.float32)

    def LN(n_layers=None):
        if n_layers is None:                                   # (2, D)
            return jnp.concatenate(
                [jnp.ones((1, D_MODEL), jnp.float32),
                 jnp.zeros((1, D_MODEL), jnp.float32)], axis=0)
        return jnp.concatenate(                                # (L, 2, D)
            [jnp.ones((n_layers, 1, D_MODEL), jnp.float32),
             jnp.zeros((n_layers, 1, D_MODEL), jnp.float32)], axis=1)

    Le, Ld = N_ENC_LAYERS, N_DEC_LAYERS
    c0, c1 = CAT_EMB_DIMS

    # Raw (PyTorch-equivalent) parameters of the affine input paths.
    tbl0 = W(CAT_CARDS[0], c0)
    tbl1 = W(CAT_CARDS[1], c1)
    real_w = W(REAL_IN, EMB_DIM)
    real_b = Z(1, EMB_DIM)
    enc_in_w = W(POS_ENC_INPUT, D_MODEL)
    enc_in_b = Z(1, D_MODEL)
    dec_in_w = W(1, D_MODEL)
    dec_in_b = Z(1, D_MODEL)

    # Host-side constant folding (linear identity, dropout = identity):
    #   (concat(E0, E1, real(cont)) + pe) @ Win + bin
    #     == oh0 @ (tbl0 @ Win[:6]) + oh1 @ (tbl1 @ Win[6:14])
    #      + cont @ (real_w @ Win[14:]) + (pe @ Win + bin + real_b @ Win[14:])
    w0 = enc_in_w[0:c0, :]
    w1 = enc_in_w[c0:c0 + c1, :]
    w2 = enc_in_w[c0 + c1:, :]
    pe_enc = build_pe(BATCH, ENC_LEN)[:, :, :POS_ENC_INPUT]   # (B, S, 22)
    enc_bias = (jnp.einsum('bsf,fd->bsd', pe_enc, enc_in_w)
                + enc_in_b + real_b @ w2)                     # (B, S, D)
    pe_dec = build_pe(BATCH, PRED_LEN)[:, :, :1]              # (B, T, 1)
    dec_bias = pe_dec * dec_in_w + dec_in_b                   # (B, T, D)

    params = dict(
        cat_w0=tbl0 @ w0,            # (6, D)
        cat_w1=tbl1 @ w1,            # (10, D)
        cont_w=real_w @ w2,          # (8, D)
        enc_bias=enc_bias,
        e_wqkv=W(Le, D_MODEL, 3 * D_MODEL), e_bqkv=Z(Le, 1, 3 * D_MODEL),
        e_wo=W(Le, D_MODEL, D_MODEL), e_bo=Z(Le, 1, D_MODEL),
        e_w1=W(Le, D_MODEL, FF_DIM), e_b1=Z(Le, 1, FF_DIM),
        e_w2=W(Le, FF_DIM, D_MODEL), e_b2=Z(Le, 1, D_MODEL),
        e_ln1=LN(Le), e_ln2=LN(Le), e_lnf=LN(),
        dec_in_w=dec_in_w, dec_bias=dec_bias,
        d_wqkv=W(Ld, D_MODEL, 3 * D_MODEL), d_bqkv=Z(Ld, 1, 3 * D_MODEL),
        d_wo=W(Ld, D_MODEL, D_MODEL), d_bo=Z(Ld, 1, D_MODEL),
        c_wq=W(Ld, D_MODEL, D_MODEL), c_bq=Z(Ld, 1, D_MODEL),
        c_wkv=W(Ld, D_MODEL, 2 * D_MODEL), c_bkv=Z(Ld, 1, 2 * D_MODEL),
        c_wo=W(Ld, D_MODEL, D_MODEL), c_bo=Z(Ld, 1, D_MODEL),
        d_w1=W(Ld, D_MODEL, FF_DIM), d_b1=Z(Ld, 1, FF_DIM),
        d_w2=W(Ld, FF_DIM, D_MODEL), d_b2=Z(Ld, 1, D_MODEL),
        d_ln1=LN(Ld), d_ln2=LN(Ld), d_ln3=LN(Ld), d_lnf=LN(),
        out_w=W(PRED_LEN * D_MODEL, TARGET_SIZE), out_b=Z(1, TARGET_SIZE),
    )
    return params


# ----------------------------------------------------------------------------
if __name__ == "__main__":
    key = jax.random.PRNGKey(0)
    k_params, k_cat0, k_cat1, k_cont, k_tgt = jax.random.split(key, 5)

    params = init_params(k_params)

    x_cat = jnp.stack(
        [jax.random.randint(k_cat0, (BATCH, ENC_LEN), 0, CAT_CARDS[0]),
         jax.random.randint(k_cat1, (BATCH, ENC_LEN), 0, CAT_CARDS[1])],
        axis=-1).astype(jnp.int32)                            # (2, 8, 2)
    x_cont = jax.random.normal(k_cont, (BATCH, ENC_LEN, REAL_IN), jnp.float32)
    target = jax.random.normal(k_tgt, (BATCH, PRED_LEN), jnp.float32)

    fwd = jax.jit(functools.partial(transformer_forward, params))
    out = fwd(x_cat, x_cont, target)
    jax.block_until_ready(out)
    assert out.shape == (BATCH, TARGET_SIZE)
    assert bool(jnp.all(jnp.isfinite(out)))
    print("KERNEL_OK")
</pallas_src>

<mosaic_0001>
module attributes {stable_mosaic.version = 11 : i64} {
  func.func @_fused_transformer_kernel(%arg0: i32, %arg1: memref<1x8x1xi32, #tpu.memory_space<vmem>>, %arg2: memref<1x8x1xi32, #tpu.memory_space<vmem>>, %arg3: memref<1x8x8xf32, #tpu.memory_space<vmem>>, %arg4: memref<1x4x1xf32, #tpu.memory_space<vmem>>, %arg5: memref<1x8x32xf32, #tpu.memory_space<vmem>>, %arg6: memref<1x4x32xf32, #tpu.memory_space<vmem>>, %arg7: memref<6x32xf32, #tpu.memory_space<vmem>>, %arg8: memref<10x32xf32, #tpu.memory_space<vmem>>, %arg9: memref<8x32xf32, #tpu.memory_space<vmem>>, %arg10: memref<2x32x96xf32, #tpu.memory_space<vmem>>, %arg11: memref<2x1x96xf32, #tpu.memory_space<vmem>>, %arg12: memref<2x32x32xf32, #tpu.memory_space<vmem>>, %arg13: memref<2x1x32xf32, #tpu.memory_space<vmem>>, %arg14: memref<2x32x64xf32, #tpu.memory_space<vmem>>, %arg15: memref<2x1x64xf32, #tpu.memory_space<vmem>>, %arg16: memref<2x64x32xf32, #tpu.memory_space<vmem>>, %arg17: memref<2x1x32xf32, #tpu.memory_space<vmem>>, %arg18: memref<2x2x32xf32, #tpu.memory_space<vmem>>, %arg19: memref<2x2x32xf32, #tpu.memory_space<vmem>>, %arg20: memref<2x32xf32, #tpu.memory_space<vmem>>, %arg21: memref<1x32xf32, #tpu.memory_space<vmem>>, %arg22: memref<2x32x96xf32, #tpu.memory_space<vmem>>, %arg23: memref<2x1x96xf32, #tpu.memory_space<vmem>>, %arg24: memref<2x32x32xf32, #tpu.memory_space<vmem>>, %arg25: memref<2x1x32xf32, #tpu.memory_space<vmem>>, %arg26: memref<2x32x32xf32, #tpu.memory_space<vmem>>, %arg27: memref<2x1x32xf32, #tpu.memory_space<vmem>>, %arg28: memref<2x32x64xf32, #tpu.memory_space<vmem>>, %arg29: memref<2x1x64xf32, #tpu.memory_space<vmem>>, %arg30: memref<2x32x32xf32, #tpu.memory_space<vmem>>, %arg31: memref<2x1x32xf32, #tpu.memory_space<vmem>>, %arg32: memref<2x32x64xf32, #tpu.memory_space<vmem>>, %arg33: memref<2x1x64xf32, #tpu.memory_space<vmem>>, %arg34: memref<2x64x32xf32, #tpu.memory_space<vmem>>, %arg35: memref<2x1x32xf32, #tpu.memory_space<vmem>>, %arg36: memref<2x2x32xf32, #tpu.memory_space<vmem>>, %arg37: memref<2x2x32xf32, #tpu.memory_space<vmem>>, %arg38: memref<2x2x32xf32, #tpu.memory_space<vmem>>, %arg39: memref<2x32xf32, #tpu.memory_space<vmem>>, %arg40: memref<128x3xf32, #tpu.memory_space<vmem>>, %arg41: memref<1x3xf32, #tpu.memory_space<vmem>>, %arg42: memref<1x1x3xf32, #tpu.memory_space<vmem>>) attributes {dimension_semantics = [#tpu.dimension_semantics<parallel>], iteration_bounds = array<i64: 2>, scalar_prefetch = 0 : i64, scratch_operands = 0 : i64, tpu.core_type = #tpu.core_type<tc>, window_params = [{transform_indices = @transform_0, window_bounds = array<i64: 1, 8, 1>}, {transform_indices = @transform_1, window_bounds = array<i64: 1, 8, 1>}, {transform_indices = @transform_2, window_bounds = array<i64: 1, 8, 8>}, {transform_indices = @transform_3, window_bounds = array<i64: 1, 4, 1>}, {transform_indices = @transform_4, window_bounds = array<i64: 1, 8, 32>}, {transform_indices = @transform_5, window_bounds = array<i64: 1, 4, 32>}, {pipeline_mode = #tpu.pipeline_mode<synchronous>, transform_indices = @transform_6, window_bounds = array<i64: 6, 32>}, {pipeline_mode = #tpu.pipeline_mode<synchronous>, transform_indices = @transform_7, window_bounds = array<i64: 10, 32>}, {pipeline_mode = #tpu.pipeline_mode<synchronous>, transform_indices = @transform_8, window_bounds = array<i64: 8, 32>}, {pipeline_mode = #tpu.pipeline_mode<synchronous>, transform_indices = @transform_9, window_bounds = array<i64: 2, 32, 96>}, {pipeline_mode = #tpu.pipeline_mode<synchronous>, transform_indices = @transform_10, window_bounds = array<i64: 2, 1, 96>}, {pipeline_mode = #tpu.pipeline_mode<synchronous>, transform_indices = @transform_11, window_bounds = array<i64: 2, 32, 32>}, {pipeline_mode = #tpu.pipeline_mode<synchronous>, transform_indices = @transform_12, window_bounds = array<i64: 2, 1, 32>}, {pipeline_mode = #tpu.pipeline_mode<synchronous>, transform_indices = @transform_13, window_bounds = array<i64: 2, 32, 64>}, {pipeline_mode = #tpu.pipeline_mode<synchronous>, transform_indices = @transform_14, window_bounds = array<i64: 2, 1, 64>}, {pipeline_mode = #tpu.pipeline_mode<synchronous>, transform_indices = @transform_15, window_bounds = array<i64: 2, 64, 32>}, {pipeline_mode = #tpu.pipeline_mode<synchronous>, transform_indices = @transform_16, window_bounds = array<i64: 2, 1, 32>}, {pipeline_mode = #tpu.pipeline_mode<synchronous>, transform_indices = @transform_17, window_bounds = array<i64: 2, 2, 32>}, {pipeline_mode = #tpu.pipeline_mode<synchronous>, transform_indices = @transform_18, window_bounds = array<i64: 2, 2, 32>}, {pipeline_mode = #tpu.pipeline_mode<synchronous>, transform_indices = @transform_19, window_bounds = array<i64: 2, 32>}, {pipeline_mode = #tpu.pipeline_mode<synchronous>, transform_indices = @transform_20, window_bounds = array<i64: 1, 32>}, {pipeline_mode = #tpu.pipeline_mode<synchronous>, transform_indices = @transform_21, window_bounds = array<i64: 2, 32, 96>}, {pipeline_mode = #tpu.pipeline_mode<synchronous>, transform_indices = @transform_22, window_bounds = array<i64: 2, 1, 96>}, {pipeline_mode = #tpu.pipeline_mode<synchronous>, transform_indices = @transform_23, window_bounds = array<i64: 2, 32, 32>}, {pipeline_mode = #tpu.pipeline_mode<synchronous>, transform_indices = @transform_24, window_bounds = array<i64: 2, 1, 32>}, {pipeline_mode = #tpu.pipeline_mode<synchronous>, transform_indices = @transform_25, window_bounds = array<i64: 2, 32, 32>}, {pipeline_mode = #tpu.pipeline_mode<synchronous>, transform_indices = @transform_26, window_bounds = array<i64: 2, 1, 32>}, {pipeline_mode = #tpu.pipeline_mode<synchronous>, transform_indices = @transform_27, window_bounds = array<i64: 2, 32, 64>}, {pipeline_mode = #tpu.pipeline_mode<synchronous>, transform_indices = @transform_28, window_bounds = array<i64: 2, 1, 64>}, {pipeline_mode = #tpu.pipeline_mode<synchronous>, transform_indices = @transform_29, window_bounds = array<i64: 2, 32, 32>}, {pipeline_mode = #tpu.pipeline_mode<synchronous>, transform_indices = @transform_30, window_bounds = array<i64: 2, 1, 32>}, {pipeline_mode = #tpu.pipeline_mode<synchronous>, transform_indices = @transform_31, window_bounds = array<i64: 2, 32, 64>}, {pipeline_mode = #tpu.pipeline_mode<synchronous>, transform_indices = @transform_32, window_bounds = array<i64: 2, 1, 64>}, {pipeline_mode = #tpu.pipeline_mode<synchronous>, transform_indices = @transform_33, window_bounds = array<i64: 2, 64, 32>}, {pipeline_mode = #tpu.pipeline_mode<synchronous>, transform_indices = @transform_34, window_bounds = array<i64: 2, 1, 32>}, {pipeline_mode = #tpu.pipeline_mode<synchronous>, transform_indices = @transform_35, window_bounds = array<i64: 2, 2, 32>}, {pipeline_mode = #tpu.pipeline_mode<synchronous>, transform_indices = @transform_36, window_bounds = array<i64: 2, 2, 32>}, {pipeline_mode = #tpu.pipeline_mode<synchronous>, transform_indices = @transform_37, window_bounds = array<i64: 2, 2, 32>}, {pipeline_mode = #tpu.pipeline_mode<synchronous>, transform_indices = @transform_38, window_bounds = array<i64: 2, 32>}, {pipeline_mode = #tpu.pipeline_mode<synchronous>, transform_indices = @transform_39, window_bounds = array<i64: 128, 3>}, {pipeline_mode = #tpu.pipeline_mode<synchronous>, transform_indices = @transform_40, window_bounds = array<i64: 1, 3>}, {transform_indices = @transform_41, window_bounds = array<i64: 1, 1, 3>}]} {
    %c0 = arith.constant 0 : index
    %c0_0 = arith.constant 0 : index
    %c0_1 = arith.constant 0 : index
    %0 = vector.load %arg1[%c0, %c0_0, %c0_1] : memref<1x8x1xi32, #tpu.memory_space<vmem>>, vector<1x8x1xi32>
    %1 = vector.shape_cast %0 : vector<1x8x1xi32> to vector<8x1xi32>
    %2 = tpu.iota {dimensions = array<i32: 1>} : vector<8x6xi32>
    %3 = vector.broadcast %1 : vector<8x1xi32> to vector<8x6xi32>
    %4 = arith.cmpi eq, %3, %2 : vector<8x6xi32>
    %5 = arith.extui %4 : vector<8x6xi1> to vector<8x6xi32>
    %6 = arith.sitofp %5 : vector<8x6xi32> to vector<8x6xf32>
    %c0_2 = arith.constant 0 : index
    %c0_3 = arith.constant 0 : index
    %c0_4 = arith.constant 0 : index
    %7 = vector.load %arg2[%c0_2, %c0_3, %c0_4] : memref<1x8x1xi32, #tpu.memory_space<vmem>>, vector<1x8x1xi32>
    %8 = vector.shape_cast %7 : vector<1x8x1xi32> to vector<8x1xi32>
    %9 = tpu.iota {dimensions = array<i32: 1>} : vector<8x10xi32>
    %10 = vector.broadcast %8 : vector<8x1xi32> to vector<8x10xi32>
    %11 = arith.cmpi eq, %10, %9 : vector<8x10xi32>
    %12 = arith.extui %11 : vector<8x10xi1> to vector<8x10xi32>
    %13 = arith.sitofp %12 : vector<8x10xi32> to vector<8x10xf32>
    %c0_5 = arith.constant 0 : index
    %c0_6 = arith.constant 0 : index
    %14 = vector.load %arg7[%c0_5, %c0_6] : memref<6x32xf32, #tpu.memory_space<vmem>>, vector<6x32xf32>
    %cst = arith.constant dense<0.000000e+00> : vector<8x32xf32>
    %15 = tpu.matmul %6, %14, %cst {dimension_numbers = #tpu.dot_dimension_numbers<[1], [0], [0], [1], [0, 0, 1, 1], [], []>} : vector<8x6xf32>, vector<6x32xf32>, vector<8x32xf32> -> vector<8x32xf32>
    %c0_7 = arith.constant 0 : index
    %c0_8 = arith.constant 0 : index
    %16 = vector.load %arg8[%c0_7, %c0_8] : memref<10x32xf32, #tpu.memory_space<vmem>>, vector<10x32xf32>
    %cst_9 = arith.constant dense<0.000000e+00> : vector<8x32xf32>
    %17 = tpu.matmul %13, %16, %cst_9 {dimension_numbers = #tpu.dot_dimension_numbers<[1], [0], [0], [1], [0, 0, 1, 1], [], []>} : vector<8x10xf32>, vector<10x32xf32>, vector<8x32xf32> -> vector<8x32xf32>
    %18 = arith.addf %15, %17 : vector<8x32xf32>
    %c0_10 = arith.constant 0 : index
    %c0_11 = arith.constant 0 : index
    %c0_12 = arith.constant 0 : index
    %19 = vector.load %arg3[%c0_10, %c0_11, %c0_12] : memref<1x8x8xf32, #tpu.memory_space<vmem>>, vector<1x8x8xf32>
    %20 = vector.shape_cast %19 : vector<1x8x8xf32> to vector<8x8xf32>
    %c0_13 = arith.constant 0 : index
    %c0_14 = arith.constant 0 : index
    %21 = vector.load %arg9[%c0_13, %c0_14] : memref<8x32xf32, #tpu.memory_space<vmem>>, vector<8x32xf32>
    %cst_15 = arith.constant dense<0.000000e+00> : vector<8x32xf32>
    %22 = tpu.matmul %20, %21, %cst_15 {dimension_numbers = #tpu.dot_dimension_numbers<[1], [0], [0], [1], [0, 0, 1, 1], [], []>} : vector<8x8xf32>, vector<8x32xf32>, vector<8x32xf32> -> vector<8x32xf32>
    %23 = arith.addf %18, %22 : vector<8x32xf32>
    %c0_16 = arith.constant 0 : index
    %c0_17 = arith.constant 0 : index
    %c0_18 = arith.constant 0 : index
    %24 = vector.load %arg5[%c0_16, %c0_17, %c0_18] : memref<1x8x32xf32, #tpu.memory_space<vmem>>, vector<1x8x32xf32>
    %25 = vector.shape_cast %24 : vector<1x8x32xf32> to vector<8x32xf32>
    %26 = arith.addf %23, %25 : vector<8x32xf32>
    %cst_19 = arith.constant 0.000000e+00 : f32
    %27 = vector.broadcast %cst_19 : f32 to vector<8x32xf32>
    %28 = arith.maximumf %26, %27 : vector<8x32xf32>
    %c0_20 = arith.constant 0 : index
    %c0_21 = arith.constant 0 : index
    %c0_22 = arith.constant 0 : index
    %29 = vector.load %arg10[%c0_20, %c0_21, %c0_22] : memref<2x32x96xf32, #tpu.memory_space<vmem>>, vector<1x32x96xf32>
    %30 = vector.shape_cast %29 : vector<1x32x96xf32> to vector<32x96xf32>
    %c0_23 = arith.constant 0 : index
    %c0_24 = arith.constant 0 : index
    %c0_25 = arith.constant 0 : index
    %31 = vector.load %arg11[%c0_23, %c0_24, %c0_25] : memref<2x1x96xf32, #tpu.memory_space<vmem>>, vector<1x1x96xf32>
    %32 = vector.shape_cast %31 : vector<1x1x96xf32> to vector<1x96xf32>
    %c0_26 = arith.constant 0 : index
    %c0_27 = arith.constant 0 : index
    %c0_28 = arith.constant 0 : index
    %33 = vector.load %arg12[%c0_26, %c0_27, %c0_28] : memref<2x32x32xf32, #tpu.memory_space<vmem>>, vector<1x32x32xf32>
    %34 = vector.shape_cast %33 : vector<1x32x32xf32> to vector<32x32xf32>
    %c0_29 = arith.constant 0 : index
    %c0_30 = arith.constant 0 : index
    %c0_31 = arith.constant 0 : index
    %35 = vector.load %arg13[%c0_29, %c0_30, %c0_31] : memref<2x1x32xf32, #tpu.memory_space<vmem>>, vector<1x1x32xf32>
    %36 = vector.shape_cast %35 : vector<1x1x32xf32> to vector<1x32xf32>
    %cst_32 = arith.constant dense<0.000000e+00> : vector<8x96xf32>
    %37 = tpu.matmul %28, %30, %cst_32 {dimension_numbers = #tpu.dot_dimension_numbers<[1], [0], [0], [1], [0, 0, 1, 1], [], []>} : vector<8x32xf32>, vector<32x96xf32>, vector<8x96xf32> -> vector<8x96xf32>
    %38 = vector.broadcast %32 : vector<1x96xf32> to vector<8x96xf32>
    %39 = arith.addf %37, %38 : vector<8x96xf32>
    %40 = vector.extract_strided_slice %39 {offsets = [0, 0], sizes = [8, 32], strides = [1, 1]} : vector<8x96xf32> to vector<8x32xf32>
    %41 = vector.extract_strided_slice %39 {offsets = [0, 32], sizes = [8, 32], strides = [1, 1]} : vector<8x96xf32> to vector<8x32xf32>
    %42 = vector.extract_strided_slice %39 {offsets = [0, 64], sizes = [8, 32], strides = [1, 1]} : vector<8x96xf32> to vector<8x32xf32>
    %43 = vector.extract_strided_slice %40 {offsets = [0, 0], sizes = [8, 8], strides = [1, 1]} : vector<8x32xf32> to vector<8x8xf32>
    %44 = vector.extract_strided_slice %41 {offsets = [0, 0], sizes = [8, 8], strides = [1, 1]} : vector<8x32xf32> to vector<8x8xf32>
    %45 = tpu.transpose %44, [1, 0] : vector<8x8xf32> -> vector<8x8xf32>
    %cst_33 = arith.constant dense<0.000000e+00> : vector<8x8xf32>
    %46 = tpu.matmul %43, %45, %cst_33 {dimension_numbers = #tpu.dot_dimension_numbers<[1], [0], [0], [1], [0, 0, 1, 1], [], []>} : vector<8x8xf32>, vector<8x8xf32>, vector<8x8xf32> -> vector<8x8xf32>
    %cst_34 = arith.constant 0.353553385 : f32
    %47 = vector.broadcast %cst_34 : f32 to vector<8x8xf32>
    %48 = arith.mulf %46, %47 : vector<8x8xf32>
    %cst_35 = arith.constant dense<0xFF800000> : vector<8xf32>
    %49 = vector.multi_reduction <maximumf>, %48, %cst_35 [1] : vector<8x8xf32> to vector<8xf32>
    %50 = vector.shape_cast %49 : vector<8xf32> to vector<8x1xf32>
    %51 = vector.broadcast %50 : vector<8x1xf32> to vector<8x8xf32>
    %52 = arith.subf %48, %51 : vector<8x8xf32>
    %53 = math.exp %52 : vector<8x8xf32>
    %cst_36 = arith.constant dense<0.000000e+00> : vector<8xf32>
    %54 = vector.multi_reduction <add>, %53, %cst_36 [1] : vector<8x8xf32> to vector<8xf32>
    %55 = vector.shape_cast %54 : vector<8xf32> to vector<8x1xf32>
    %56 = vector.broadcast %55 : vector<8x1xf32> to vector<8x8xf32>
    %57 = arith.divf %53, %56 : vector<8x8xf32>
    %58 = vector.extract_strided_slice %42 {offsets = [0, 0], sizes = [8, 8], strides = [1, 1]} : vector<8x32xf32> to vector<8x8xf32>
    %cst_37 = arith.constant dense<0.000000e+00> : vector<8x8xf32>
    %59 = tpu.matmul %57, %58, %cst_37 {dimension_numbers = #tpu.dot_dimension_numbers<[1], [0], [0], [1], [0, 0, 1, 1], [], []>} : vector<8x8xf32>, vector<8x8xf32>, vector<8x8xf32> -> vector<8x8xf32>
    %60 = vector.extract_strided_slice %40 {offsets = [0, 8], sizes = [8, 8], strides = [1, 1]} : vector<8x32xf32> to vector<8x8xf32>
    %61 = vector.extract_strided_slice %41 {offsets = [0, 8], sizes = [8, 8], strides = [1, 1]} : vector<8x32xf32> to vector<8x8xf32>
    %62 = tpu.transpose %61, [1, 0] : vector<8x8xf32> -> vector<8x8xf32>
    %cst_38 = arith.constant dense<0.000000e+00> : vector<8x8xf32>
    %63 = tpu.matmul %60, %62, %cst_38 {dimension_numbers = #tpu.dot_dimension_numbers<[1], [0], [0], [1], [0, 0, 1, 1], [], []>} : vector<8x8xf32>, vector<8x8xf32>, vector<8x8xf32> -> vector<8x8xf32>
    %cst_39 = arith.constant 0.353553385 : f32
    %64 = vector.broadcast %cst_39 : f32 to vector<8x8xf32>
    %65 = arith.mulf %63, %64 : vector<8x8xf32>
    %cst_40 = arith.constant dense<0xFF800000> : vector<8xf32>
    %66 = vector.multi_reduction <maximumf>, %65, %cst_40 [1] : vector<8x8xf32> to vector<8xf32>
    %67 = vector.shape_cast %66 : vector<8xf32> to vector<8x1xf32>
    %68 = vector.broadcast %67 : vector<8x1xf32> to vector<8x8xf32>
    %69 = arith.subf %65, %68 : vector<8x8xf32>
    %70 = math.exp %69 : vector<8x8xf32>
    %cst_41 = arith.constant dense<0.000000e+00> : vector<8xf32>
    %71 = vector.multi_reduction <add>, %70, %cst_41 [1] : vector<8x8xf32> to vector<8xf32>
    %72 = vector.shape_cast %71 : vector<8xf32> to vector<8x1xf32>
    %73 = vector.broadcast %72 : vector<8x1xf32> to vector<8x8xf32>
    %74 = arith.divf %70, %73 : vector<8x8xf32>
    %75 = vector.extract_strided_slice %42 {offsets = [0, 8], sizes = [8, 8], strides = [1, 1]} : vector<8x32xf32> to vector<8x8xf32>
    %cst_42 = arith.constant dense<0.000000e+00> : vector<8x8xf32>
    %76 = tpu.matmul %74, %75, %cst_42 {dimension_numbers = #tpu.dot_dimension_numbers<[1], [0], [0], [1], [0, 0, 1, 1], [], []>} : vector<8x8xf32>, vector<8x8xf32>, vector<8x8xf32> -> vector<8x8xf32>
    %77 = vector.extract_strided_slice %40 {offsets = [0, 16], sizes = [8, 8], strides = [1, 1]} : vector<8x32xf32> to vector<8x8xf32>
    %78 = vector.extract_strided_slice %41 {offsets = [0, 16], sizes = [8, 8], strides = [1, 1]} : vector<8x32xf32> to vector<8x8xf32>
    %79 = tpu.transpose %78, [1, 0] : vector<8x8xf32> -> vector<8x8xf32>
    %cst_43 = arith.constant dense<0.000000e+00> : vector<8x8xf32>
    %80 = tpu.matmul %77, %79, %cst_43 {dimension_numbers = #tpu.dot_dimension_numbers<[1], [0], [0], [1], [0, 0, 1, 1], [], []>} : vector<8x8xf32>, vector<8x8xf32>, vector<8x8xf32> -> vector<8x8xf32>
    %cst_44 = arith.constant 0.353553385 : f32
    %81 = vector.broadcast %cst_44 : f32 to vector<8x8xf32>
    %82 = arith.mulf %80, %81 : vector<8x8xf32>
    %cst_45 = arith.constant dense<0xFF800000> : vector<8xf32>
    %83 = vector.multi_reduction <maximumf>, %82, %cst_45 [1] : vector<8x8xf32> to vector<8xf32>
    %84 = vector.shape_cast %83 : vector<8xf32> to vector<8x1xf32>
    %85 = vector.broadcast %84 : vector<8x1xf32> to vector<8x8xf32>
    %86 = arith.subf %82, %85 : vector<8x8xf32>
    %87 = math.exp %86 : vector<8x8xf32>
    %cst_46 = arith.constant dense<0.000000e+00> : vector<8xf32>
    %88 = vector.multi_reduction <add>, %87, %cst_46 [1] : vector<8x8xf32> to vector<8xf32>
    %89 = vector.shape_cast %88 : vector<8xf32> to vector<8x1xf32>
    %90 = vector.broadcast %89 : vector<8x1xf32> to vector<8x8xf32>
    %91 = arith.divf %87, %90 : vector<8x8xf32>
    %92 = vector.extract_strided_slice %42 {offsets = [0, 16], sizes = [8, 8], strides = [1, 1]} : vector<8x32xf32> to vector<8x8xf32>
    %cst_47 = arith.constant dense<0.000000e+00> : vector<8x8xf32>
    %93 = tpu.matmul %91, %92, %cst_47 {dimension_numbers = #tpu.dot_dimension_numbers<[1], [0], [0], [1], [0, 0, 1, 1], [], []>} : vector<8x8xf32>, vector<8x8xf32>, vector<8x8xf32> -> vector<8x8xf32>
    %94 = vector.extract_strided_slice %40 {offsets = [0, 24], sizes = [8, 8], strides = [1, 1]} : vector<8x32xf32> to vector<8x8xf32>
    %95 = vector.extract_strided_slice %41 {offsets = [0, 24], sizes = [8, 8], strides = [1, 1]} : vector<8x32xf32> to vector<8x8xf32>
    %96 = tpu.transpose %95, [1, 0] : vector<8x8xf32> -> vector<8x8xf32>
    %cst_48 = arith.constant dense<0.000000e+00> : vector<8x8xf32>
    %97 = tpu.matmul %94, %96, %cst_48 {dimension_numbers = #tpu.dot_dimension_numbers<[1], [0], [0], [1], [0, 0, 1, 1], [], []>} : vector<8x8xf32>, vector<8x8xf32>, vector<8x8xf32> -> vector<8x8xf32>
    %cst_49 = arith.constant 0.353553385 : f32
    %98 = vector.broadcast %cst_49 : f32 to vector<8x8xf32>
    %99 = arith.mulf %97, %98 : vector<8x8xf32>
    %cst_50 = arith.constant dense<0xFF800000> : vector<8xf32>
    %100 = vector.multi_reduction <maximumf>, %99, %cst_50 [1] : vector<8x8xf32> to vector<8xf32>
    %101 = vector.shape_cast %100 : vector<8xf32> to vector<8x1xf32>
    %102 = vector.broadcast %101 : vector<8x1xf32> to vector<8x8xf32>
    %103 = arith.subf %99, %102 : vector<8x8xf32>
    %104 = math.exp %103 : vector<8x8xf32>
    %cst_51 = arith.constant dense<0.000000e+00> : vector<8xf32>
    %105 = vector.multi_reduction <add>, %104, %cst_51 [1] : vector<8x8xf32> to vector<8xf32>
    %106 = vector.shape_cast %105 : vector<8xf32> to vector<8x1xf32>
    %107 = vector.broadcast %106 : vector<8x1xf32> to vector<8x8xf32>
    %108 = arith.divf %104, %107 : vector<8x8xf32>
    %109 = vector.extract_strided_slice %42 {offsets = [0, 24], sizes = [8, 8], strides = [1, 1]} : vector<8x32xf32> to vector<8x8xf32>
    %cst_52 = arith.constant dense<0.000000e+00> : vector<8x8xf32>
    %110 = tpu.matmul %108, %109, %cst_52 {dimension_numbers = #tpu.dot_dimension_numbers<[1], [0], [0], [1], [0, 0, 1, 1], [], []>} : vector<8x8xf32>, vector<8x8xf32>, vector<8x8xf32> -> vector<8x8xf32>
    %111 = tpu.concatenate %59, %76, %93, %110 in 1 : vector<8x8xf32>, vector<8x8xf32>, vector<8x8xf32>, vector<8x8xf32> -> vector<8x32xf32>
    %cst_53 = arith.constant dense<0.000000e+00> : vector<8x32xf32>
    %112 = tpu.matmul %111, %34, %cst_53 {dimension_numbers = #tpu.dot_dimension_numbers<[1], [0], [0], [1], [0, 0, 1, 1], [], []>} : vector<8x32xf32>, vector<32x32xf32>, vector<8x32xf32> -> vector<8x32xf32>
    %113 = vector.broadcast %36 : vector<1x32xf32> to vector<8x32xf32>
    %114 = arith.addf %112, %113 : vector<8x32xf32>
    %115 = arith.addf %28, %114 : vector<8x32xf32>
    %c0_54 = arith.constant 0 : index
    %c0_55 = arith.constant 0 : index
    %c0_56 = arith.constant 0 : index
    %116 = vector.load %arg18[%c0_54, %c0_55, %c0_56] : memref<2x2x32xf32, #tpu.memory_space<vmem>>, vector<1x2x32xf32>
    %117 = vector.shape_cast %116 : vector<1x2x32xf32> to vector<2x32xf32>
    %118 = vector.extract_strided_slice %117 {offsets = [0, 0], sizes = [1, 32], strides = [1, 1]} : vector<2x32xf32> to vector<1x32xf32>
    %119 = vector.extract_strided_slice %117 {offsets = [1, 0], sizes = [1, 32], strides = [1, 1]} : vector<2x32xf32> to vector<1x32xf32>
    %cst_57 = arith.constant dense<0.000000e+00> : vector<8xf32>
    %120 = vector.multi_reduction <add>, %115, %cst_57 [1] : vector<8x32xf32> to vector<8xf32>
    %121 = vector.shape_cast %120 : vector<8xf32> to vector<8x1xf32>
    %cst_58 = arith.constant 3.200000e+01 : f32
    %122 = vector.broadcast %cst_58 : f32 to vector<8x1xf32>
    %123 = arith.divf %121, %122 : vector<8x1xf32>
    %124 = vector.broadcast %123 : vector<8x1xf32> to vector<8x32xf32>
    %125 = arith.subf %115, %124 : vector<8x32xf32>
    %126 = arith.mulf %125, %125 : vector<8x32xf32>
    %cst_59 = arith.constant dense<0.000000e+00> : vector<8xf32>
    %127 = vector.multi_reduction <add>, %126, %cst_59 [1] : vector<8x32xf32> to vector<8xf32>
    %128 = vector.shape_cast %127 : vector<8xf32> to vector<8x1xf32>
    %cst_60 = arith.constant 3.200000e+01 : f32
    %129 = vector.broadcast %cst_60 : f32 to vector<8x1xf32>
    %130 = arith.divf %128, %129 : vector<8x1xf32>
    %cst_61 = arith.constant 9.99999974E-6 : f32
    %131 = vector.broadcast %cst_61 : f32 to vector<8x1xf32>
    %132 = arith.addf %130, %131 : vector<8x1xf32>
    %133 = math.rsqrt %132 : vector<8x1xf32>
    %134 = vector.broadcast %133 : vector<8x1xf32> to vector<8x32xf32>
    %135 = arith.mulf %125, %134 : vector<8x32xf32>
    %136 = vector.broadcast %118 : vector<1x32xf32> to vector<8x32xf32>
    %137 = arith.mulf %135, %136 : vector<8x32xf32>
    %138 = vector.broadcast %119 : vector<1x32xf32> to vector<8x32xf32>
    %139 = arith.addf %137, %138 : vector<8x32xf32>
    %c0_62 = arith.constant 0 : index
    %c0_63 = arith.constant 0 : index
    %c0_64 = arith.constant 0 : index
    %140 = vector.load %arg14[%c0_62, %c0_63, %c0_64] : memref<2x32x64xf32, #tpu.memory_space<vmem>>, vector<1x32x64xf32>
    %141 = vector.shape_cast %140 : vector<1x32x64xf32> to vector<32x64xf32>
    %c0_65 = arith.constant 0 : index
    %c0_66 = arith.constant 0 : index
    %c0_67 = arith.constant 0 : index
    %142 = vector.load %arg15[%c0_65, %c0_66, %c0_67] : memref<2x1x64xf32, #tpu.memory_space<vmem>>, vector<1x1x64xf32>
    %143 = vector.shape_cast %142 : vector<1x1x64xf32> to vector<1x64xf32>
    %c0_68 = arith.constant 0 : index
    %c0_69 = arith.constant 0 : index
    %c0_70 = arith.constant 0 : index
    %144 = vector.load %arg16[%c0_68, %c0_69, %c0_70] : memref<2x64x32xf32, #tpu.memory_space<vmem>>, vector<1x64x32xf32>
    %145 = vector.shape_cast %144 : vector<1x64x32xf32> to vector<64x32xf32>
    %c0_71 = arith.constant 0 : index
    %c0_72 = arith.constant 0 : index
    %c0_73 = arith.constant 0 : index
    %146 = vector.load %arg17[%c0_71, %c0_72, %c0_73] : memref<2x1x32xf32, #tpu.memory_space<vmem>>, vector<1x1x32xf32>
    %147 = vector.shape_cast %146 : vector<1x1x32xf32> to vector<1x32xf32>
    %cst_74 = arith.constant dense<0.000000e+00> : vector<8x64xf32>
    %148 = tpu.matmul %139, %141, %cst_74 {dimension_numbers = #tpu.dot_dimension_numbers<[1], [0], [0], [1], [0, 0, 1, 1], [], []>} : vector<8x32xf32>, vector<32x64xf32>, vector<8x64xf32> -> vector<8x64xf32>
    %149 = vector.broadcast %143 : vector<1x64xf32> to vector<8x64xf32>
    %150 = arith.addf %148, %149 : vector<8x64xf32>
    %cst_75 = arith.constant 0.000000e+00 : f32
    %151 = vector.broadcast %cst_75 : f32 to vector<8x64xf32>
    %152 = arith.maximumf %150, %151 : vector<8x64xf32>
    %cst_76 = arith.constant dense<0.000000e+00> : vector<8x32xf32>
    %153 = tpu.matmul %152, %145, %cst_76 {dimension_numbers = #tpu.dot_dimension_numbers<[1], [0], [0], [1], [0, 0, 1, 1], [], []>} : vector<8x64xf32>, vector<64x32xf32>, vector<8x32xf32> -> vector<8x32xf32>
    %154 = vector.broadcast %147 : vector<1x32xf32> to vector<8x32xf32>
    %155 = arith.addf %153, %154 : vector<8x32xf32>
    %156 = arith.addf %139, %155 : vector<8x32xf32>
    %c0_77 = arith.constant 0 : index
    %c0_78 = arith.constant 0 : index
    %c0_79 = arith.constant 0 : index
    %157 = vector.load %arg19[%c0_77, %c0_78, %c0_79] : memref<2x2x32xf32, #tpu.memory_space<vmem>>, vector<1x2x32xf32>
    %158 = vector.shape_cast %157 : vector<1x2x32xf32> to vector<2x32xf32>
    %159 = vector.extract_strided_slice %158 {offsets = [0, 0], sizes = [1, 32], strides = [1, 1]} : vector<2x32xf32> to vector<1x32xf32>
    %160 = vector.extract_strided_slice %158 {offsets = [1, 0], sizes = [1, 32], strides = [1, 1]} : vector<2x32xf32> to vector<1x32xf32>
    %cst_80 = arith.constant dense<0.000000e+00> : vector<8xf32>
    %161 = vector.multi_reduction <add>, %156, %cst_80 [1] : vector<8x32xf32> to vector<8xf32>
    %162 = vector.shape_cast %161 : vector<8xf32> to vector<8x1xf32>
    %cst_81 = arith.constant 3.200000e+01 : f32
    %163 = vector.broadcast %cst_81 : f32 to vector<8x1xf32>
    %164 = arith.divf %162, %163 : vector<8x1xf32>
    %165 = vector.broadcast %164 : vector<8x1xf32> to vector<8x32xf32>
    %166 = arith.subf %156, %165 : vector<8x32xf32>
    %167 = arith.mulf %166, %166 : vector<8x32xf32>
    %cst_82 = arith.constant dense<0.000000e+00> : vector<8xf32>
    %168 = vector.multi_reduction <add>, %167, %cst_82 [1] : vector<8x32xf32> to vector<8xf32>
    %169 = vector.shape_cast %168 : vector<8xf32> to vector<8x1xf32>
    %cst_83 = arith.constant 3.200000e+01 : f32
    %170 = vector.broadcast %cst_83 : f32 to vector<8x1xf32>
    %171 = arith.divf %169, %170 : vector<8x1xf32>
    %cst_84 = arith.constant 9.99999974E-6 : f32
    %172 = vector.broadcast %cst_84 : f32 to vector<8x1xf32>
    %173 = arith.addf %171, %172 : vector<8x1xf32>
    %174 = math.rsqrt %173 : vector<8x1xf32>
    %175 = vector.broadcast %174 : vector<8x1xf32> to vector<8x32xf32>
    %176 = arith.mulf %166, %175 : vector<8x32xf32>
    %177 = vector.broadcast %159 : vector<1x32xf32> to vector<8x32xf32>
    %178 = arith.mulf %176, %177 : vector<8x32xf32>
    %179 = vector.broadcast %160 : vector<1x32xf32> to vector<8x32xf32>
    %180 = arith.addf %178, %179 : vector<8x32xf32>
    %c1 = arith.constant 1 : index
    %c0_85 = arith.constant 0 : index
    %c0_86 = arith.constant 0 : index
    %181 = vector.load %arg10[%c1, %c0_85, %c0_86] : memref<2x32x96xf32, #tpu.memory_space<vmem>>, vector<1x32x96xf32>
    %182 = vector.shape_cast %181 : vector<1x32x96xf32> to vector<32x96xf32>
    %c1_87 = arith.constant 1 : index
    %c0_88 = arith.constant 0 : index
    %c0_89 = arith.constant 0 : index
    %183 = vector.load %arg11[%c1_87, %c0_88, %c0_89] : memref<2x1x96xf32, #tpu.memory_space<vmem>>, vector<1x1x96xf32>
    %184 = vector.shape_cast %183 : vector<1x1x96xf32> to vector<1x96xf32>
    %c1_90 = arith.constant 1 : index
    %c0_91 = arith.constant 0 : index
    %c0_92 = arith.constant 0 : index
    %185 = vector.load %arg12[%c1_90, %c0_91, %c0_92] : memref<2x32x32xf32, #tpu.memory_space<vmem>>, vector<1x32x32xf32>
    %186 = vector.shape_cast %185 : vector<1x32x32xf32> to vector<32x32xf32>
    %c1_93 = arith.constant 1 : index
    %c0_94 = arith.constant 0 : index
    %c0_95 = arith.constant 0 : index
    %187 = vector.load %arg13[%c1_93, %c0_94, %c0_95] : memref<2x1x32xf32, #tpu.memory_space<vmem>>, vector<1x1x32xf32>
    %188 = vector.shape_cast %187 : vector<1x1x32xf32> to vector<1x32xf32>
    %cst_96 = arith.constant dense<0.000000e+00> : vector<8x96xf32>
    %189 = tpu.matmul %180, %182, %cst_96 {dimension_numbers = #tpu.dot_dimension_numbers<[1], [0], [0], [1], [0, 0, 1, 1], [], []>} : vector<8x32xf32>, vector<32x96xf32>, vector<8x96xf32> -> vector<8x96xf32>
    %190 = vector.broadcast %184 : vector<1x96xf32> to vector<8x96xf32>
    %191 = arith.addf %189, %190 : vector<8x96xf32>
    %192 = vector.extract_strided_slice %191 {offsets = [0, 0], sizes = [8, 32], strides = [1, 1]} : vector<8x96xf32> to vector<8x32xf32>
    %193 = vector.extract_strided_slice %191 {offsets = [0, 32], sizes = [8, 32], strides = [1, 1]} : vector<8x96xf32> to vector<8x32xf32>
    %194 = vector.extract_strided_slice %191 {offsets = [0, 64], sizes = [8, 32], strides = [1, 1]} : vector<8x96xf32> to vector<8x32xf32>
    %195 = vector.extract_strided_slice %192 {offsets = [0, 0], sizes = [8, 8], strides = [1, 1]} : vector<8x32xf32> to vector<8x8xf32>
    %196 = vector.extract_strided_slice %193 {offsets = [0, 0], sizes = [8, 8], strides = [1, 1]} : vector<8x32xf32> to vector<8x8xf32>
    %197 = tpu.transpose %196, [1, 0] : vector<8x8xf32> -> vector<8x8xf32>
    %cst_97 = arith.constant dense<0.000000e+00> : vector<8x8xf32>
    %198 = tpu.matmul %195, %197, %cst_97 {dimension_numbers = #tpu.dot_dimension_numbers<[1], [0], [0], [1], [0, 0, 1, 1], [], []>} : vector<8x8xf32>, vector<8x8xf32>, vector<8x8xf32> -> vector<8x8xf32>
    %cst_98 = arith.constant 0.353553385 : f32
    %199 = vector.broadcast %cst_98 : f32 to vector<8x8xf32>
    %200 = arith.mulf %198, %199 : vector<8x8xf32>
    %cst_99 = arith.constant dense<0xFF800000> : vector<8xf32>
    %201 = vector.multi_reduction <maximumf>, %200, %cst_99 [1] : vector<8x8xf32> to vector<8xf32>
    %202 = vector.shape_cast %201 : vector<8xf32> to vector<8x1xf32>
    %203 = vector.broadcast %202 : vector<8x1xf32> to vector<8x8xf32>
    %204 = arith.subf %200, %203 : vector<8x8xf32>
    %205 = math.exp %204 : vector<8x8xf32>
    %cst_100 = arith.constant dense<0.000000e+00> : vector<8xf32>
    %206 = vector.multi_reduction <add>, %205, %cst_100 [1] : vector<8x8xf32> to vector<8xf32>
    %207 = vector.shape_cast %206 : vector<8xf32> to vector<8x1xf32>
    %208 = vector.broadcast %207 : vector<8x1xf32> to vector<8x8xf32>
    %209 = arith.divf %205, %208 : vector<8x8xf32>
    %210 = vector.extract_strided_slice %194 {offsets = [0, 0], sizes = [8, 8], strides = [1, 1]} : vector<8x32xf32> to vector<8x8xf32>
    %cst_101 = arith.constant dense<0.000000e+00> : vector<8x8xf32>
    %211 = tpu.matmul %209, %210, %cst_101 {dimension_numbers = #tpu.dot_dimension_numbers<[1], [0], [0], [1], [0, 0, 1, 1], [], []>} : vector<8x8xf32>, vector<8x8xf32>, vector<8x8xf32> -> vector<8x8xf32>
    %212 = vector.extract_strided_slice %192 {offsets = [0, 8], sizes = [8, 8], strides = [1, 1]} : vector<8x32xf32> to vector<8x8xf32>
    %213 = vector.extract_strided_slice %193 {offsets = [0, 8], sizes = [8, 8], strides = [1, 1]} : vector<8x32xf32> to vector<8x8xf32>
    %214 = tpu.transpose %213, [1, 0] : vector<8x8xf32> -> vector<8x8xf32>
    %cst_102 = arith.constant dense<0.000000e+00> : vector<8x8xf32>
    %215 = tpu.matmul %212, %214, %cst_102 {dimension_numbers = #tpu.dot_dimension_numbers<[1], [0], [0], [1], [0, 0, 1, 1], [], []>} : vector<8x8xf32>, vector<8x8xf32>, vector<8x8xf32> -> vector<8x8xf32>
    %cst_103 = arith.constant 0.353553385 : f32
    %216 = vector.broadcast %cst_103 : f32 to vector<8x8xf32>
    %217 = arith.mulf %215, %216 : vector<8x8xf32>
    %cst_104 = arith.constant dense<0xFF800000> : vector<8xf32>
    %218 = vector.multi_reduction <maximumf>, %217, %cst_104 [1] : vector<8x8xf32> to vector<8xf32>
    %219 = vector.shape_cast %218 : vector<8xf32> to vector<8x1xf32>
    %220 = vector.broadcast %219 : vector<8x1xf32> to vector<8x8xf32>
    %221 = arith.subf %217, %220 : vector<8x8xf32>
    %222 = math.exp %221 : vector<8x8xf32>
    %cst_105 = arith.constant dense<0.000000e+00> : vector<8xf32>
    %223 = vector.multi_reduction <add>, %222, %cst_105 [1] : vector<8x8xf32> to vector<8xf32>
    %224 = vector.shape_cast %223 : vector<8xf32> to vector<8x1xf32>
    %225 = vector.broadcast %224 : vector<8x1xf32> to vector<8x8xf32>
    %226 = arith.divf %222, %225 : vector<8x8xf32>
    %227 = vector.extract_strided_slice %194 {offsets = [0, 8], sizes = [8, 8], strides = [1, 1]} : vector<8x32xf32> to vector<8x8xf32>
    %cst_106 = arith.constant dense<0.000000e+00> : vector<8x8xf32>
    %228 = tpu.matmul %226, %227, %cst_106 {dimension_numbers = #tpu.dot_dimension_numbers<[1], [0], [0], [1], [0, 0, 1, 1], [], []>} : vector<8x8xf32>, vector<8x8xf32>, vector<8x8xf32> -> vector<8x8xf32>
    %229 = vector.extract_strided_slice %192 {offsets = [0, 16], sizes = [8, 8], strides = [1, 1]} : vector<8x32xf32> to vector<8x8xf32>
    %230 = vector.extract_strided_slice %193 {offsets = [0, 16], sizes = [8, 8], strides = [1, 1]} : vector<8x32xf32> to vector<8x8xf32>
    %231 = tpu.transpose %230, [1, 0] : vector<8x8xf32> -> vector<8x8xf32>
    %cst_107 = arith.constant dense<0.000000e+00> : vector<8x8xf32>
    %232 = tpu.matmul %229, %231, %cst_107 {dimension_numbers = #tpu.dot_dimension_numbers<[1], [0], [0], [1], [0, 0, 1, 1], [], []>} : vector<8x8xf32>, vector<8x8xf32>, vector<8x8xf32> -> vector<8x8xf32>
    %cst_108 = arith.constant 0.353553385 : f32
    %233 = vector.broadcast %cst_108 : f32 to vector<8x8xf32>
    %234 = arith.mulf %232, %233 : vector<8x8xf32>
    %cst_109 = arith.constant dense<0xFF800000> : vector<8xf32>
    %235 = vector.multi_reduction <maximumf>, %234, %cst_109 [1] : vector<8x8xf32> to vector<8xf32>
    %236 = vector.shape_cast %235 : vector<8xf32> to vector<8x1xf32>
    %237 = vector.broadcast %236 : vector<8x1xf32> to vector<8x8xf32>
    %238 = arith.subf %234, %237 : vector<8x8xf32>
    %239 = math.exp %238 : vector<8x8xf32>
    %cst_110 = arith.constant dense<0.000000e+00> : vector<8xf32>
    %240 = vector.multi_reduction <add>, %239, %cst_110 [1] : vector<8x8xf32> to vector<8xf32>
    %241 = vector.shape_cast %240 : vector<8xf32> to vector<8x1xf32>
    %242 = vector.broadcast %241 : vector<8x1xf32> to vector<8x8xf32>
    %243 = arith.divf %239, %242 : vector<8x8xf32>
    %244 = vector.extract_strided_slice %194 {offsets = [0, 16], sizes = [8, 8], strides = [1, 1]} : vector<8x32xf32> to vector<8x8xf32>
    %cst_111 = arith.constant dense<0.000000e+00> : vector<8x8xf32>
    %245 = tpu.matmul %243, %244, %cst_111 {dimension_numbers = #tpu.dot_dimension_numbers<[1], [0], [0], [1], [0, 0, 1, 1], [], []>} : vector<8x8xf32>, vector<8x8xf32>, vector<8x8xf32> -> vector<8x8xf32>
    %246 = vector.extract_strided_slice %192 {offsets = [0, 24], sizes = [8, 8], strides = [1, 1]} : vector<8x32xf32> to vector<8x8xf32>
    %247 = vector.extract_strided_slice %193 {offsets = [0, 24], sizes = [8, 8], strides = [1, 1]} : vector<8x32xf32> to vector<8x8xf32>
    %248 = tpu.transpose %247, [1, 0] : vector<8x8xf32> -> vector<8x8xf32>
    %cst_112 = arith.constant dense<0.000000e+00> : vector<8x8xf32>
    %249 = tpu.matmul %246, %248, %cst_112 {dimension_numbers = #tpu.dot_dimension_numbers<[1], [0], [0], [1], [0, 0, 1, 1], [], []>} : vector<8x8xf32>, vector<8x8xf32>, vector<8x8xf32> -> vector<8x8xf32>
    %cst_113 = arith.constant 0.353553385 : f32
    %250 = vector.broadcast %cst_113 : f32 to vector<8x8xf32>
    %251 = arith.mulf %249, %250 : vector<8x8xf32>
    %cst_114 = arith.constant dense<0xFF800000> : vector<8xf32>
    %252 = vector.multi_reduction <maximumf>, %251, %cst_114 [1] : vector<8x8xf32> to vector<8xf32>
    %253 = vector.shape_cast %252 : vector<8xf32> to vector<8x1xf32>
    %254 = vector.broadcast %253 : vector<8x1xf32> to vector<8x8xf32>
    %255 = arith.subf %251, %254 : vector<8x8xf32>
    %256 = math.exp %255 : vector<8x8xf32>
    %cst_115 = arith.constant dense<0.000000e+00> : vector<8xf32>
    %257 = vector.multi_reduction <add>, %256, %cst_115 [1] : vector<8x8xf32> to vector<8xf32>
    %258 = vector.shape_cast %257 : vector<8xf32> to vector<8x1xf32>
    %259 = vector.broadcast %258 : vector<8x1xf32> to vector<8x8xf32>
    %260 = arith.divf %256, %259 : vector<8x8xf32>
    %261 = vector.extract_strided_slice %194 {offsets = [0, 24], sizes = [8, 8], strides = [1, 1]} : vector<8x32xf32> to vector<8x8xf32>
    %cst_116 = arith.constant dense<0.000000e+00> : vector<8x8xf32>
    %262 = tpu.matmul %260, %261, %cst_116 {dimension_numbers = #tpu.dot_dimension_numbers<[1], [0], [0], [1], [0, 0, 1, 1], [], []>} : vector<8x8xf32>, vector<8x8xf32>, vector<8x8xf32> -> vector<8x8xf32>
    %263 = tpu.concatenate %211, %228, %245, %262 in 1 : vector<8x8xf32>, vector<8x8xf32>, vector<8x8xf32>, vector<8x8xf32> -> vector<8x32xf32>
    %cst_117 = arith.constant dense<0.000000e+00> : vector<8x32xf32>
    %264 = tpu.matmul %263, %186, %cst_117 {dimension_numbers = #tpu.dot_dimension_numbers<[1], [0], [0], [1], [0, 0, 1, 1], [], []>} : vector<8x32xf32>, vector<32x32xf32>, vector<8x32xf32> -> vector<8x32xf32>
    %265 = vector.broadcast %188 : vector<1x32xf32> to vector<8x32xf32>
    %266 = arith.addf %264, %265 : vector<8x32xf32>
    %267 = arith.addf %180, %266 : vector<8x32xf32>
    %c1_118 = arith.constant 1 : index
    %c0_119 = arith.constant 0 : index
    %c0_120 = arith.constant 0 : index
    %268 = vector.load %arg18[%c1_118, %c0_119, %c0_120] : memref<2x2x32xf32, #tpu.memory_space<vmem>>, vector<1x2x32xf32>
    %269 = vector.shape_cast %268 : vector<1x2x32xf32> to vector<2x32xf32>
    %270 = vector.extract_strided_slice %269 {offsets = [0, 0], sizes = [1, 32], strides = [1, 1]} : vector<2x32xf32> to vector<1x32xf32>
    %271 = vector.extract_strided_slice %269 {offsets = [1, 0], sizes = [1, 32], strides = [1, 1]} : vector<2x32xf32> to vector<1x32xf32>
    %cst_121 = arith.constant dense<0.000000e+00> : vector<8xf32>
    %272 = vector.multi_reduction <add>, %267, %cst_121 [1] : vector<8x32xf32> to vector<8xf32>
    %273 = vector.shape_cast %272 : vector<8xf32> to vector<8x1xf32>
    %cst_122 = arith.constant 3.200000e+01 : f32
    %274 = vector.broadcast %cst_122 : f32 to vector<8x1xf32>
    %275 = arith.divf %273, %274 : vector<8x1xf32>
    %276 = vector.broadcast %275 : vector<8x1xf32> to vector<8x32xf32>
    %277 = arith.subf %267, %276 : vector<8x32xf32>
    %278 = arith.mulf %277, %277 : vector<8x32xf32>
    %cst_123 = arith.constant dense<0.000000e+00> : vector<8xf32>
    %279 = vector.multi_reduction <add>, %278, %cst_123 [1] : vector<8x32xf32> to vector<8xf32>
    %280 = vector.shape_cast %279 : vector<8xf32> to vector<8x1xf32>
    %cst_124 = arith.constant 3.200000e+01 : f32
    %281 = vector.broadcast %cst_124 : f32 to vector<8x1xf32>
    %282 = arith.divf %280, %281 : vector<8x1xf32>
    %cst_125 = arith.constant 9.99999974E-6 : f32
    %283 = vector.broadcast %cst_125 : f32 to vector<8x1xf32>
    %284 = arith.addf %282, %283 : vector<8x1xf32>
    %285 = math.rsqrt %284 : vector<8x1xf32>
    %286 = vector.broadcast %285 : vector<8x1xf32> to vector<8x32xf32>
    %287 = arith.mulf %277, %286 : vector<8x32xf32>
    %288 = vector.broadcast %270 : vector<1x32xf32> to vector<8x32xf32>
    %289 = arith.mulf %287, %288 : vector<8x32xf32>
    %290 = vector.broadcast %271 : vector<1x32xf32> to vector<8x32xf32>
    %291 = arith.addf %289, %290 : vector<8x32xf32>
    %c1_126 = arith.constant 1 : index
    %c0_127 = arith.constant 0 : index
    %c0_128 = arith.constant 0 : index
    %292 = vector.load %arg14[%c1_126, %c0_127, %c0_128] : memref<2x32x64xf32, #tpu.memory_space<vmem>>, vector<1x32x64xf32>
    %293 = vector.shape_cast %292 : vector<1x32x64xf32> to vector<32x64xf32>
    %c1_129 = arith.constant 1 : index
    %c0_130 = arith.constant 0 : index
    %c0_131 = arith.constant 0 : index
    %294 = vector.load %arg15[%c1_129, %c0_130, %c0_131] : memref<2x1x64xf32, #tpu.memory_space<vmem>>, vector<1x1x64xf32>
    %295 = vector.shape_cast %294 : vector<1x1x64xf32> to vector<1x64xf32>
    %c1_132 = arith.constant 1 : index
    %c0_133 = arith.constant 0 : index
    %c0_134 = arith.constant 0 : index
    %296 = vector.load %arg16[%c1_132, %c0_133, %c0_134] : memref<2x64x32xf32, #tpu.memory_space<vmem>>, vector<1x64x32xf32>
    %297 = vector.shape_cast %296 : vector<1x64x32xf32> to vector<64x32xf32>
    %c1_135 = arith.constant 1 : index
    %c0_136 = arith.constant 0 : index
    %c0_137 = arith.constant 0 : index
    %298 = vector.load %arg17[%c1_135, %c0_136, %c0_137] : memref<2x1x32xf32, #tpu.memory_space<vmem>>, vector<1x1x32xf32>
    %299 = vector.shape_cast %298 : vector<1x1x32xf32> to vector<1x32xf32>
    %cst_138 = arith.constant dense<0.000000e+00> : vector<8x64xf32>
    %300 = tpu.matmul %291, %293, %cst_138 {dimension_numbers = #tpu.dot_dimension_numbers<[1], [0], [0], [1], [0, 0, 1, 1], [], []>} : vector<8x32xf32>, vector<32x64xf32>, vector<8x64xf32> -> vector<8x64xf32>
    %301 = vector.broadcast %295 : vector<1x64xf32> to vector<8x64xf32>
    %302 = arith.addf %300, %301 : vector<8x64xf32>
    %cst_139 = arith.constant 0.000000e+00 : f32
    %303 = vector.broadcast %cst_139 : f32 to vector<8x64xf32>
    %304 = arith.maximumf %302, %303 : vector<8x64xf32>
    %cst_140 = arith.constant dense<0.000000e+00> : vector<8x32xf32>
    %305 = tpu.matmul %304, %297, %cst_140 {dimension_numbers = #tpu.dot_dimension_numbers<[1], [0], [0], [1], [0, 0, 1, 1], [], []>} : vector<8x64xf32>, vector<64x32xf32>, vector<8x32xf32> -> vector<8x32xf32>
    %306 = vector.broadcast %299 : vector<1x32xf32> to vector<8x32xf32>
    %307 = arith.addf %305, %306 : vector<8x32xf32>
    %308 = arith.addf %291, %307 : vector<8x32xf32>
    %c1_141 = arith.constant 1 : index
    %c0_142 = arith.constant 0 : index
    %c0_143 = arith.constant 0 : index
    %309 = vector.load %arg19[%c1_141, %c0_142, %c0_143] : memref<2x2x32xf32, #tpu.memory_space<vmem>>, vector<1x2x32xf32>
    %310 = vector.shape_cast %309 : vector<1x2x32xf32> to vector<2x32xf32>
    %311 = vector.extract_strided_slice %310 {offsets = [0, 0], sizes = [1, 32], strides = [1, 1]} : vector<2x32xf32> to vector<1x32xf32>
    %312 = vector.extract_strided_slice %310 {offsets = [1, 0], sizes = [1, 32], strides = [1, 1]} : vector<2x32xf32> to vector<1x32xf32>
    %cst_144 = arith.constant dense<0.000000e+00> : vector<8xf32>
    %313 = vector.multi_reduction <add>, %308, %cst_144 [1] : vector<8x32xf32> to vector<8xf32>
    %314 = vector.shape_cast %313 : vector<8xf32> to vector<8x1xf32>
    %cst_145 = arith.constant 3.200000e+01 : f32
    %315 = vector.broadcast %cst_145 : f32 to vector<8x1xf32>
    %316 = arith.divf %314, %315 : vector<8x1xf32>
    %317 = vector.broadcast %316 : vector<8x1xf32> to vector<8x32xf32>
    %318 = arith.subf %308, %317 : vector<8x32xf32>
    %319 = arith.mulf %318, %318 : vector<8x32xf32>
    %cst_146 = arith.constant dense<0.000000e+00> : vector<8xf32>
    %320 = vector.multi_reduction <add>, %319, %cst_146 [1] : vector<8x32xf32> to vector<8xf32>
    %321 = vector.shape_cast %320 : vector<8xf32> to vector<8x1xf32>
    %cst_147 = arith.constant 3.200000e+01 : f32
    %322 = vector.broadcast %cst_147 : f32 to vector<8x1xf32>
    %323 = arith.divf %321, %322 : vector<8x1xf32>
    %cst_148 = arith.constant 9.99999974E-6 : f32
    %324 = vector.broadcast %cst_148 : f32 to vector<8x1xf32>
    %325 = arith.addf %323, %324 : vector<8x1xf32>
    %326 = math.rsqrt %325 : vector<8x1xf32>
    %327 = vector.broadcast %326 : vector<8x1xf32> to vector<8x32xf32>
    %328 = arith.mulf %318, %327 : vector<8x32xf32>
    %329 = vector.broadcast %311 : vector<1x32xf32> to vector<8x32xf32>
    %330 = arith.mulf %328, %329 : vector<8x32xf32>
    %331 = vector.broadcast %312 : vector<1x32xf32> to vector<8x32xf32>
    %332 = arith.addf %330, %331 : vector<8x32xf32>
    %c0_149 = arith.constant 0 : index
    %c0_150 = arith.constant 0 : index
    %333 = vector.load %arg20[%c0_149, %c0_150] : memref<2x32xf32, #tpu.memory_space<vmem>>, vector<2x32xf32>
    %334 = vector.extract_strided_slice %333 {offsets = [0, 0], sizes = [1, 32], strides = [1, 1]} : vector<2x32xf32> to vector<1x32xf32>
    %335 = vector.extract_strided_slice %333 {offsets = [1, 0], sizes = [1, 32], strides = [1, 1]} : vector<2x32xf32> to vector<1x32xf32>
    %cst_151 = arith.constant dense<0.000000e+00> : vector<8xf32>
    %336 = vector.multi_reduction <add>, %332, %cst_151 [1] : vector<8x32xf32> to vector<8xf32>
    %337 = vector.shape_cast %336 : vector<8xf32> to vector<8x1xf32>
    %cst_152 = arith.constant 3.200000e+01 : f32
    %338 = vector.broadcast %cst_152 : f32 to vector<8x1xf32>
    %339 = arith.divf %337, %338 : vector<8x1xf32>
    %340 = vector.broadcast %339 : vector<8x1xf32> to vector<8x32xf32>
    %341 = arith.subf %332, %340 : vector<8x32xf32>
    %342 = arith.mulf %341, %341 : vector<8x32xf32>
    %cst_153 = arith.constant dense<0.000000e+00> : vector<8xf32>
    %343 = vector.multi_reduction <add>, %342, %cst_153 [1] : vector<8x32xf32> to vector<8xf32>
    %344 = vector.shape_cast %343 : vector<8xf32> to vector<8x1xf32>
    %cst_154 = arith.constant 3.200000e+01 : f32
    %345 = vector.broadcast %cst_154 : f32 to vector<8x1xf32>
    %346 = arith.divf %344, %345 : vector<8x1xf32>
    %cst_155 = arith.constant 9.99999974E-6 : f32
    %347 = vector.broadcast %cst_155 : f32 to vector<8x1xf32>
    %348 = arith.addf %346, %347 : vector<8x1xf32>
    %349 = math.rsqrt %348 : vector<8x1xf32>
    %350 = vector.broadcast %349 : vector<8x1xf32> to vector<8x32xf32>
    %351 = arith.mulf %341, %350 : vector<8x32xf32>
    %352 = vector.broadcast %334 : vector<1x32xf32> to vector<8x32xf32>
    %353 = arith.mulf %351, %352 : vector<8x32xf32>
    %354 = vector.broadcast %335 : vector<1x32xf32> to vector<8x32xf32>
    %355 = arith.addf %353, %354 : vector<8x32xf32>
    %c0_156 = arith.constant 0 : index
    %c0_157 = arith.constant 0 : index
    %c0_158 = arith.constant 0 : index
    %356 = vector.load %arg4[%c0_156, %c0_157, %c0_158] : memref<1x4x1xf32, #tpu.memory_space<vmem>>, vector<1x4x1xf32>
    %357 = vector.shape_cast %356 : vector<1x4x1xf32> to vector<4x1xf32>
    %c0_159 = arith.constant 0 : index
    %c0_160 = arith.constant 0 : index
    %358 = vector.load %arg21[%c0_159, %c0_160] : memref<1x32xf32, #tpu.memory_space<vmem>>, vector<1x32xf32>
    %359 = vector.broadcast %357 : vector<4x1xf32> to vector<4x32xf32>
    %360 = vector.broadcast %358 : vector<1x32xf32> to vector<4x32xf32>
    %361 = arith.mulf %359, %360 : vector<4x32xf32>
    %c0_161 = arith.constant 0 : index
    %c0_162 = arith.constant 0 : index
    %c0_163 = arith.constant 0 : index
    %362 = vector.load %arg6[%c0_161, %c0_162, %c0_163] : memref<1x4x32xf32, #tpu.memory_space<vmem>>, vector<1x4x32xf32>
    %363 = vector.shape_cast %362 : vector<1x4x32xf32> to vector<4x32xf32>
    %364 = arith.addf %361, %363 : vector<4x32xf32>
    %cst_164 = arith.constant 0.000000e+00 : f32
    %365 = vector.broadcast %cst_164 : f32 to vector<4x32xf32>
    %366 = arith.maximumf %364, %365 : vector<4x32xf32>
    %c0_165 = arith.constant 0 : index
    %c0_166 = arith.constant 0 : index
    %c0_167 = arith.constant 0 : index
    %367 = vector.load %arg22[%c0_165, %c0_166, %c0_167] : memref<2x32x96xf32, #tpu.memory_space<vmem>>, vector<1x32x96xf32>
    %368 = vector.shape_cast %367 : vector<1x32x96xf32> to vector<32x96xf32>
    %c0_168 = arith.constant 0 : index
    %c0_169 = arith.constant 0 : index
    %c0_170 = arith.constant 0 : index
    %369 = vector.load %arg23[%c0_168, %c0_169, %c0_170] : memref<2x1x96xf32, #tpu.memory_space<vmem>>, vector<1x1x96xf32>
    %370 = vector.shape_cast %369 : vector<1x1x96xf32> to vector<1x96xf32>
    %c0_171 = arith.constant 0 : index
    %c0_172 = arith.constant 0 : index
    %c0_173 = arith.constant 0 : index
    %371 = vector.load %arg24[%c0_171, %c0_172, %c0_173] : memref<2x32x32xf32, #tpu.memory_space<vmem>>, vector<1x32x32xf32>
    %372 = vector.shape_cast %371 : vector<1x32x32xf32> to vector<32x32xf32>
    %c0_174 = arith.constant 0 : index
    %c0_175 = arith.constant 0 : index
    %c0_176 = arith.constant 0 : index
    %373 = vector.load %arg25[%c0_174, %c0_175, %c0_176] : memref<2x1x32xf32, #tpu.memory_space<vmem>>, vector<1x1x32xf32>
    %374 = vector.shape_cast %373 : vector<1x1x32xf32> to vector<1x32xf32>
    %cst_177 = arith.constant dense<0.000000e+00> : vector<4x96xf32>
    %375 = tpu.matmul %366, %368, %cst_177 {dimension_numbers = #tpu.dot_dimension_numbers<[1], [0], [0], [1], [0, 0, 1, 1], [], []>} : vector<4x32xf32>, vector<32x96xf32>, vector<4x96xf32> -> vector<4x96xf32>
    %376 = vector.broadcast %370 : vector<1x96xf32> to vector<4x96xf32>
    %377 = arith.addf %375, %376 : vector<4x96xf32>
    %378 = vector.extract_strided_slice %377 {offsets = [0, 0], sizes = [4, 32], strides = [1, 1]} : vector<4x96xf32> to vector<4x32xf32>
    %379 = vector.extract_strided_slice %377 {offsets = [0, 32], sizes = [4, 32], strides = [1, 1]} : vector<4x96xf32> to vector<4x32xf32>
    %380 = vector.extract_strided_slice %377 {offsets = [0, 64], sizes = [4, 32], strides = [1, 1]} : vector<4x96xf32> to vector<4x32xf32>
    %381 = vector.extract_strided_slice %378 {offsets = [0, 0], sizes = [4, 8], strides = [1, 1]} : vector<4x32xf32> to vector<4x8xf32>
    %382 = vector.extract_strided_slice %379 {offsets = [0, 0], sizes = [4, 8], strides = [1, 1]} : vector<4x32xf32> to vector<4x8xf32>
    %383 = tpu.transpose %382, [1, 0] : vector<4x8xf32> -> vector<8x4xf32>
    %cst_178 = arith.constant dense<0.000000e+00> : vector<4x4xf32>
    %384 = tpu.matmul %381, %383, %cst_178 {dimension_numbers = #tpu.dot_dimension_numbers<[1], [0], [0], [1], [0, 0, 1, 1], [], []>} : vector<4x8xf32>, vector<8x4xf32>, vector<4x4xf32> -> vector<4x4xf32>
    %cst_179 = arith.constant 0.353553385 : f32
    %385 = vector.broadcast %cst_179 : f32 to vector<4x4xf32>
    %386 = arith.mulf %384, %385 : vector<4x4xf32>
    %cst_180 = arith.constant dense<0xFF800000> : vector<4xf32>
    %387 = vector.multi_reduction <maximumf>, %386, %cst_180 [1] : vector<4x4xf32> to vector<4xf32>
    %388 = vector.shape_cast %387 : vector<4xf32> to vector<4x1xf32>
    %389 = vector.broadcast %388 : vector<4x1xf32> to vector<4x4xf32>
    %390 = arith.subf %386, %389 : vector<4x4xf32>
    %391 = math.exp %390 : vector<4x4xf32>
    %cst_181 = arith.constant dense<0.000000e+00> : vector<4xf32>
    %392 = vector.multi_reduction <add>, %391, %cst_181 [1] : vector<4x4xf32> to vector<4xf32>
    %393 = vector.shape_cast %392 : vector<4xf32> to vector<4x1xf32>
    %394 = vector.broadcast %393 : vector<4x1xf32> to vector<4x4xf32>
    %395 = arith.divf %391, %394 : vector<4x4xf32>
    %396 = vector.extract_strided_slice %380 {offsets = [0, 0], sizes = [4, 8], strides = [1, 1]} : vector<4x32xf32> to vector<4x8xf32>
    %cst_182 = arith.constant dense<0.000000e+00> : vector<4x8xf32>
    %397 = tpu.matmul %395, %396, %cst_182 {dimension_numbers = #tpu.dot_dimension_numbers<[1], [0], [0], [1], [0, 0, 1, 1], [], []>} : vector<4x4xf32>, vector<4x8xf32>, vector<4x8xf32> -> vector<4x8xf32>
    %398 = vector.extract_strided_slice %378 {offsets = [0, 8], sizes = [4, 8], strides = [1, 1]} : vector<4x32xf32> to vector<4x8xf32>
    %399 = vector.extract_strided_slice %379 {offsets = [0, 8], sizes = [4, 8], strides = [1, 1]} : vector<4x32xf32> to vector<4x8xf32>
    %400 = tpu.transpose %399, [1, 0] : vector<4x8xf32> -> vector<8x4xf32>
    %cst_183 = arith.constant dense<0.000000e+00> : vector<4x4xf32>
    %401 = tpu.matmul %398, %400, %cst_183 {dimension_numbers = #tpu.dot_dimension_numbers<[1], [0], [0], [1], [0, 0, 1, 1], [], []>} : vector<4x8xf32>, vector<8x4xf32>, vector<4x4xf32> -> vector<4x4xf32>
    %cst_184 = arith.constant 0.353553385 : f32
    %402 = vector.broadcast %cst_184 : f32 to vector<4x4xf32>
    %403 = arith.mulf %401, %402 : vector<4x4xf32>
    %cst_185 = arith.constant dense<0xFF800000> : vector<4xf32>
    %404 = vector.multi_reduction <maximumf>, %403, %cst_185 [1] : vector<4x4xf32> to vector<4xf32>
    %405 = vector.shape_cast %404 : vector<4xf32> to vector<4x1xf32>
    %406 = vector.broadcast %405 : vector<4x1xf32> to vector<4x4xf32>
    %407 = arith.subf %403, %406 : vector<4x4xf32>
    %408 = math.exp %407 : vector<4x4xf32>
    %cst_186 = arith.constant dense<0.000000e+00> : vector<4xf32>
    %409 = vector.multi_reduction <add>, %408, %cst_186 [1] : vector<4x4xf32> to vector<4xf32>
    %410 = vector.shape_cast %409 : vector<4xf32> to vector<4x1xf32>
    %411 = vector.broadcast %410 : vector<4x1xf32> to vector<4x4xf32>
    %412 = arith.divf %408, %411 : vector<4x4xf32>
    %413 = vector.extract_strided_slice %380 {offsets = [0, 8], sizes = [4, 8], strides = [1, 1]} : vector<4x32xf32> to vector<4x8xf32>
    %cst_187 = arith.constant dense<0.000000e+00> : vector<4x8xf32>
    %414 = tpu.matmul %412, %413, %cst_187 {dimension_numbers = #tpu.dot_dimension_numbers<[1], [0], [0], [1], [0, 0, 1, 1], [], []>} : vector<4x4xf32>, vector<4x8xf32>, vector<4x8xf32> -> vector<4x8xf32>
    %415 = vector.extract_strided_slice %378 {offsets = [0, 16], sizes = [4, 8], strides = [1, 1]} : vector<4x32xf32> to vector<4x8xf32>
    %416 = vector.extract_strided_slice %379 {offsets = [0, 16], sizes = [4, 8], strides = [1, 1]} : vector<4x32xf32> to vector<4x8xf32>
    %417 = tpu.transpose %416, [1, 0] : vector<4x8xf32> -> vector<8x4xf32>
    %cst_188 = arith.constant dense<0.000000e+00> : vector<4x4xf32>
    %418 = tpu.matmul %415, %417, %cst_188 {dimension_numbers = #tpu.dot_dimension_numbers<[1], [0], [0], [1], [0, 0, 1, 1], [], []>} : vector<4x8xf32>, vector<8x4xf32>, vector<4x4xf32> -> vector<4x4xf32>
    %cst_189 = arith.constant 0.353553385 : f32
    %419 = vector.broadcast %cst_189 : f32 to vector<4x4xf32>
    %420 = arith.mulf %418, %419 : vector<4x4xf32>
    %cst_190 = arith.constant dense<0xFF800000> : vector<4xf32>
    %421 = vector.multi_reduction <maximumf>, %420, %cst_190 [1] : vector<4x4xf32> to vector<4xf32>
    %422 = vector.shape_cast %421 : vector<4xf32> to vector<4x1xf32>
    %423 = vector.broadcast %422 : vector<4x1xf32> to vector<4x4xf32>
    %424 = arith.subf %420, %423 : vector<4x4xf32>
    %425 = math.exp %424 : vector<4x4xf32>
    %cst_191 = arith.constant dense<0.000000e+00> : vector<4xf32>
    %426 = vector.multi_reduction <add>, %425, %cst_191 [1] : vector<4x4xf32> to vector<4xf32>
    %427 = vector.shape_cast %426 : vector<4xf32> to vector<4x1xf32>
    %428 = vector.broadcast %427 : vector<4x1xf32> to vector<4x4xf32>
    %429 = arith.divf %425, %428 : vector<4x4xf32>
    %430 = vector.extract_strided_slice %380 {offsets = [0, 16], sizes = [4, 8], strides = [1, 1]} : vector<4x32xf32> to vector<4x8xf32>
    %cst_192 = arith.constant dense<0.000000e+00> : vector<4x8xf32>
    %431 = tpu.matmul %429, %430, %cst_192 {dimension_numbers = #tpu.dot_dimension_numbers<[1], [0], [0], [1], [0, 0, 1, 1], [], []>} : vector<4x4xf32>, vector<4x8xf32>, vector<4x8xf32> -> vector<4x8xf32>
    %432 = vector.extract_strided_slice %378 {offsets = [0, 24], sizes = [4, 8], strides = [1, 1]} : vector<4x32xf32> to vector<4x8xf32>
    %433 = vector.extract_strided_slice %379 {offsets = [0, 24], sizes = [4, 8], strides = [1, 1]} : vector<4x32xf32> to vector<4x8xf32>
    %434 = tpu.transpose %433, [1, 0] : vector<4x8xf32> -> vector<8x4xf32>
    %cst_193 = arith.constant dense<0.000000e+00> : vector<4x4xf32>
    %435 = tpu.matmul %432, %434, %cst_193 {dimension_numbers = #tpu.dot_dimension_numbers<[1], [0], [0], [1], [0, 0, 1, 1], [], []>} : vector<4x8xf32>, vector<8x4xf32>, vector<4x4xf32> -> vector<4x4xf32>
    %cst_194 = arith.constant 0.353553385 : f32
    %436 = vector.broadcast %cst_194 : f32 to vector<4x4xf32>
    %437 = arith.mulf %435, %436 : vector<4x4xf32>
    %cst_195 = arith.constant dense<0xFF800000> : vector<4xf32>
    %438 = vector.multi_reduction <maximumf>, %437, %cst_195 [1] : vector<4x4xf32> to vector<4xf32>
    %439 = vector.shape_cast %438 : vector<4xf32> to vector<4x1xf32>
    %440 = vector.broadcast %439 : vector<4x1xf32> to vector<4x4xf32>
    %441 = arith.subf %437, %440 : vector<4x4xf32>
    %442 = math.exp %441 : vector<4x4xf32>
    %cst_196 = arith.constant dense<0.000000e+00> : vector<4xf32>
    %443 = vector.multi_reduction <add>, %442, %cst_196 [1] : vector<4x4xf32> to vector<4xf32>
    %444 = vector.shape_cast %443 : vector<4xf32> to vector<4x1xf32>
    %445 = vector.broadcast %444 : vector<4x1xf32> to vector<4x4xf32>
    %446 = arith.divf %442, %445 : vector<4x4xf32>
    %447 = vector.extract_strided_slice %380 {offsets = [0, 24], sizes = [4, 8], strides = [1, 1]} : vector<4x32xf32> to vector<4x8xf32>
    %cst_197 = arith.constant dense<0.000000e+00> : vector<4x8xf32>
    %448 = tpu.matmul %446, %447, %cst_197 {dimension_numbers = #tpu.dot_dimension_numbers<[1], [0], [0], [1], [0, 0, 1, 1], [], []>} : vector<4x4xf32>, vector<4x8xf32>, vector<4x8xf32> -> vector<4x8xf32>
    %449 = tpu.concatenate %397, %414, %431, %448 in 1 : vector<4x8xf32>, vector<4x8xf32>, vector<4x8xf32>, vector<4x8xf32> -> vector<4x32xf32>
    %cst_198 = arith.constant dense<0.000000e+00> : vector<4x32xf32>
    %450 = tpu.matmul %449, %372, %cst_198 {dimension_numbers = #tpu.dot_dimension_numbers<[1], [0], [0], [1], [0, 0, 1, 1], [], []>} : vector<4x32xf32>, vector<32x32xf32>, vector<4x32xf32> -> vector<4x32xf32>
    %451 = vector.broadcast %374 : vector<1x32xf32> to vector<4x32xf32>
    %452 = arith.addf %450, %451 : vector<4x32xf32>
    %453 = arith.addf %366, %452 : vector<4x32xf32>
    %c0_199 = arith.constant 0 : index
    %c0_200 = arith.constant 0 : index
    %c0_201 = arith.constant 0 : index
    %454 = vector.load %arg36[%c0_199, %c0_200, %c0_201] : memref<2x2x32xf32, #tpu.memory_space<vmem>>, vector<1x2x32xf32>
    %455 = vector.shape_cast %454 : vector<1x2x32xf32> to vector<2x32xf32>
    %456 = vector.extract_strided_slice %455 {offsets = [0, 0], sizes = [1, 32], strides = [1, 1]} : vector<2x32xf32> to vector<1x32xf32>
    %457 = vector.extract_strided_slice %455 {offsets = [1, 0], sizes = [1, 32], strides = [1, 1]} : vector<2x32xf32> to vector<1x32xf32>
    %cst_202 = arith.constant dense<0.000000e+00> : vector<4xf32>
    %458 = vector.multi_reduction <add>, %453, %cst_202 [1] : vector<4x32xf32> to vector<4xf32>
    %459 = vector.shape_cast %458 : vector<4xf32> to vector<4x1xf32>
    %cst_203 = arith.constant 3.200000e+01 : f32
    %460 = vector.broadcast %cst_203 : f32 to vector<4x1xf32>
    %461 = arith.divf %459, %460 : vector<4x1xf32>
    %462 = vector.broadcast %461 : vector<4x1xf32> to vector<4x32xf32>
    %463 = arith.subf %453, %462 : vector<4x32xf32>
    %464 = arith.mulf %463, %463 : vector<4x32xf32>
    %cst_204 = arith.constant dense<0.000000e+00> : vector<4xf32>
    %465 = vector.multi_reduction <add>, %464, %cst_204 [1] : vector<4x32xf32> to vector<4xf32>
    %466 = vector.shape_cast %465 : vector<4xf32> to vector<4x1xf32>
    %cst_205 = arith.constant 3.200000e+01 : f32
    %467 = vector.broadcast %cst_205 : f32 to vector<4x1xf32>
    %468 = arith.divf %466, %467 : vector<4x1xf32>
    %cst_206 = arith.constant 9.99999974E-6 : f32
    %469 = vector.broadcast %cst_206 : f32 to vector<4x1xf32>
    %470 = arith.addf %468, %469 : vector<4x1xf32>
    %471 = math.rsqrt %470 : vector<4x1xf32>
    %472 = vector.broadcast %471 : vector<4x1xf32> to vector<4x32xf32>
    %473 = arith.mulf %463, %472 : vector<4x32xf32>
    %474 = vector.broadcast %456 : vector<1x32xf32> to vector<4x32xf32>
    %475 = arith.mulf %473, %474 : vector<4x32xf32>
    %476 = vector.broadcast %457 : vector<1x32xf32> to vector<4x32xf32>
    %477 = arith.addf %475, %476 : vector<4x32xf32>
    %c0_207 = arith.constant 0 : index
    %c0_208 = arith.constant 0 : index
    %c0_209 = arith.constant 0 : index
    %478 = vector.load %arg26[%c0_207, %c0_208, %c0_209] : memref<2x32x32xf32, #tpu.memory_space<vmem>>, vector<1x32x32xf32>
    %479 = vector.shape_cast %478 : vector<1x32x32xf32> to vector<32x32xf32>
    %c0_210 = arith.constant 0 : index
    %c0_211 = arith.constant 0 : index
    %c0_212 = arith.constant 0 : index
    %480 = vector.load %arg27[%c0_210, %c0_211, %c0_212] : memref<2x1x32xf32, #tpu.memory_space<vmem>>, vector<1x1x32xf32>
    %481 = vector.shape_cast %480 : vector<1x1x32xf32> to vector<1x32xf32>
    %c0_213 = arith.constant 0 : index
    %c0_214 = arith.constant 0 : index
    %c0_215 = arith.constant 0 : index
    %482 = vector.load %arg28[%c0_213, %c0_214, %c0_215] : memref<2x32x64xf32, #tpu.memory_space<vmem>>, vector<1x32x64xf32>
    %483 = vector.shape_cast %482 : vector<1x32x64xf32> to vector<32x64xf32>
    %c0_216 = arith.constant 0 : index
    %c0_217 = arith.constant 0 : index
    %c0_218 = arith.constant 0 : index
    %484 = vector.load %arg29[%c0_216, %c0_217, %c0_218] : memref<2x1x64xf32, #tpu.memory_space<vmem>>, vector<1x1x64xf32>
    %485 = vector.shape_cast %484 : vector<1x1x64xf32> to vector<1x64xf32>
    %c0_219 = arith.constant 0 : index
    %c0_220 = arith.constant 0 : index
    %c0_221 = arith.constant 0 : index
    %486 = vector.load %arg30[%c0_219, %c0_220, %c0_221] : memref<2x32x32xf32, #tpu.memory_space<vmem>>, vector<1x32x32xf32>
    %487 = vector.shape_cast %486 : vector<1x32x32xf32> to vector<32x32xf32>
    %c0_222 = arith.constant 0 : index
    %c0_223 = arith.constant 0 : index
    %c0_224 = arith.constant 0 : index
    %488 = vector.load %arg31[%c0_222, %c0_223, %c0_224] : memref<2x1x32xf32, #tpu.memory_space<vmem>>, vector<1x1x32xf32>
    %489 = vector.shape_cast %488 : vector<1x1x32xf32> to vector<1x32xf32>
    %cst_225 = arith.constant dense<0.000000e+00> : vector<4x32xf32>
    %490 = tpu.matmul %477, %479, %cst_225 {dimension_numbers = #tpu.dot_dimension_numbers<[1], [0], [0], [1], [0, 0, 1, 1], [], []>} : vector<4x32xf32>, vector<32x32xf32>, vector<4x32xf32> -> vector<4x32xf32>
    %491 = vector.broadcast %481 : vector<1x32xf32> to vector<4x32xf32>
    %492 = arith.addf %490, %491 : vector<4x32xf32>
    %cst_226 = arith.constant dense<0.000000e+00> : vector<8x64xf32>
    %493 = tpu.matmul %355, %483, %cst_226 {dimension_numbers = #tpu.dot_dimension_numbers<[1], [0], [0], [1], [0, 0, 1, 1], [], []>} : vector<8x32xf32>, vector<32x64xf32>, vector<8x64xf32> -> vector<8x64xf32>
    %494 = vector.broadcast %485 : vector<1x64xf32> to vector<8x64xf32>
    %495 = arith.addf %493, %494 : vector<8x64xf32>
    %496 = vector.extract_strided_slice %495 {offsets = [0, 0], sizes = [8, 32], strides = [1, 1]} : vector<8x64xf32> to vector<8x32xf32>
    %497 = vector.extract_strided_slice %495 {offsets = [0, 32], sizes = [8, 32], strides = [1, 1]} : vector<8x64xf32> to vector<8x32xf32>
    %498 = vector.extract_strided_slice %492 {offsets = [0, 0], sizes = [4, 8], strides = [1, 1]} : vector<4x32xf32> to vector<4x8xf32>
    %499 = vector.extract_strided_slice %496 {offsets = [0, 0], sizes = [8, 8], strides = [1, 1]} : vector<8x32xf32> to vector<8x8xf32>
    %500 = tpu.transpose %499, [1, 0] : vector<8x8xf32> -> vector<8x8xf32>
    %cst_227 = arith.constant dense<0.000000e+00> : vector<4x8xf32>
    %501 = tpu.matmul %498, %500, %cst_227 {dimension_numbers = #tpu.dot_dimension_numbers<[1], [0], [0], [1], [0, 0, 1, 1], [], []>} : vector<4x8xf32>, vector<8x8xf32>, vector<4x8xf32> -> vector<4x8xf32>
    %cst_228 = arith.constant 0.353553385 : f32
    %502 = vector.broadcast %cst_228 : f32 to vector<4x8xf32>
    %503 = arith.mulf %501, %502 : vector<4x8xf32>
    %cst_229 = arith.constant dense<0xFF800000> : vector<4xf32>
    %504 = vector.multi_reduction <maximumf>, %503, %cst_229 [1] : vector<4x8xf32> to vector<4xf32>
    %505 = vector.shape_cast %504 : vector<4xf32> to vector<4x1xf32>
    %506 = vector.broadcast %505 : vector<4x1xf32> to vector<4x8xf32>
    %507 = arith.subf %503, %506 : vector<4x8xf32>
    %508 = math.exp %507 : vector<4x8xf32>
    %cst_230 = arith.constant dense<0.000000e+00> : vector<4xf32>
    %509 = vector.multi_reduction <add>, %508, %cst_230 [1] : vector<4x8xf32> to vector<4xf32>
    %510 = vector.shape_cast %509 : vector<4xf32> to vector<4x1xf32>
    %511 = vector.broadcast %510 : vector<4x1xf32> to vector<4x8xf32>
    %512 = arith.divf %508, %511 : vector<4x8xf32>
    %513 = vector.extract_strided_slice %497 {offsets = [0, 0], sizes = [8, 8], strides = [1, 1]} : vector<8x32xf32> to vector<8x8xf32>
    %cst_231 = arith.constant dense<0.000000e+00> : vector<4x8xf32>
    %514 = tpu.matmul %512, %513, %cst_231 {dimension_numbers = #tpu.dot_dimension_numbers<[1], [0], [0], [1], [0, 0, 1, 1], [], []>} : vector<4x8xf32>, vector<8x8xf32>, vector<4x8xf32> -> vector<4x8xf32>
    %515 = vector.extract_strided_slice %492 {offsets = [0, 8], sizes = [4, 8], strides = [1, 1]} : vector<4x32xf32> to vector<4x8xf32>
    %516 = vector.extract_strided_slice %496 {offsets = [0, 8], sizes = [8, 8], strides = [1, 1]} : vector<8x32xf32> to vector<8x8xf32>
    %517 = tpu.transpose %516, [1, 0] : vector<8x8xf32> -> vector<8x8xf32>
    %cst_232 = arith.constant dense<0.000000e+00> : vector<4x8xf32>
    %518 = tpu.matmul %515, %517, %cst_232 {dimension_numbers = #tpu.dot_dimension_numbers<[1], [0], [0], [1], [0, 0, 1, 1], [], []>} : vector<4x8xf32>, vector<8x8xf32>, vector<4x8xf32> -> vector<4x8xf32>
    %cst_233 = arith.constant 0.353553385 : f32
    %519 = vector.broadcast %cst_233 : f32 to vector<4x8xf32>
    %520 = arith.mulf %518, %519 : vector<4x8xf32>
    %cst_234 = arith.constant dense<0xFF800000> : vector<4xf32>
    %521 = vector.multi_reduction <maximumf>, %520, %cst_234 [1] : vector<4x8xf32> to vector<4xf32>
    %522 = vector.shape_cast %521 : vector<4xf32> to vector<4x1xf32>
    %523 = vector.broadcast %522 : vector<4x1xf32> to vector<4x8xf32>
    %524 = arith.subf %520, %523 : vector<4x8xf32>
    %525 = math.exp %524 : vector<4x8xf32>
    %cst_235 = arith.constant dense<0.000000e+00> : vector<4xf32>
    %526 = vector.multi_reduction <add>, %525, %cst_235 [1] : vector<4x8xf32> to vector<4xf32>
    %527 = vector.shape_cast %526 : vector<4xf32> to vector<4x1xf32>
    %528 = vector.broadcast %527 : vector<4x1xf32> to vector<4x8xf32>
    %529 = arith.divf %525, %528 : vector<4x8xf32>
    %530 = vector.extract_strided_slice %497 {offsets = [0, 8], sizes = [8, 8], strides = [1, 1]} : vector<8x32xf32> to vector<8x8xf32>
    %cst_236 = arith.constant dense<0.000000e+00> : vector<4x8xf32>
    %531 = tpu.matmul %529, %530, %cst_236 {dimension_numbers = #tpu.dot_dimension_numbers<[1], [0], [0], [1], [0, 0, 1, 1], [], []>} : vector<4x8xf32>, vector<8x8xf32>, vector<4x8xf32> -> vector<4x8xf32>
    %532 = vector.extract_strided_slice %492 {offsets = [0, 16], sizes = [4, 8], strides = [1, 1]} : vector<4x32xf32> to vector<4x8xf32>
    %533 = vector.extract_strided_slice %496 {offsets = [0, 16], sizes = [8, 8], strides = [1, 1]} : vector<8x32xf32> to vector<8x8xf32>
    %534 = tpu.transpose %533, [1, 0] : vector<8x8xf32> -> vector<8x8xf32>
    %cst_237 = arith.constant dense<0.000000e+00> : vector<4x8xf32>
    %535 = tpu.matmul %532, %534, %cst_237 {dimension_numbers = #tpu.dot_dimension_numbers<[1], [0], [0], [1], [0, 0, 1, 1], [], []>} : vector<4x8xf32>, vector<8x8xf32>, vector<4x8xf32> -> vector<4x8xf32>
    %cst_238 = arith.constant 0.353553385 : f32
    %536 = vector.broadcast %cst_238 : f32 to vector<4x8xf32>
    %537 = arith.mulf %535, %536 : vector<4x8xf32>
    %cst_239 = arith.constant dense<0xFF800000> : vector<4xf32>
    %538 = vector.multi_reduction <maximumf>, %537, %cst_239 [1] : vector<4x8xf32> to vector<4xf32>
    %539 = vector.shape_cast %538 : vector<4xf32> to vector<4x1xf32>
    %540 = vector.broadcast %539 : vector<4x1xf32> to vector<4x8xf32>
    %541 = arith.subf %537, %540 : vector<4x8xf32>
    %542 = math.exp %541 : vector<4x8xf32>
    %cst_240 = arith.constant dense<0.000000e+00> : vector<4xf32>
    %543 = vector.multi_reduction <add>, %542, %cst_240 [1] : vector<4x8xf32> to vector<4xf32>
    %544 = vector.shape_cast %543 : vector<4xf32> to vector<4x1xf32>
    %545 = vector.broadcast %544 : vector<4x1xf32> to vector<4x8xf32>
    %546 = arith.divf %542, %545 : vector<4x8xf32>
    %547 = vector.extract_strided_slice %497 {offsets = [0, 16], sizes = [8, 8], strides = [1, 1]} : vector<8x32xf32> to vector<8x8xf32>
    %cst_241 = arith.constant dense<0.000000e+00> : vector<4x8xf32>
    %548 = tpu.matmul %546, %547, %cst_241 {dimension_numbers = #tpu.dot_dimension_numbers<[1], [0], [0], [1], [0, 0, 1, 1], [], []>} : vector<4x8xf32>, vector<8x8xf32>, vector<4x8xf32> -> vector<4x8xf32>
    %549 = vector.extract_strided_slice %492 {offsets = [0, 24], sizes = [4, 8], strides = [1, 1]} : vector<4x32xf32> to vector<4x8xf32>
    %550 = vector.extract_strided_slice %496 {offsets = [0, 24], sizes = [8, 8], strides = [1, 1]} : vector<8x32xf32> to vector<8x8xf32>
    %551 = tpu.transpose %550, [1, 0] : vector<8x8xf32> -> vector<8x8xf32>
    %cst_242 = arith.constant dense<0.000000e+00> : vector<4x8xf32>
    %552 = tpu.matmul %549, %551, %cst_242 {dimension_numbers = #tpu.dot_dimension_numbers<[1], [0], [0], [1], [0, 0, 1, 1], [], []>} : vector<4x8xf32>, vector<8x8xf32>, vector<4x8xf32> -> vector<4x8xf32>
    %cst_243 = arith.constant 0.353553385 : f32
    %553 = vector.broadcast %cst_243 : f32 to vector<4x8xf32>
    %554 = arith.mulf %552, %553 : vector<4x8xf32>
    %cst_244 = arith.constant dense<0xFF800000> : vector<4xf32>
    %555 = vector.multi_reduction <maximumf>, %554, %cst_244 [1] : vector<4x8xf32> to vector<4xf32>
    %556 = vector.shape_cast %555 : vector<4xf32> to vector<4x1xf32>
    %557 = vector.broadcast %556 : vector<4x1xf32> to vector<4x8xf32>
    %558 = arith.subf %554, %557 : vector<4x8xf32>
    %559 = math.exp %558 : vector<4x8xf32>
    %cst_245 = arith.constant dense<0.000000e+00> : vector<4xf32>
    %560 = vector.multi_reduction <add>, %559, %cst_245 [1] : vector<4x8xf32> to vector<4xf32>
    %561 = vector.shape_cast %560 : vector<4xf32> to vector<4x1xf32>
    %562 = vector.broadcast %561 : vector<4x1xf32> to vector<4x8xf32>
    %563 = arith.divf %559, %562 : vector<4x8xf32>
    %564 = vector.extract_strided_slice %497 {offsets = [0, 24], sizes = [8, 8], strides = [1, 1]} : vector<8x32xf32> to vector<8x8xf32>
    %cst_246 = arith.constant dense<0.000000e+00> : vector<4x8xf32>
    %565 = tpu.matmul %563, %564, %cst_246 {dimension_numbers = #tpu.dot_dimension_numbers<[1], [0], [0], [1], [0, 0, 1, 1], [], []>} : vector<4x8xf32>, vector<8x8xf32>, vector<4x8xf32> -> vector<4x8xf32>
    %566 = tpu.concatenate %514, %531, %548, %565 in 1 : vector<4x8xf32>, vector<4x8xf32>, vector<4x8xf32>, vector<4x8xf32> -> vector<4x32xf32>
    %cst_247 = arith.constant dense<0.000000e+00> : vector<4x32xf32>
    %567 = tpu.matmul %566, %487, %cst_247 {dimension_numbers = #tpu.dot_dimension_numbers<[1], [0], [0], [1], [0, 0, 1, 1], [], []>} : vector<4x32xf32>, vector<32x32xf32>, vector<4x32xf32> -> vector<4x32xf32>
    %568 = vector.broadcast %489 : vector<1x32xf32> to vector<4x32xf32>
    %569 = arith.addf %567, %568 : vector<4x32xf32>
    %570 = arith.addf %477, %569 : vector<4x32xf32>
    %c0_248 = arith.constant 0 : index
    %c0_249 = arith.constant 0 : index
    %c0_250 = arith.constant 0 : index
    %571 = vector.load %arg37[%c0_248, %c0_249, %c0_250] : memref<2x2x32xf32, #tpu.memory_space<vmem>>, vector<1x2x32xf32>
    %572 = vector.shape_cast %571 : vector<1x2x32xf32> to vector<2x32xf32>
    %573 = vector.extract_strided_slice %572 {offsets = [0, 0], sizes = [1, 32], strides = [1, 1]} : vector<2x32xf32> to vector<1x32xf32>
    %574 = vector.extract_strided_slice %572 {offsets = [1, 0], sizes = [1, 32], strides = [1, 1]} : vector<2x32xf32> to vector<1x32xf32>
    %cst_251 = arith.constant dense<0.000000e+00> : vector<4xf32>
    %575 = vector.multi_reduction <add>, %570, %cst_251 [1] : vector<4x32xf32> to vector<4xf32>
    %576 = vector.shape_cast %575 : vector<4xf32> to vector<4x1xf32>
    %cst_252 = arith.constant 3.200000e+01 : f32
    %577 = vector.broadcast %cst_252 : f32 to vector<4x1xf32>
    %578 = arith.divf %576, %577 : vector<4x1xf32>
    %579 = vector.broadcast %578 : vector<4x1xf32> to vector<4x32xf32>
    %580 = arith.subf %570, %579 : vector<4x32xf32>
    %581 = arith.mulf %580, %580 : vector<4x32xf32>
    %cst_253 = arith.constant dense<0.000000e+00> : vector<4xf32>
    %582 = vector.multi_reduction <add>, %581, %cst_253 [1] : vector<4x32xf32> to vector<4xf32>
    %583 = vector.shape_cast %582 : vector<4xf32> to vector<4x1xf32>
    %cst_254 = arith.constant 3.200000e+01 : f32
    %584 = vector.broadcast %cst_254 : f32 to vector<4x1xf32>
    %585 = arith.divf %583, %584 : vector<4x1xf32>
    %cst_255 = arith.constant 9.99999974E-6 : f32
    %586 = vector.broadcast %cst_255 : f32 to vector<4x1xf32>
    %587 = arith.addf %585, %586 : vector<4x1xf32>
    %588 = math.rsqrt %587 : vector<4x1xf32>
    %589 = vector.broadcast %588 : vector<4x1xf32> to vector<4x32xf32>
    %590 = arith.mulf %580, %589 : vector<4x32xf32>
    %591 = vector.broadcast %573 : vector<1x32xf32> to vector<4x32xf32>
    %592 = arith.mulf %590, %591 : vector<4x32xf32>
    %593 = vector.broadcast %574 : vector<1x32xf32> to vector<4x32xf32>
    %594 = arith.addf %592, %593 : vector<4x32xf32>
    %c0_256 = arith.constant 0 : index
    %c0_257 = arith.constant 0 : index
    %c0_258 = arith.constant 0 : index
    %595 = vector.load %arg32[%c0_256, %c0_257, %c0_258] : memref<2x32x64xf32, #tpu.memory_space<vmem>>, vector<1x32x64xf32>
    %596 = vector.shape_cast %595 : vector<1x32x64xf32> to vector<32x64xf32>
    %c0_259 = arith.constant 0 : index
    %c0_260 = arith.constant 0 : index
    %c0_261 = arith.constant 0 : index
    %597 = vector.load %arg33[%c0_259, %c0_260, %c0_261] : memref<2x1x64xf32, #tpu.memory_space<vmem>>, vector<1x1x64xf32>
    %598 = vector.shape_cast %597 : vector<1x1x64xf32> to vector<1x64xf32>
    %c0_262 = arith.constant 0 : index
    %c0_263 = arith.constant 0 : index
    %c0_264 = arith.constant 0 : index
    %599 = vector.load %arg34[%c0_262, %c0_263, %c0_264] : memref<2x64x32xf32, #tpu.memory_space<vmem>>, vector<1x64x32xf32>
    %600 = vector.shape_cast %599 : vector<1x64x32xf32> to vector<64x32xf32>
    %c0_265 = arith.constant 0 : index
    %c0_266 = arith.constant 0 : index
    %c0_267 = arith.constant 0 : index
    %601 = vector.load %arg35[%c0_265, %c0_266, %c0_267] : memref<2x1x32xf32, #tpu.memory_space<vmem>>, vector<1x1x32xf32>
    %602 = vector.shape_cast %601 : vector<1x1x32xf32> to vector<1x32xf32>
    %cst_268 = arith.constant dense<0.000000e+00> : vector<4x64xf32>
    %603 = tpu.matmul %594, %596, %cst_268 {dimension_numbers = #tpu.dot_dimension_numbers<[1], [0], [0], [1], [0, 0, 1, 1], [], []>} : vector<4x32xf32>, vector<32x64xf32>, vector<4x64xf32> -> vector<4x64xf32>
    %604 = vector.broadcast %598 : vector<1x64xf32> to vector<4x64xf32>
    %605 = arith.addf %603, %604 : vector<4x64xf32>
    %cst_269 = arith.constant 0.000000e+00 : f32
    %606 = vector.broadcast %cst_269 : f32 to vector<4x64xf32>
    %607 = arith.maximumf %605, %606 : vector<4x64xf32>
    %cst_270 = arith.constant dense<0.000000e+00> : vector<4x32xf32>
    %608 = tpu.matmul %607, %600, %cst_270 {dimension_numbers = #tpu.dot_dimension_numbers<[1], [0], [0], [1], [0, 0, 1, 1], [], []>} : vector<4x64xf32>, vector<64x32xf32>, vector<4x32xf32> -> vector<4x32xf32>
    %609 = vector.broadcast %602 : vector<1x32xf32> to vector<4x32xf32>
    %610 = arith.addf %608, %609 : vector<4x32xf32>
    %611 = arith.addf %594, %610 : vector<4x32xf32>
    %c0_271 = arith.constant 0 : index
    %c0_272 = arith.constant 0 : index
    %c0_273 = arith.constant 0 : index
    %612 = vector.load %arg38[%c0_271, %c0_272, %c0_273] : memref<2x2x32xf32, #tpu.memory_space<vmem>>, vector<1x2x32xf32>
    %613 = vector.shape_cast %612 : vector<1x2x32xf32> to vector<2x32xf32>
    %614 = vector.extract_strided_slice %613 {offsets = [0, 0], sizes = [1, 32], strides = [1, 1]} : vector<2x32xf32> to vector<1x32xf32>
    %615 = vector.extract_strided_slice %613 {offsets = [1, 0], sizes = [1, 32], strides = [1, 1]} : vector<2x32xf32> to vector<1x32xf32>
    %cst_274 = arith.constant dense<0.000000e+00> : vector<4xf32>
    %616 = vector.multi_reduction <add>, %611, %cst_274 [1] : vector<4x32xf32> to vector<4xf32>
    %617 = vector.shape_cast %616 : vector<4xf32> to vector<4x1xf32>
    %cst_275 = arith.constant 3.200000e+01 : f32
    %618 = vector.broadcast %cst_275 : f32 to vector<4x1xf32>
    %619 = arith.divf %617, %618 : vector<4x1xf32>
    %620 = vector.broadcast %619 : vector<4x1xf32> to vector<4x32xf32>
    %621 = arith.subf %611, %620 : vector<4x32xf32>
    %622 = arith.mulf %621, %621 : vector<4x32xf32>
    %cst_276 = arith.constant dense<0.000000e+00> : vector<4xf32>
    %623 = vector.multi_reduction <add>, %622, %cst_276 [1] : vector<4x32xf32> to vector<4xf32>
    %624 = vector.shape_cast %623 : vector<4xf32> to vector<4x1xf32>
    %cst_277 = arith.constant 3.200000e+01 : f32
    %625 = vector.broadcast %cst_277 : f32 to vector<4x1xf32>
    %626 = arith.divf %624, %625 : vector<4x1xf32>
    %cst_278 = arith.constant 9.99999974E-6 : f32
    %627 = vector.broadcast %cst_278 : f32 to vector<4x1xf32>
    %628 = arith.addf %626, %627 : vector<4x1xf32>
    %629 = math.rsqrt %628 : vector<4x1xf32>
    %630 = vector.broadcast %629 : vector<4x1xf32> to vector<4x32xf32>
    %631 = arith.mulf %621, %630 : vector<4x32xf32>
    %632 = vector.broadcast %614 : vector<1x32xf32> to vector<4x32xf32>
    %633 = arith.mulf %631, %632 : vector<4x32xf32>
    %634 = vector.broadcast %615 : vector<1x32xf32> to vector<4x32xf32>
    %635 = arith.addf %633, %634 : vector<4x32xf32>
    %c1_279 = arith.constant 1 : index
    %c0_280 = arith.constant 0 : index
    %c0_281 = arith.constant 0 : index
    %636 = vector.load %arg22[%c1_279, %c0_280, %c0_281] : memref<2x32x96xf32, #tpu.memory_space<vmem>>, vector<1x32x96xf32>
    %637 = vector.shape_cast %636 : vector<1x32x96xf32> to vector<32x96xf32>
    %c1_282 = arith.constant 1 : index
    %c0_283 = arith.constant 0 : index
    %c0_284 = arith.constant 0 : index
    %638 = vector.load %arg23[%c1_282, %c0_283, %c0_284] : memref<2x1x96xf32, #tpu.memory_space<vmem>>, vector<1x1x96xf32>
    %639 = vector.shape_cast %638 : vector<1x1x96xf32> to vector<1x96xf32>
    %c1_285 = arith.constant 1 : index
    %c0_286 = arith.constant 0 : index
    %c0_287 = arith.constant 0 : index
    %640 = vector.load %arg24[%c1_285, %c0_286, %c0_287] : memref<2x32x32xf32, #tpu.memory_space<vmem>>, vector<1x32x32xf32>
    %641 = vector.shape_cast %640 : vector<1x32x32xf32> to vector<32x32xf32>
    %c1_288 = arith.constant 1 : index
    %c0_289 = arith.constant 0 : index
    %c0_290 = arith.constant 0 : index
    %642 = vector.load %arg25[%c1_288, %c0_289, %c0_290] : memref<2x1x32xf32, #tpu.memory_space<vmem>>, vector<1x1x32xf32>
    %643 = vector.shape_cast %642 : vector<1x1x32xf32> to vector<1x32xf32>
    %cst_291 = arith.constant dense<0.000000e+00> : vector<4x96xf32>
    %644 = tpu.matmul %635, %637, %cst_291 {dimension_numbers = #tpu.dot_dimension_numbers<[1], [0], [0], [1], [0, 0, 1, 1], [], []>} : vector<4x32xf32>, vector<32x96xf32>, vector<4x96xf32> -> vector<4x96xf32>
    %645 = vector.broadcast %639 : vector<1x96xf32> to vector<4x96xf32>
    %646 = arith.addf %644, %645 : vector<4x96xf32>
    %647 = vector.extract_strided_slice %646 {offsets = [0, 0], sizes = [4, 32], strides = [1, 1]} : vector<4x96xf32> to vector<4x32xf32>
    %648 = vector.extract_strided_slice %646 {offsets = [0, 32], sizes = [4, 32], strides = [1, 1]} : vector<4x96xf32> to vector<4x32xf32>
    %649 = vector.extract_strided_slice %646 {offsets = [0, 64], sizes = [4, 32], strides = [1, 1]} : vector<4x96xf32> to vector<4x32xf32>
    %650 = vector.extract_strided_slice %647 {offsets = [0, 0], sizes = [4, 8], strides = [1, 1]} : vector<4x32xf32> to vector<4x8xf32>
    %651 = vector.extract_strided_slice %648 {offsets = [0, 0], sizes = [4, 8], strides = [1, 1]} : vector<4x32xf32> to vector<4x8xf32>
    %652 = tpu.transpose %651, [1, 0] : vector<4x8xf32> -> vector<8x4xf32>
    %cst_292 = arith.constant dense<0.000000e+00> : vector<4x4xf32>
    %653 = tpu.matmul %650, %652, %cst_292 {dimension_numbers = #tpu.dot_dimension_numbers<[1], [0], [0], [1], [0, 0, 1, 1], [], []>} : vector<4x8xf32>, vector<8x4xf32>, vector<4x4xf32> -> vector<4x4xf32>
    %cst_293 = arith.constant 0.353553385 : f32
    %654 = vector.broadcast %cst_293 : f32 to vector<4x4xf32>
    %655 = arith.mulf %653, %654 : vector<4x4xf32>
    %cst_294 = arith.constant dense<0xFF800000> : vector<4xf32>
    %656 = vector.multi_reduction <maximumf>, %655, %cst_294 [1] : vector<4x4xf32> to vector<4xf32>
    %657 = vector.shape_cast %656 : vector<4xf32> to vector<4x1xf32>
    %658 = vector.broadcast %657 : vector<4x1xf32> to vector<4x4xf32>
    %659 = arith.subf %655, %658 : vector<4x4xf32>
    %660 = math.exp %659 : vector<4x4xf32>
    %cst_295 = arith.constant dense<0.000000e+00> : vector<4xf32>
    %661 = vector.multi_reduction <add>, %660, %cst_295 [1] : vector<4x4xf32> to vector<4xf32>
    %662 = vector.shape_cast %661 : vector<4xf32> to vector<4x1xf32>
    %663 = vector.broadcast %662 : vector<4x1xf32> to vector<4x4xf32>
    %664 = arith.divf %660, %663 : vector<4x4xf32>
    %665 = vector.extract_strided_slice %649 {offsets = [0, 0], sizes = [4, 8], strides = [1, 1]} : vector<4x32xf32> to vector<4x8xf32>
    %cst_296 = arith.constant dense<0.000000e+00> : vector<4x8xf32>
    %666 = tpu.matmul %664, %665, %cst_296 {dimension_numbers = #tpu.dot_dimension_numbers<[1], [0], [0], [1], [0, 0, 1, 1], [], []>} : vector<4x4xf32>, vector<4x8xf32>, vector<4x8xf32> -> vector<4x8xf32>
    %667 = vector.extract_strided_slice %647 {offsets = [0, 8], sizes = [4, 8], strides = [1, 1]} : vector<4x32xf32> to vector<4x8xf32>
    %668 = vector.extract_strided_slice %648 {offsets = [0, 8], sizes = [4, 8], strides = [1, 1]} : vector<4x32xf32> to vector<4x8xf32>
    %669 = tpu.transpose %668, [1, 0] : vector<4x8xf32> -> vector<8x4xf32>
    %cst_297 = arith.constant dense<0.000000e+00> : vector<4x4xf32>
    %670 = tpu.matmul %667, %669, %cst_297 {dimension_numbers = #tpu.dot_dimension_numbers<[1], [0], [0], [1], [0, 0, 1, 1], [], []>} : vector<4x8xf32>, vector<8x4xf32>, vector<4x4xf32> -> vector<4x4xf32>
    %cst_298 = arith.constant 0.353553385 : f32
    %671 = vector.broadcast %cst_298 : f32 to vector<4x4xf32>
    %672 = arith.mulf %670, %671 : vector<4x4xf32>
    %cst_299 = arith.constant dense<0xFF800000> : vector<4xf32>
    %673 = vector.multi_reduction <maximumf>, %672, %cst_299 [1] : vector<4x4xf32> to vector<4xf32>
    %674 = vector.shape_cast %673 : vector<4xf32> to vector<4x1xf32>
    %675 = vector.broadcast %674 : vector<4x1xf32> to vector<4x4xf32>
    %676 = arith.subf %672, %675 : vector<4x4xf32>
    %677 = math.exp %676 : vector<4x4xf32>
    %cst_300 = arith.constant dense<0.000000e+00> : vector<4xf32>
    %678 = vector.multi_reduction <add>, %677, %cst_300 [1] : vector<4x4xf32> to vector<4xf32>
    %679 = vector.shape_cast %678 : vector<4xf32> to vector<4x1xf32>
    %680 = vector.broadcast %679 : vector<4x1xf32> to vector<4x4xf32>
    %681 = arith.divf %677, %680 : vector<4x4xf32>
    %682 = vector.extract_strided_slice %649 {offsets = [0, 8], sizes = [4, 8], strides = [1, 1]} : vector<4x32xf32> to vector<4x8xf32>
    %cst_301 = arith.constant dense<0.000000e+00> : vector<4x8xf32>
    %683 = tpu.matmul %681, %682, %cst_301 {dimension_numbers = #tpu.dot_dimension_numbers<[1], [0], [0], [1], [0, 0, 1, 1], [], []>} : vector<4x4xf32>, vector<4x8xf32>, vector<4x8xf32> -> vector<4x8xf32>
    %684 = vector.extract_strided_slice %647 {offsets = [0, 16], sizes = [4, 8], strides = [1, 1]} : vector<4x32xf32> to vector<4x8xf32>
    %685 = vector.extract_strided_slice %648 {offsets = [0, 16], sizes = [4, 8], strides = [1, 1]} : vector<4x32xf32> to vector<4x8xf32>
    %686 = tpu.transpose %685, [1, 0] : vector<4x8xf32> -> vector<8x4xf32>
    %cst_302 = arith.constant dense<0.000000e+00> : vector<4x4xf32>
    %687 = tpu.matmul %684, %686, %cst_302 {dimension_numbers = #tpu.dot_dimension_numbers<[1], [0], [0], [1], [0, 0, 1, 1], [], []>} : vector<4x8xf32>, vector<8x4xf32>, vector<4x4xf32> -> vector<4x4xf32>
    %cst_303 = arith.constant 0.353553385 : f32
    %688 = vector.broadcast %cst_303 : f32 to vector<4x4xf32>
    %689 = arith.mulf %687, %688 : vector<4x4xf32>
    %cst_304 = arith.constant dense<0xFF800000> : vector<4xf32>
    %690 = vector.multi_reduction <maximumf>, %689, %cst_304 [1] : vector<4x4xf32> to vector<4xf32>
    %691 = vector.shape_cast %690 : vector<4xf32> to vector<4x1xf32>
    %692 = vector.broadcast %691 : vector<4x1xf32> to vector<4x4xf32>
    %693 = arith.subf %689, %692 : vector<4x4xf32>
    %694 = math.exp %693 : vector<4x4xf32>
    %cst_305 = arith.constant dense<0.000000e+00> : vector<4xf32>
    %695 = vector.multi_reduction <add>, %694, %cst_305 [1] : vector<4x4xf32> to vector<4xf32>
    %696 = vector.shape_cast %695 : vector<4xf32> to vector<4x1xf32>
    %697 = vector.broadcast %696 : vector<4x1xf32> to vector<4x4xf32>
    %698 = arith.divf %694, %697 : vector<4x4xf32>
    %699 = vector.extract_strided_slice %649 {offsets = [0, 16], sizes = [4, 8], strides = [1, 1]} : vector<4x32xf32> to vector<4x8xf32>
    %cst_306 = arith.constant dense<0.000000e+00> : vector<4x8xf32>
    %700 = tpu.matmul %698, %699, %cst_306 {dimension_numbers = #tpu.dot_dimension_numbers<[1], [0], [0], [1], [0, 0, 1, 1], [], []>} : vector<4x4xf32>, vector<4x8xf32>, vector<4x8xf32> -> vector<4x8xf32>
    %701 = vector.extract_strided_slice %647 {offsets = [0, 24], sizes = [4, 8], strides = [1, 1]} : vector<4x32xf32> to vector<4x8xf32>
    %702 = vector.extract_strided_slice %648 {offsets = [0, 24], sizes = [4, 8], strides = [1, 1]} : vector<4x32xf32> to vector<4x8xf32>
    %703 = tpu.transpose %702, [1, 0] : vector<4x8xf32> -> vector<8x4xf32>
    %cst_307 = arith.constant dense<0.000000e+00> : vector<4x4xf32>
    %704 = tpu.matmul %701, %703, %cst_307 {dimension_numbers = #tpu.dot_dimension_numbers<[1], [0], [0], [1], [0, 0, 1, 1], [], []>} : vector<4x8xf32>, vector<8x4xf32>, vector<4x4xf32> -> vector<4x4xf32>
    %cst_308 = arith.constant 0.353553385 : f32
    %705 = vector.broadcast %cst_308 : f32 to vector<4x4xf32>
    %706 = arith.mulf %704, %705 : vector<4x4xf32>
    %cst_309 = arith.constant dense<0xFF800000> : vector<4xf32>
    %707 = vector.multi_reduction <maximumf>, %706, %cst_309 [1] : vector<4x4xf32> to vector<4xf32>
    %708 = vector.shape_cast %707 : vector<4xf32> to vector<4x1xf32>
    %709 = vector.broadcast %708 : vector<4x1xf32> to vector<4x4xf32>
    %710 = arith.subf %706, %709 : vector<4x4xf32>
    %711 = math.exp %710 : vector<4x4xf32>
    %cst_310 = arith.constant dense<0.000000e+00> : vector<4xf32>
    %712 = vector.multi_reduction <add>, %711, %cst_310 [1] : vector<4x4xf32> to vector<4xf32>
    %713 = vector.shape_cast %712 : vector<4xf32> to vector<4x1xf32>
    %714 = vector.broadcast %713 : vector<4x1xf32> to vector<4x4xf32>
    %715 = arith.divf %711, %714 : vector<4x4xf32>
    %716 = vector.extract_strided_slice %649 {offsets = [0, 24], sizes = [4, 8], strides = [1, 1]} : vector<4x32xf32> to vector<4x8xf32>
    %cst_311 = arith.constant dense<0.000000e+00> : vector<4x8xf32>
    %717 = tpu.matmul %715, %716, %cst_311 {dimension_numbers = #tpu.dot_dimension_numbers<[1], [0], [0], [1], [0, 0, 1, 1], [], []>} : vector<4x4xf32>, vector<4x8xf32>, vector<4x8xf32> -> vector<4x8xf32>
    %718 = tpu.concatenate %666, %683, %700, %717 in 1 : vector<4x8xf32>, vector<4x8xf32>, vector<4x8xf32>, vector<4x8xf32> -> vector<4x32xf32>
    %cst_312 = arith.constant dense<0.000000e+00> : vector<4x32xf32>
    %719 = tpu.matmul %718, %641, %cst_312 {dimension_numbers = #tpu.dot_dimension_numbers<[1], [0], [0], [1], [0, 0, 1, 1], [], []>} : vector<4x32xf32>, vector<32x32xf32>, vector<4x32xf32> -> vector<4x32xf32>
    %720 = vector.broadcast %643 : vector<1x32xf32> to vector<4x32xf32>
    %721 = arith.addf %719, %720 : vector<4x32xf32>
    %722 = arith.addf %635, %721 : vector<4x32xf32>
    %c1_313 = arith.constant 1 : index
    %c0_314 = arith.constant 0 : index
    %c0_315 = arith.constant 0 : index
    %723 = vector.load %arg36[%c1_313, %c0_314, %c0_315] : memref<2x2x32xf32, #tpu.memory_space<vmem>>, vector<1x2x32xf32>
    %724 = vector.shape_cast %723 : vector<1x2x32xf32> to vector<2x32xf32>
    %725 = vector.extract_strided_slice %724 {offsets = [0, 0], sizes = [1, 32], strides = [1, 1]} : vector<2x32xf32> to vector<1x32xf32>
    %726 = vector.extract_strided_slice %724 {offsets = [1, 0], sizes = [1, 32], strides = [1, 1]} : vector<2x32xf32> to vector<1x32xf32>
    %cst_316 = arith.constant dense<0.000000e+00> : vector<4xf32>
    %727 = vector.multi_reduction <add>, %722, %cst_316 [1] : vector<4x32xf32> to vector<4xf32>
    %728 = vector.shape_cast %727 : vector<4xf32> to vector<4x1xf32>
    %cst_317 = arith.constant 3.200000e+01 : f32
    %729 = vector.broadcast %cst_317 : f32 to vector<4x1xf32>
    %730 = arith.divf %728, %729 : vector<4x1xf32>
    %731 = vector.broadcast %730 : vector<4x1xf32> to vector<4x32xf32>
    %732 = arith.subf %722, %731 : vector<4x32xf32>
    %733 = arith.mulf %732, %732 : vector<4x32xf32>
    %cst_318 = arith.constant dense<0.000000e+00> : vector<4xf32>
    %734 = vector.multi_reduction <add>, %733, %cst_318 [1] : vector<4x32xf32> to vector<4xf32>
    %735 = vector.shape_cast %734 : vector<4xf32> to vector<4x1xf32>
    %cst_319 = arith.constant 3.200000e+01 : f32
    %736 = vector.broadcast %cst_319 : f32 to vector<4x1xf32>
    %737 = arith.divf %735, %736 : vector<4x1xf32>
    %cst_320 = arith.constant 9.99999974E-6 : f32
    %738 = vector.broadcast %cst_320 : f32 to vector<4x1xf32>
    %739 = arith.addf %737, %738 : vector<4x1xf32>
    %740 = math.rsqrt %739 : vector<4x1xf32>
    %741 = vector.broadcast %740 : vector<4x1xf32> to vector<4x32xf32>
    %742 = arith.mulf %732, %741 : vector<4x32xf32>
    %743 = vector.broadcast %725 : vector<1x32xf32> to vector<4x32xf32>
    %744 = arith.mulf %742, %743 : vector<4x32xf32>
    %745 = vector.broadcast %726 : vector<1x32xf32> to vector<4x32xf32>
    %746 = arith.addf %744, %745 : vector<4x32xf32>
    %c1_321 = arith.constant 1 : index
    %c0_322 = arith.constant 0 : index
    %c0_323 = arith.constant 0 : index
    %747 = vector.load %arg26[%c1_321, %c0_322, %c0_323] : memref<2x32x32xf32, #tpu.memory_space<vmem>>, vector<1x32x32xf32>
    %748 = vector.shape_cast %747 : vector<1x32x32xf32> to vector<32x32xf32>
    %c1_324 = arith.constant 1 : index
    %c0_325 = arith.constant 0 : index
    %c0_326 = arith.constant 0 : index
    %749 = vector.load %arg27[%c1_324, %c0_325, %c0_326] : memref<2x1x32xf32, #tpu.memory_space<vmem>>, vector<1x1x32xf32>
    %750 = vector.shape_cast %749 : vector<1x1x32xf32> to vector<1x32xf32>
    %c1_327 = arith.constant 1 : index
    %c0_328 = arith.constant 0 : index
    %c0_329 = arith.constant 0 : index
    %751 = vector.load %arg28[%c1_327, %c0_328, %c0_329] : memref<2x32x64xf32, #tpu.memory_space<vmem>>, vector<1x32x64xf32>
    %752 = vector.shape_cast %751 : vector<1x32x64xf32> to vector<32x64xf32>
    %c1_330 = arith.constant 1 : index
    %c0_331 = arith.constant 0 : index
    %c0_332 = arith.constant 0 : index
    %753 = vector.load %arg29[%c1_330, %c0_331, %c0_332] : memref<2x1x64xf32, #tpu.memory_space<vmem>>, vector<1x1x64xf32>
    %754 = vector.shape_cast %753 : vector<1x1x64xf32> to vector<1x64xf32>
    %c1_333 = arith.constant 1 : index
    %c0_334 = arith.constant 0 : index
    %c0_335 = arith.constant 0 : index
    %755 = vector.load %arg30[%c1_333, %c0_334, %c0_335] : memref<2x32x32xf32, #tpu.memory_space<vmem>>, vector<1x32x32xf32>
    %756 = vector.shape_cast %755 : vector<1x32x32xf32> to vector<32x32xf32>
    %c1_336 = arith.constant 1 : index
    %c0_337 = arith.constant 0 : index
    %c0_338 = arith.constant 0 : index
    %757 = vector.load %arg31[%c1_336, %c0_337, %c0_338] : memref<2x1x32xf32, #tpu.memory_space<vmem>>, vector<1x1x32xf32>
    %758 = vector.shape_cast %757 : vector<1x1x32xf32> to vector<1x32xf32>
    %cst_339 = arith.constant dense<0.000000e+00> : vector<4x32xf32>
    %759 = tpu.matmul %746, %748, %cst_339 {dimension_numbers = #tpu.dot_dimension_numbers<[1], [0], [0], [1], [0, 0, 1, 1], [], []>} : vector<4x32xf32>, vector<32x32xf32>, vector<4x32xf32> -> vector<4x32xf32>
    %760 = vector.broadcast %750 : vector<1x32xf32> to vector<4x32xf32>
    %761 = arith.addf %759, %760 : vector<4x32xf32>
    %cst_340 = arith.constant dense<0.000000e+00> : vector<8x64xf32>
    %762 = tpu.matmul %355, %752, %cst_340 {dimension_numbers = #tpu.dot_dimension_numbers<[1], [0], [0], [1], [0, 0, 1, 1], [], []>} : vector<8x32xf32>, vector<32x64xf32>, vector<8x64xf32> -> vector<8x64xf32>
    %763 = vector.broadcast %754 : vector<1x64xf32> to vector<8x64xf32>
    %764 = arith.addf %762, %763 : vector<8x64xf32>
    %765 = vector.extract_strided_slice %764 {offsets = [0, 0], sizes = [8, 32], strides = [1, 1]} : vector<8x64xf32> to vector<8x32xf32>
    %766 = vector.extract_strided_slice %764 {offsets = [0, 32], sizes = [8, 32], strides = [1, 1]} : vector<8x64xf32> to vector<8x32xf32>
    %767 = vector.extract_strided_slice %761 {offsets = [0, 0], sizes = [4, 8], strides = [1, 1]} : vector<4x32xf32> to vector<4x8xf32>
    %768 = vector.extract_strided_slice %765 {offsets = [0, 0], sizes = [8, 8], strides = [1, 1]} : vector<8x32xf32> to vector<8x8xf32>
    %769 = tpu.transpose %768, [1, 0] : vector<8x8xf32> -> vector<8x8xf32>
    %cst_341 = arith.constant dense<0.000000e+00> : vector<4x8xf32>
    %770 = tpu.matmul %767, %769, %cst_341 {dimension_numbers = #tpu.dot_dimension_numbers<[1], [0], [0], [1], [0, 0, 1, 1], [], []>} : vector<4x8xf32>, vector<8x8xf32>, vector<4x8xf32> -> vector<4x8xf32>
    %cst_342 = arith.constant 0.353553385 : f32
    %771 = vector.broadcast %cst_342 : f32 to vector<4x8xf32>
    %772 = arith.mulf %770, %771 : vector<4x8xf32>
    %cst_343 = arith.constant dense<0xFF800000> : vector<4xf32>
    %773 = vector.multi_reduction <maximumf>, %772, %cst_343 [1] : vector<4x8xf32> to vector<4xf32>
    %774 = vector.shape_cast %773 : vector<4xf32> to vector<4x1xf32>
    %775 = vector.broadcast %774 : vector<4x1xf32> to vector<4x8xf32>
    %776 = arith.subf %772, %775 : vector<4x8xf32>
    %777 = math.exp %776 : vector<4x8xf32>
    %cst_344 = arith.constant dense<0.000000e+00> : vector<4xf32>
    %778 = vector.multi_reduction <add>, %777, %cst_344 [1] : vector<4x8xf32> to vector<4xf32>
    %779 = vector.shape_cast %778 : vector<4xf32> to vector<4x1xf32>
    %780 = vector.broadcast %779 : vector<4x1xf32> to vector<4x8xf32>
    %781 = arith.divf %777, %780 : vector<4x8xf32>
    %782 = vector.extract_strided_slice %766 {offsets = [0, 0], sizes = [8, 8], strides = [1, 1]} : vector<8x32xf32> to vector<8x8xf32>
    %cst_345 = arith.constant dense<0.000000e+00> : vector<4x8xf32>
    %783 = tpu.matmul %781, %782, %cst_345 {dimension_numbers = #tpu.dot_dimension_numbers<[1], [0], [0], [1], [0, 0, 1, 1], [], []>} : vector<4x8xf32>, vector<8x8xf32>, vector<4x8xf32> -> vector<4x8xf32>
    %784 = vector.extract_strided_slice %761 {offsets = [0, 8], sizes = [4, 8], strides = [1, 1]} : vector<4x32xf32> to vector<4x8xf32>
    %785 = vector.extract_strided_slice %765 {offsets = [0, 8], sizes = [8, 8], strides = [1, 1]} : vector<8x32xf32> to vector<8x8xf32>
    %786 = tpu.transpose %785, [1, 0] : vector<8x8xf32> -> vector<8x8xf32>
    %cst_346 = arith.constant dense<0.000000e+00> : vector<4x8xf32>
    %787 = tpu.matmul %784, %786, %cst_346 {dimension_numbers = #tpu.dot_dimension_numbers<[1], [0], [0], [1], [0, 0, 1, 1], [], []>} : vector<4x8xf32>, vector<8x8xf32>, vector<4x8xf32> -> vector<4x8xf32>
    %cst_347 = arith.constant 0.353553385 : f32
    %788 = vector.broadcast %cst_347 : f32 to vector<4x8xf32>
    %789 = arith.mulf %787, %788 : vector<4x8xf32>
    %cst_348 = arith.constant dense<0xFF800000> : vector<4xf32>
    %790 = vector.multi_reduction <maximumf>, %789, %cst_348 [1] : vector<4x8xf32> to vector<4xf32>
    %791 = vector.shape_cast %790 : vector<4xf32> to vector<4x1xf32>
    %792 = vector.broadcast %791 : vector<4x1xf32> to vector<4x8xf32>
    %793 = arith.subf %789, %792 : vector<4x8xf32>
    %794 = math.exp %793 : vector<4x8xf32>
    %cst_349 = arith.constant dense<0.000000e+00> : vector<4xf32>
    %795 = vector.multi_reduction <add>, %794, %cst_349 [1] : vector<4x8xf32> to vector<4xf32>
    %796 = vector.shape_cast %795 : vector<4xf32> to vector<4x1xf32>
    %797 = vector.broadcast %796 : vector<4x1xf32> to vector<4x8xf32>
    %798 = arith.divf %794, %797 : vector<4x8xf32>
    %799 = vector.extract_strided_slice %766 {offsets = [0, 8], sizes = [8, 8], strides = [1, 1]} : vector<8x32xf32> to vector<8x8xf32>
    %cst_350 = arith.constant dense<0.000000e+00> : vector<4x8xf32>
    %800 = tpu.matmul %798, %799, %cst_350 {dimension_numbers = #tpu.dot_dimension_numbers<[1], [0], [0], [1], [0, 0, 1, 1], [], []>} : vector<4x8xf32>, vector<8x8xf32>, vector<4x8xf32> -> vector<4x8xf32>
    %801 = vector.extract_strided_slice %761 {offsets = [0, 16], sizes = [4, 8], strides = [1, 1]} : vector<4x32xf32> to vector<4x8xf32>
    %802 = vector.extract_strided_slice %765 {offsets = [0, 16], sizes = [8, 8], strides = [1, 1]} : vector<8x32xf32> to vector<8x8xf32>
    %803 = tpu.transpose %802, [1, 0] : vector<8x8xf32> -> vector<8x8xf32>
    %cst_351 = arith.constant dense<0.000000e+00> : vector<4x8xf32>
    %804 = tpu.matmul %801, %803, %cst_351 {dimension_numbers = #tpu.dot_dimension_numbers<[1], [0], [0], [1], [0, 0, 1, 1], [], []>} : vector<4x8xf32>, vector<8x8xf32>, vector<4x8xf32> -> vector<4x8xf32>
    %cst_352 = arith.constant 0.353553385 : f32
    %805 = vector.broadcast %cst_352 : f32 to vector<4x8xf32>
    %806 = arith.mulf %804, %805 : vector<4x8xf32>
    %cst_353 = arith.constant dense<0xFF800000> : vector<4xf32>
    %807 = vector.multi_reduction <maximumf>, %806, %cst_353 [1] : vector<4x8xf32> to vector<4xf32>
    %808 = vector.shape_cast %807 : vector<4xf32> to vector<4x1xf32>
    %809 = vector.broadcast %808 : vector<4x1xf32> to vector<4x8xf32>
    %810 = arith.subf %806, %809 : vector<4x8xf32>
    %811 = math.exp %810 : vector<4x8xf32>
    %cst_354 = arith.constant dense<0.000000e+00> : vector<4xf32>
    %812 = vector.multi_reduction <add>, %811, %cst_354 [1] : vector<4x8xf32> to vector<4xf32>
    %813 = vector.shape_cast %812 : vector<4xf32> to vector<4x1xf32>
    %814 = vector.broadcast %813 : vector<4x1xf32> to vector<4x8xf32>
    %815 = arith.divf %811, %814 : vector<4x8xf32>
    %816 = vector.extract_strided_slice %766 {offsets = [0, 16], sizes = [8, 8], strides = [1, 1]} : vector<8x32xf32> to vector<8x8xf32>
    %cst_355 = arith.constant dense<0.000000e+00> : vector<4x8xf32>
    %817 = tpu.matmul %815, %816, %cst_355 {dimension_numbers = #tpu.dot_dimension_numbers<[1], [0], [0], [1], [0, 0, 1, 1], [], []>} : vector<4x8xf32>, vector<8x8xf32>, vector<4x8xf32> -> vector<4x8xf32>
    %818 = vector.extract_strided_slice %761 {offsets = [0, 24], sizes = [4, 8], strides = [1, 1]} : vector<4x32xf32> to vector<4x8xf32>
    %819 = vector.extract_strided_slice %765 {offsets = [0, 24], sizes = [8, 8], strides = [1, 1]} : vector<8x32xf32> to vector<8x8xf32>
    %820 = tpu.transpose %819, [1, 0] : vector<8x8xf32> -> vector<8x8xf32>
    %cst_356 = arith.constant dense<0.000000e+00> : vector<4x8xf32>
    %821 = tpu.matmul %818, %820, %cst_356 {dimension_numbers = #tpu.dot_dimension_numbers<[1], [0], [0], [1], [0, 0, 1, 1], [], []>} : vector<4x8xf32>, vector<8x8xf32>, vector<4x8xf32> -> vector<4x8xf32>
    %cst_357 = arith.constant 0.353553385 : f32
    %822 = vector.broadcast %cst_357 : f32 to vector<4x8xf32>
    %823 = arith.mulf %821, %822 : vector<4x8xf32>
    %cst_358 = arith.constant dense<0xFF800000> : vector<4xf32>
    %824 = vector.multi_reduction <maximumf>, %823, %cst_358 [1] : vector<4x8xf32> to vector<4xf32>
    %825 = vector.shape_cast %824 : vector<4xf32> to vector<4x1xf32>
    %826 = vector.broadcast %825 : vector<4x1xf32> to vector<4x8xf32>
    %827 = arith.subf %823, %826 : vector<4x8xf32>
    %828 = math.exp %827 : vector<4x8xf32>
    %cst_359 = arith.constant dense<0.000000e+00> : vector<4xf32>
    %829 = vector.multi_reduction <add>, %828, %cst_359 [1] : vector<4x8xf32> to vector<4xf32>
    %830 = vector.shape_cast %829 : vector<4xf32> to vector<4x1xf32>
    %831 = vector.broadcast %830 : vector<4x1xf32> to vector<4x8xf32>
    %832 = arith.divf %828, %831 : vector<4x8xf32>
    %833 = vector.extract_strided_slice %766 {offsets = [0, 24], sizes = [8, 8], strides = [1, 1]} : vector<8x32xf32> to vector<8x8xf32>
    %cst_360 = arith.constant dense<0.000000e+00> : vector<4x8xf32>
    %834 = tpu.matmul %832, %833, %cst_360 {dimension_numbers = #tpu.dot_dimension_numbers<[1], [0], [0], [1], [0, 0, 1, 1], [], []>} : vector<4x8xf32>, vector<8x8xf32>, vector<4x8xf32> -> vector<4x8xf32>
    %835 = tpu.concatenate %783, %800, %817, %834 in 1 : vector<4x8xf32>, vector<4x8xf32>, vector<4x8xf32>, vector<4x8xf32> -> vector<4x32xf32>
    %cst_361 = arith.constant dense<0.000000e+00> : vector<4x32xf32>
    %836 = tpu.matmul %835, %756, %cst_361 {dimension_numbers = #tpu.dot_dimension_numbers<[1], [0], [0], [1], [0, 0, 1, 1], [], []>} : vector<4x32xf32>, vector<32x32xf32>, vector<4x32xf32> -> vector<4x32xf32>
    %837 = vector.broadcast %758 : vector<1x32xf32> to vector<4x32xf32>
    %838 = arith.addf %836, %837 : vector<4x32xf32>
    %839 = arith.addf %746, %838 : vector<4x32xf32>
    %c1_362 = arith.constant 1 : index
    %c0_363 = arith.constant 0 : index
    %c0_364 = arith.constant 0 : index
    %840 = vector.load %arg37[%c1_362, %c0_363, %c0_364] : memref<2x2x32xf32, #tpu.memory_space<vmem>>, vector<1x2x32xf32>
    %841 = vector.shape_cast %840 : vector<1x2x32xf32> to vector<2x32xf32>
    %842 = vector.extract_strided_slice %841 {offsets = [0, 0], sizes = [1, 32], strides = [1, 1]} : vector<2x32xf32> to vector<1x32xf32>
    %843 = vector.extract_strided_slice %841 {offsets = [1, 0], sizes = [1, 32], strides = [1, 1]} : vector<2x32xf32> to vector<1x32xf32>
    %cst_365 = arith.constant dense<0.000000e+00> : vector<4xf32>
    %844 = vector.multi_reduction <add>, %839, %cst_365 [1] : vector<4x32xf32> to vector<4xf32>
    %845 = vector.shape_cast %844 : vector<4xf32> to vector<4x1xf32>
    %cst_366 = arith.constant 3.200000e+01 : f32
    %846 = vector.broadcast %cst_366 : f32 to vector<4x1xf32>
    %847 = arith.divf %845, %846 : vector<4x1xf32>
    %848 = vector.broadcast %847 : vector<4x1xf32> to vector<4x32xf32>
    %849 = arith.subf %839, %848 : vector<4x32xf32>
    %850 = arith.mulf %849, %849 : vector<4x32xf32>
    %cst_367 = arith.constant dense<0.000000e+00> : vector<4xf32>
    %851 = vector.multi_reduction <add>, %850, %cst_367 [1] : vector<4x32xf32> to vector<4xf32>
    %852 = vector.shape_cast %851 : vector<4xf32> to vector<4x1xf32>
    %cst_368 = arith.constant 3.200000e+01 : f32
    %853 = vector.broadcast %cst_368 : f32 to vector<4x1xf32>
    %854 = arith.divf %852, %853 : vector<4x1xf32>
    %cst_369 = arith.constant 9.99999974E-6 : f32
    %855 = vector.broadcast %cst_369 : f32 to vector<4x1xf32>
    %856 = arith.addf %854, %855 : vector<4x1xf32>
    %857 = math.rsqrt %856 : vector<4x1xf32>
    %858 = vector.broadcast %857 : vector<4x1xf32> to vector<4x32xf32>
    %859 = arith.mulf %849, %858 : vector<4x32xf32>
    %860 = vector.broadcast %842 : vector<1x32xf32> to vector<4x32xf32>
    %861 = arith.mulf %859, %860 : vector<4x32xf32>
    %862 = vector.broadcast %843 : vector<1x32xf32> to vector<4x32xf32>
    %863 = arith.addf %861, %862 : vector<4x32xf32>
    %c1_370 = arith.constant 1 : index
    %c0_371 = arith.constant 0 : index
    %c0_372 = arith.constant 0 : index
    %864 = vector.load %arg32[%c1_370, %c0_371, %c0_372] : memref<2x32x64xf32, #tpu.memory_space<vmem>>, vector<1x32x64xf32>
    %865 = vector.shape_cast %864 : vector<1x32x64xf32> to vector<32x64xf32>
    %c1_373 = arith.constant 1 : index
    %c0_374 = arith.constant 0 : index
    %c0_375 = arith.constant 0 : index
    %866 = vector.load %arg33[%c1_373, %c0_374, %c0_375] : memref<2x1x64xf32, #tpu.memory_space<vmem>>, vector<1x1x64xf32>
    %867 = vector.shape_cast %866 : vector<1x1x64xf32> to vector<1x64xf32>
    %c1_376 = arith.constant 1 : index
    %c0_377 = arith.constant 0 : index
    %c0_378 = arith.constant 0 : index
    %868 = vector.load %arg34[%c1_376, %c0_377, %c0_378] : memref<2x64x32xf32, #tpu.memory_space<vmem>>, vector<1x64x32xf32>
    %869 = vector.shape_cast %868 : vector<1x64x32xf32> to vector<64x32xf32>
    %c1_379 = arith.constant 1 : index
    %c0_380 = arith.constant 0 : index
    %c0_381 = arith.constant 0 : index
    %870 = vector.load %arg35[%c1_379, %c0_380, %c0_381] : memref<2x1x32xf32, #tpu.memory_space<vmem>>, vector<1x1x32xf32>
    %871 = vector.shape_cast %870 : vector<1x1x32xf32> to vector<1x32xf32>
    %cst_382 = arith.constant dense<0.000000e+00> : vector<4x64xf32>
    %872 = tpu.matmul %863, %865, %cst_382 {dimension_numbers = #tpu.dot_dimension_numbers<[1], [0], [0], [1], [0, 0, 1, 1], [], []>} : vector<4x32xf32>, vector<32x64xf32>, vector<4x64xf32> -> vector<4x64xf32>
    %873 = vector.broadcast %867 : vector<1x64xf32> to vector<4x64xf32>
    %874 = arith.addf %872, %873 : vector<4x64xf32>
    %cst_383 = arith.constant 0.000000e+00 : f32
    %875 = vector.broadcast %cst_383 : f32 to vector<4x64xf32>
    %876 = arith.maximumf %874, %875 : vector<4x64xf32>
    %cst_384 = arith.constant dense<0.000000e+00> : vector<4x32xf32>
    %877 = tpu.matmul %876, %869, %cst_384 {dimension_numbers = #tpu.dot_dimension_numbers<[1], [0], [0], [1], [0, 0, 1, 1], [], []>} : vector<4x64xf32>, vector<64x32xf32>, vector<4x32xf32> -> vector<4x32xf32>
    %878 = vector.broadcast %871 : vector<1x32xf32> to vector<4x32xf32>
    %879 = arith.addf %877, %878 : vector<4x32xf32>
    %880 = arith.addf %863, %879 : vector<4x32xf32>
    %c1_385 = arith.constant 1 : index
    %c0_386 = arith.constant 0 : index
    %c0_387 = arith.constant 0 : index
    %881 = vector.load %arg38[%c1_385, %c0_386, %c0_387] : memref<2x2x32xf32, #tpu.memory_space<vmem>>, vector<1x2x32xf32>
    %882 = vector.shape_cast %881 : vector<1x2x32xf32> to vector<2x32xf32>
    %883 = vector.extract_strided_slice %882 {offsets = [0, 0], sizes = [1, 32], strides = [1, 1]} : vector<2x32xf32> to vector<1x32xf32>
    %884 = vector.extract_strided_slice %882 {offsets = [1, 0], sizes = [1, 32], strides = [1, 1]} : vector<2x32xf32> to vector<1x32xf32>
    %cst_388 = arith.constant dense<0.000000e+00> : vector<4xf32>
    %885 = vector.multi_reduction <add>, %880, %cst_388 [1] : vector<4x32xf32> to vector<4xf32>
    %886 = vector.shape_cast %885 : vector<4xf32> to vector<4x1xf32>
    %cst_389 = arith.constant 3.200000e+01 : f32
    %887 = vector.broadcast %cst_389 : f32 to vector<4x1xf32>
    %888 = arith.divf %886, %887 : vector<4x1xf32>
    %889 = vector.broadcast %888 : vector<4x1xf32> to vector<4x32xf32>
    %890 = arith.subf %880, %889 : vector<4x32xf32>
    %891 = arith.mulf %890, %890 : vector<4x32xf32>
    %cst_390 = arith.constant dense<0.000000e+00> : vector<4xf32>
    %892 = vector.multi_reduction <add>, %891, %cst_390 [1] : vector<4x32xf32> to vector<4xf32>
    %893 = vector.shape_cast %892 : vector<4xf32> to vector<4x1xf32>
    %cst_391 = arith.constant 3.200000e+01 : f32
    %894 = vector.broadcast %cst_391 : f32 to vector<4x1xf32>
    %895 = arith.divf %893, %894 : vector<4x1xf32>
    %cst_392 = arith.constant 9.99999974E-6 : f32
    %896 = vector.broadcast %cst_392 : f32 to vector<4x1xf32>
    %897 = arith.addf %895, %896 : vector<4x1xf32>
    %898 = math.rsqrt %897 : vector<4x1xf32>
    %899 = vector.broadcast %898 : vector<4x1xf32> to vector<4x32xf32>
    %900 = arith.mulf %890, %899 : vector<4x32xf32>
    %901 = vector.broadcast %883 : vector<1x32xf32> to vector<4x32xf32>
    %902 = arith.mulf %900, %901 : vector<4x32xf32>
    %903 = vector.broadcast %884 : vector<1x32xf32> to vector<4x32xf32>
    %904 = arith.addf %902, %903 : vector<4x32xf32>
    %c0_393 = arith.constant 0 : index
    %c0_394 = arith.constant 0 : index
    %905 = vector.load %arg39[%c0_393, %c0_394] : memref<2x32xf32, #tpu.memory_space<vmem>>, vector<2x32xf32>
    %906 = vector.extract_strided_slice %905 {offsets = [0, 0], sizes = [1, 32], strides = [1, 1]} : vector<2x32xf32> to vector<1x32xf32>
    %907 = vector.extract_strided_slice %905 {offsets = [1, 0], sizes = [1, 32], strides = [1, 1]} : vector<2x32xf32> to vector<1x32xf32>
    %cst_395 = arith.constant dense<0.000000e+00> : vector<4xf32>
    %908 = vector.multi_reduction <add>, %904, %cst_395 [1] : vector<4x32xf32> to vector<4xf32>
    %909 = vector.shape_cast %908 : vector<4xf32> to vector<4x1xf32>
    %cst_396 = arith.constant 3.200000e+01 : f32
    %910 = vector.broadcast %cst_396 : f32 to vector<4x1xf32>
    %911 = arith.divf %909, %910 : vector<4x1xf32>
    %912 = vector.broadcast %911 : vector<4x1xf32> to vector<4x32xf32>
    %913 = arith.subf %904, %912 : vector<4x32xf32>
    %914 = arith.mulf %913, %913 : vector<4x32xf32>
    %cst_397 = arith.constant dense<0.000000e+00> : vector<4xf32>
    %915 = vector.multi_reduction <add>, %914, %cst_397 [1] : vector<4x32xf32> to vector<4xf32>
    %916 = vector.shape_cast %915 : vector<4xf32> to vector<4x1xf32>
    %cst_398 = arith.constant 3.200000e+01 : f32
    %917 = vector.broadcast %cst_398 : f32 to vector<4x1xf32>
    %918 = arith.divf %916, %917 : vector<4x1xf32>
    %cst_399 = arith.constant 9.99999974E-6 : f32
    %919 = vector.broadcast %cst_399 : f32 to vector<4x1xf32>
    %920 = arith.addf %918, %919 : vector<4x1xf32>
    %921 = math.rsqrt %920 : vector<4x1xf32>
    %922 = vector.broadcast %921 : vector<4x1xf32> to vector<4x32xf32>
    %923 = arith.mulf %913, %922 : vector<4x32xf32>
    %924 = vector.broadcast %906 : vector<1x32xf32> to vector<4x32xf32>
    %925 = arith.mulf %923, %924 : vector<4x32xf32>
    %926 = vector.broadcast %907 : vector<1x32xf32> to vector<4x32xf32>
    %927 = arith.addf %925, %926 : vector<4x32xf32>
    %c0_400 = arith.constant 0 : index
    %c0_401 = arith.constant 0 : index
    %928 = vector.load %arg41[%c0_400, %c0_401] : memref<1x3xf32, #tpu.memory_space<vmem>>, vector<1x3xf32>
    %929 = vector.extract_strided_slice %927 {offsets = [0, 0], sizes = [1, 32], strides = [1, 1]} : vector<4x32xf32> to vector<1x32xf32>
    %c0_402 = arith.constant 0 : index
    %c0_403 = arith.constant 0 : index
    %930 = vector.load %arg40[%c0_402, %c0_403] : memref<128x3xf32, #tpu.memory_space<vmem>>, vector<32x3xf32>
    %cst_404 = arith.constant dense<0.000000e+00> : vector<1x3xf32>
    %931 = tpu.matmul %929, %930, %cst_404 {dimension_numbers = #tpu.dot_dimension_numbers<[1], [0], [0], [1], [0, 0, 1, 1], [], []>} : vector<1x32xf32>, vector<32x3xf32>, vector<1x3xf32> -> vector<1x3xf32>
    %932 = arith.addf %928, %931 : vector<1x3xf32>
    %933 = vector.extract_strided_slice %927 {offsets = [1, 0], sizes = [1, 32], strides = [1, 1]} : vector<4x32xf32> to vector<1x32xf32>
    %c32 = arith.constant 32 : index
    %c0_405 = arith.constant 0 : index
    %934 = vector.load %arg40[%c32, %c0_405] : memref<128x3xf32, #tpu.memory_space<vmem>>, vector<32x3xf32>
    %cst_406 = arith.constant dense<0.000000e+00> : vector<1x3xf32>
    %935 = tpu.matmul %933, %934, %cst_406 {dimension_numbers = #tpu.dot_dimension_numbers<[1], [0], [0], [1], [0, 0, 1, 1], [], []>} : vector<1x32xf32>, vector<32x3xf32>, vector<1x3xf32> -> vector<1x3xf32>
    %936 = arith.addf %932, %935 : vector<1x3xf32>
    %937 = vector.extract_strided_slice %927 {offsets = [2, 0], sizes = [1, 32], strides = [1, 1]} : vector<4x32xf32> to vector<1x32xf32>
    %c64 = arith.constant 64 : index
    %c0_407 = arith.constant 0 : index
    %938 = vector.load %arg40[%c64, %c0_407] : memref<128x3xf32, #tpu.memory_space<vmem>>, vector<32x3xf32>
    %cst_408 = arith.constant dense<0.000000e+00> : vector<1x3xf32>
    %939 = tpu.matmul %937, %938, %cst_408 {dimension_numbers = #tpu.dot_dimension_numbers<[1], [0], [0], [1], [0, 0, 1, 1], [], []>} : vector<1x32xf32>, vector<32x3xf32>, vector<1x3xf32> -> vector<1x3xf32>
    %940 = arith.addf %936, %939 : vector<1x3xf32>
    %941 = vector.extract_strided_slice %927 {offsets = [3, 0], sizes = [1, 32], strides = [1, 1]} : vector<4x32xf32> to vector<1x32xf32>
    %c96 = arith.constant 96 : index
    %c0_409 = arith.constant 0 : index
    %942 = vector.load %arg40[%c96, %c0_409] : memref<128x3xf32, #tpu.memory_space<vmem>>, vector<32x3xf32>
    %cst_410 = arith.constant dense<0.000000e+00> : vector<1x3xf32>
    %943 = tpu.matmul %941, %942, %cst_410 {dimension_numbers = #tpu.dot_dimension_numbers<[1], [0], [0], [1], [0, 0, 1, 1], [], []>} : vector<1x32xf32>, vector<32x3xf32>, vector<1x3xf32> -> vector<1x3xf32>
    %944 = arith.addf %940, %943 : vector<1x3xf32>
    %c0_411 = arith.constant 0 : index
    %c0_412 = arith.constant 0 : index
    %c0_413 = arith.constant 0 : index
    %945 = vector.load %arg42[%c0_411, %c0_412, %c0_413] : memref<1x1x3xf32, #tpu.memory_space<vmem>>, vector<1x1x3xf32>
    %946 = vector.shape_cast %945 : vector<1x1x3xf32> to vector<1x3xf32>
    %947 = vector.shape_cast %944 : vector<1x3xf32> to vector<1x1x3xf32>
    tpu.vector_store %arg42[%c0_411, %c0_412, %c0_413], %947 {strides = array<i32>} : memref<1x1x3xf32, #tpu.memory_space<vmem>>, vector<1x1x3xf32>,
    return
  }
  func.func @transform_0(%arg0: i32) -> (i32, i32, i32) {
    %c0_i32 = arith.constant 0 : i32
    %c0_i32_0 = arith.constant 0 : i32
    %c0_i32_1 = arith.constant 0 : i32
    return %arg0, %c0_i32, %c0_i32_0 : i32, i32, i32
  }
  func.func @transform_1(%arg0: i32) -> (i32, i32, i32) {
    %c0_i32 = arith.constant 0 : i32
    %c0_i32_0 = arith.constant 0 : i32
    %c0_i32_1 = arith.constant 0 : i32
    return %arg0, %c0_i32, %c0_i32_0 : i32, i32, i32
  }
  func.func @transform_2(%arg0: i32) -> (i32, i32, i32) {
    %c0_i32 = arith.constant 0 : i32
    %c0_i32_0 = arith.constant 0 : i32
    %c0_i32_1 = arith.constant 0 : i32
    return %arg0, %c0_i32, %c0_i32_0 : i32, i32, i32
  }
  func.func @transform_3(%arg0: i32) -> (i32, i32, i32) {
    %c0_i32 = arith.constant 0 : i32
    %c0_i32_0 = arith.constant 0 : i32
    %c0_i32_1 = arith.constant 0 : i32
    return %arg0, %c0_i32, %c0_i32_0 : i32, i32, i32
  }
  func.func @transform_4(%arg0: i32) -> (i32, i32, i32) {
    %c0_i32 = arith.constant 0 : i32
    %c0_i32_0 = arith.constant 0 : i32
    %c0_i32_1 = arith.constant 0 : i32
    return %arg0, %c0_i32, %c0_i32_0 : i32, i32, i32
  }
  func.func @transform_5(%arg0: i32) -> (i32, i32, i32) {
    %c0_i32 = arith.constant 0 : i32
    %c0_i32_0 = arith.constant 0 : i32
    %c0_i32_1 = arith.constant 0 : i32
    return %arg0, %c0_i32, %c0_i32_0 : i32, i32, i32
  }
  func.func @transform_6(%arg0: i32) -> (i32, i32) {
    %c0_i32 = arith.constant 0 : i32
    %c0_i32_0 = arith.constant 0 : i32
    %c0_i32_1 = arith.constant 0 : i32
    return %c0_i32, %c0_i32_0 : i32, i32
  }
  func.func @transform_7(%arg0: i32) -> (i32, i32) {
    %c0_i32 = arith.constant 0 : i32
    %c0_i32_0 = arith.constant 0 : i32
    %c0_i32_1 = arith.constant 0 : i32
    return %c0_i32, %c0_i32_0 : i32, i32
  }
  func.func @transform_8(%arg0: i32) -> (i32, i32) {
    %c0_i32 = arith.constant 0 : i32
    %c0_i32_0 = arith.constant 0 : i32
    %c0_i32_1 = arith.constant 0 : i32
    return %c0_i32, %c0_i32_0 : i32, i32
  }
  func.func @transform_9(%arg0: i32) -> (i32, i32, i32) {
    %c0_i32 = arith.constant 0 : i32
    %c0_i32_0 = arith.constant 0 : i32
    %c0_i32_1 = arith.constant 0 : i32
    %c0_i32_2 = arith.constant 0 : i32
    return %c0_i32, %c0_i32_0, %c0_i32_1 : i32, i32, i32
  }
  func.func @transform_10(%arg0: i32) -> (i32, i32, i32) {
    %c0_i32 = arith.constant 0 : i32
    %c0_i32_0 = arith.constant 0 : i32
    %c0_i32_1 = arith.constant 0 : i32
    %c0_i32_2 = arith.constant 0 : i32
    return %c0_i32, %c0_i32_0, %c0_i32_1 : i32, i32, i32
  }
  func.func @transform_11(%arg0: i32) -> (i32, i32, i32) {
    %c0_i32 = arith.constant 0 : i32
    %c0_i32_0 = arith.constant 0 : i32
    %c0_i32_1 = arith.constant 0 : i32
    %c0_i32_2 = arith.constant 0 : i32
    return %c0_i32, %c0_i32_0, %c0_i32_1 : i32, i32, i32
  }
  func.func @transform_12(%arg0: i32) -> (i32, i32, i32) {
    %c0_i32 = arith.constant 0 : i32
    %c0_i32_0 = arith.constant 0 : i32
    %c0_i32_1 = arith.constant 0 : i32
    %c0_i32_2 = arith.constant 0 : i32
    return %c0_i32, %c0_i32_0, %c0_i32_1 : i32, i32, i32
  }
  func.func @transform_13(%arg0: i32) -> (i32, i32, i32) {
    %c0_i32 = arith.constant 0 : i32
    %c0_i32_0 = arith.constant 0 : i32
    %c0_i32_1 = arith.constant 0 : i32
    %c0_i32_2 = arith.constant 0 : i32
    return %c0_i32, %c0_i32_0, %c0_i32_1 : i32, i32, i32
  }
  func.func @transform_14(%arg0: i32) -> (i32, i32, i32) {
    %c0_i32 = arith.constant 0 : i32
    %c0_i32_0 = arith.constant 0 : i32
    %c0_i32_1 = arith.constant 0 : i32
    %c0_i32_2 = arith.constant 0 : i32
    return %c0_i32, %c0_i32_0, %c0_i32_1 : i32, i32, i32
  }
  func.func @transform_15(%arg0: i32) -> (i32, i32, i32) {
    %c0_i32 = arith.constant 0 : i32
    %c0_i32_0 = arith.constant 0 : i32
    %c0_i32_1 = arith.constant 0 : i32
    %c0_i32_2 = arith.constant 0 : i32
    return %c0_i32, %c0_i32_0, %c0_i32_1 : i32, i32, i32
  }
  func.func @transform_16(%arg0: i32) -> (i32, i32, i32) {
    %c0_i32 = arith.constant 0 : i32
    %c0_i32_0 = arith.constant 0 : i32
    %c0_i32_1 = arith.constant 0 : i32
    %c0_i32_2 = arith.constant 0 : i32
    return %c0_i32, %c0_i32_0, %c0_i32_1 : i32, i32, i32
  }
  func.func @transform_17(%arg0: i32) -> (i32, i32, i32) {
    %c0_i32 = arith.constant 0 : i32
    %c0_i32_0 = arith.constant 0 : i32
    %c0_i32_1 = arith.constant 0 : i32
    %c0_i32_2 = arith.constant 0 : i32
    return %c0_i32, %c0_i32_0, %c0_i32_1 : i32, i32, i32
  }
  func.func @transform_18(%arg0: i32) -> (i32, i32, i32) {
    %c0_i32 = arith.constant 0 : i32
    %c0_i32_0 = arith.constant 0 : i32
    %c0_i32_1 = arith.constant 0 : i32
    %c0_i32_2 = arith.constant 0 : i32
    return %c0_i32, %c0_i32_0, %c0_i32_1 : i32, i32, i32
  }
  func.func @transform_19(%arg0: i32) -> (i32, i32) {
    %c0_i32 = arith.constant 0 : i32
    %c0_i32_0 = arith.constant 0 : i32
    %c0_i32_1 = arith.constant 0 : i32
    return %c0_i32, %c0_i32_0 : i32, i32
  }
  func.func @transform_20(%arg0: i32) -> (i32, i32) {
    %c0_i32 = arith.constant 0 : i32
    %c0_i32_0 = arith.constant 0 : i32
    %c0_i32_1 = arith.constant 0 : i32
    return %c0_i32, %c0_i32_0 : i32, i32
  }
  func.func @transform_21(%arg0: i32) -> (i32, i32, i32) {
    %c0_i32 = arith.constant 0 : i32
    %c0_i32_0 = arith.constant 0 : i32
    %c0_i32_1 = arith.constant 0 : i32
    %c0_i32_2 = arith.constant 0 : i32
    return %c0_i32, %c0_i32_0, %c0_i32_1 : i32, i32, i32
  }
  func.func @transform_22(%arg0: i32) -> (i32, i32, i32) {
    %c0_i32 = arith.constant 0 : i32
    %c0_i32_0 = arith.constant 0 : i32
    %c0_i32_1 = arith.constant 0 : i32
    %c0_i32_2 = arith.constant 0 : i32
    return %c0_i32, %c0_i32_0, %c0_i32_1 : i32, i32, i32
  }
  func.func @transform_23(%arg0: i32) -> (i32, i32, i32) {
    %c0_i32 = arith.constant 0 : i32
    %c0_i32_0 = arith.constant 0 : i32
    %c0_i32_1 = arith.constant 0 : i32
    %c0_i32_2 = arith.constant 0 : i32
    return %c0_i32, %c0_i32_0, %c0_i32_1 : i32, i32, i32
  }
  func.func @transform_24(%arg0: i32) -> (i32, i32, i32) {
    %c0_i32 = arith.constant 0 : i32
    %c0_i32_0 = arith.constant 0 : i32
    %c0_i32_1 = arith.constant 0 : i32
    %c0_i32_2 = arith.constant 0 : i32
    return %c0_i32, %c0_i32_0, %c0_i32_1 : i32, i32, i32
  }
  func.func @transform_25(%arg0: i32) -> (i32, i32, i32) {
    %c0_i32 = arith.constant 0 : i32
    %c0_i32_0 = arith.constant 0 : i32
    %c0_i32_1 = arith.constant 0 : i32
    %c0_i32_2 = arith.constant 0 : i32
    return %c0_i32, %c0_i32_0, %c0_i32_1 : i32, i32, i32
  }
  func.func @transform_26(%arg0: i32) -> (i32, i32, i32) {
    %c0_i32 = arith.constant 0 : i32
    %c0_i32_0 = arith.constant 0 : i32
    %c0_i32_1 = arith.constant 0 : i32
    %c0_i32_2 = arith.constant 0 : i32
    return %c0_i32, %c0_i32_0, %c0_i32_1 : i32, i32, i32
  }
  func.func @transform_27(%arg0: i32) -> (i32, i32, i32) {
    %c0_i32 = arith.constant 0 : i32
    %c0_i32_0 = arith.constant 0 : i32
    %c0_i32_1 = arith.constant 0 : i32
    %c0_i32_2 = arith.constant 0 : i32
    return %c0_i32, %c0_i32_0, %c0_i32_1 : i32, i32, i32
  }
  func.func @transform_28(%arg0: i32) -> (i32, i32, i32) {
    %c0_i32 = arith.constant 0 : i32
    %c0_i32_0 = arith.constant 0 : i32
    %c0_i32_1 = arith.constant 0 : i32
    %c0_i32_2 = arith.constant 0 : i32
    return %c0_i32, %c0_i32_0, %c0_i32_1 : i32, i32, i32
  }
  func.func @transform_29(%arg0: i32) -> (i32, i32, i32) {
    %c0_i32 = arith.constant 0 : i32
    %c0_i32_0 = arith.constant 0 : i32
    %c0_i32_1 = arith.constant 0 : i32
    %c0_i32_2 = arith.constant 0 : i32
    return %c0_i32, %c0_i32_0, %c0_i32_1 : i32, i32, i32
  }
  func.func @transform_30(%arg0: i32) -> (i32, i32, i32) {
    %c0_i32 = arith.constant 0 : i32
    %c0_i32_0 = arith.constant 0 : i32
    %c0_i32_1 = arith.constant 0 : i32
    %c0_i32_2 = arith.constant 0 : i32
    return %c0_i32, %c0_i32_0, %c0_i32_1 : i32, i32, i32
  }
  func.func @transform_31(%arg0: i32) -> (i32, i32, i32) {
    %c0_i32 = arith.constant 0 : i32
    %c0_i32_0 = arith.constant 0 : i32
    %c0_i32_1 = arith.constant 0 : i32
    %c0_i32_2 = arith.constant 0 : i32
    return %c0_i32, %c0_i32_0, %c0_i32_1 : i32, i32, i32
  }
  func.func @transform_32(%arg0: i32) -> (i32, i32, i32) {
    %c0_i32 = arith.constant 0 : i32
    %c0_i32_0 = arith.constant 0 : i32
    %c0_i32_1 = arith.constant 0 : i32
    %c0_i32_2 = arith.constant 0 : i32
    return %c0_i32, %c0_i32_0, %c0_i32_1 : i32, i32, i32
  }
  func.func @transform_33(%arg0: i32) -> (i32, i32, i32) {
    %c0_i32 = arith.constant 0 : i32
    %c0_i32_0 = arith.constant 0 : i32
    %c0_i32_1 = arith.constant 0 : i32
    %c0_i32_2 = arith.constant 0 : i32
    return %c0_i32, %c0_i32_0, %c0_i32_1 : i32, i32, i32
  }
  func.func @transform_34(%arg0: i32) -> (i32, i32, i32) {
    %c0_i32 = arith.constant 0 : i32
    %c0_i32_0 = arith.constant 0 : i32
    %c0_i32_1 = arith.constant 0 : i32
    %c0_i32_2 = arith.constant 0 : i32
    return %c0_i32, %c0_i32_0, %c0_i32_1 : i32, i32, i32
  }
  func.func @transform_35(%arg0: i32) -> (i32, i32, i32) {
    %c0_i32 = arith.constant 0 : i32
    %c0_i32_0 = arith.constant 0 : i32
    %c0_i32_1 = arith.constant 0 : i32
    %c0_i32_2 = arith.constant 0 : i32
    return %c0_i32, %c0_i32_0, %c0_i32_1 : i32, i32, i32
  }
  func.func @transform_36(%arg0: i32) -> (i32, i32, i32) {
    %c0_i32 = arith.constant 0 : i32
    %c0_i32_0 = arith.constant 0 : i32
    %c0_i32_1 = arith.constant 0 : i32
    %c0_i32_2 = arith.constant 0 : i32
    return %c0_i32, %c0_i32_0, %c0_i32_1 : i32, i32, i32
  }
  func.func @transform_37(%arg0: i32) -> (i32, i32, i32) {
    %c0_i32 = arith.constant 0 : i32
    %c0_i32_0 = arith.constant 0 : i32
    %c0_i32_1 = arith.constant 0 : i32
    %c0_i32_2 = arith.constant 0 : i32
    return %c0_i32, %c0_i32_0, %c0_i32_1 : i32, i32, i32
  }
  func.func @transform_38(%arg0: i32) -> (i32, i32) {
    %c0_i32 = arith.constant 0 : i32
    %c0_i32_0 = arith.constant 0 : i32
    %c0_i32_1 = arith.constant 0 : i32
    return %c0_i32, %c0_i32_0 : i32, i32
  }
  func.func @transform_39(%arg0: i32) -> (i32, i32) {
    %c0_i32 = arith.constant 0 : i32
    %c0_i32_0 = arith.constant 0 : i32
    %c0_i32_1 = arith.constant 0 : i32
    return %c0_i32, %c0_i32_0 : i32, i32
  }
  func.func @transform_40(%arg0: i32) -> (i32, i32) {
    %c0_i32 = arith.constant 0 : i32
    %c0_i32_0 = arith.constant 0 : i32
    %c0_i32_1 = arith.constant 0 : i32
    return %c0_i32, %c0_i32_0 : i32, i32
  }
  func.func @transform_41(%arg0: i32) -> (i32, i32, i32) {
    %c0_i32 = arith.constant 0 : i32
    %c0_i32_0 = arith.constant 0 : i32
    %c0_i32_1 = arith.constant 0 : i32
    return %arg0, %c0_i32, %c0_i32_0 : i32, i32, i32
  }
}

</mosaic_0001>

<bundles_post_ra>
// kernel: transformer_forward.1
= control target key start
LH: loop header
LB: loop body
LE: loop exit
PB: predicated region body
PF: predicated region fallthrough
CT: control target
= control target key end

     0   :  { %s6285_s6 = smov 1   ;;  %s6286_s10 = smov 2   ;;  %s7430_s0 = inlined_call_operand.smem [shape: u32[42], index: -1, kind: input, shape index: {}] }
   0x1   :  { %s6368_s5 = sld [smem:[%s7430_s0]]   ;;  %s6287_s14 = smov 3  }
   0x2   :  { %s6373_s9 = sld [smem:[%s7430_s0 + %s6285_s6]]   ;;  %s6288_s18 = smov 4  }
   0x3   :  { %s6378_s13 = sld [smem:[%s7430_s0 + %s6286_s10]]   ;;  %s6289_s22 = smov 5  }
   0x4   :  { %s6383_s17 = sld [smem:[%s7430_s0 + %s6287_s14]]   ;;  %s6290_s26 = smov 6  }
   0x5   :  { %s6388_s21 = sld [smem:[%s7430_s0 + %s6288_s18]]   ;;  %s6291_s30 = smov 7  }
   0x6   :  { %s6393_s25 = sld [smem:[%s7430_s0 + %s6289_s22]]   ;;  %s6292_s4 = smov 8  }
   0x7   :  { %7510 = sst [smem:[#allocation36_spill]] %s6368_s5  ;;  %s6293_s10 = smov 9  }
   0x8   :  { %7511 = sst [smem:[#allocation37_spill]] %s6373_s9  ;;  %s6294_s15 = smov 10  }
   0x9   :  { %7512 = sst [smem:[#allocation38_spill]] %s6378_s13  ;;  %s6295_s20 = smov 11  }
   0xa   :  { %7513 = sst [smem:[#allocation39_spill]] %s6383_s17  ;;  %s6297_s1 = smov 13  }
   0xb   :  { %7514 = sst [smem:[#allocation40_spill]] %s6388_s21  ;;  %s6298_s7 = smov 14  }
   0xc   :  { %7515 = sst [smem:[#allocation41_spill]] %s6393_s25  ;;  %s6300_s22 = smov 16  }
   0xd   :  { %s6398_s29 = sld [smem:[%s7430_s0 + %s6290_s26]]   ;;  %s6296_s26 = smov 12  }
   0xe   :  { %s6403_s3 = sld [smem:[%s7430_s0 + %s6291_s30]]   ;;  %s6301_s28 = smov 17  }
   0xf   :  { %s6408_s8 = sld [smem:[%s7430_s0 + %s6292_s4]]  }
  0x10   :  { %s6413_s14 = sld [smem:[%s7430_s0 + %s6293_s10]]  }
  0x11   :  { %s6418_s19 = sld [smem:[%s7430_s0 + %s6294_s15]]   ;;  %s6299_s15 = smov 15  }
  0x12   :  { %s6423_s24 = sld [smem:[%s7430_s0 + %s6295_s20]]  }
  0x13   :  { %s6428_s30 = sld [smem:[%s7430_s0 + %s6296_s26]]  }
  0x14   :  { %7516 = sst [smem:[#allocation42_spill]] %s6403_s3 }
  0x15   :  { %7517 = sst [smem:[#allocation43_spill]] %s6408_s8 }
  0x16   :  { %7518 = sst [smem:[#allocation44_spill]] %s6413_s14 }
  0x17   :  { %7519 = sst [smem:[#allocation45_spill]] %s6418_s19 }
  0x18   :  { %7520 = sst [smem:[#allocation46_spill]] %s6423_s24 }
  0x19   :  { %7521 = sst [smem:[#allocation47_spill]] %s6428_s30 }
  0x1a   :  { %s6433_s6 = sld [smem:[%s7430_s0 + %s6297_s1]]  }
  0x1b   :  { %s6438_s12 = sld [smem:[%s7430_s0 + %s6298_s7]]   ;;  %s6302_s7 = smov 18  }
  0x1c   :  { %s6443_s20 = sld [smem:[%s7430_s0 + %s6299_s15]]   ;;  %s6303_s15 = smov 19  }
  0x1d   :  { %s6448_s27 = sld [smem:[%s7430_s0 + %s6300_s22]]   ;;  %s6304_s22 = smov 20  }
  0x1e   :  { %s6453_s4 = sld [smem:[%s7430_s0 + %s6301_s28]]   ;;  %s6305_s28 = smov 21  }
  0x1f   :  { %s6458_s25 = sld [smem:[%s7430_s0 + %s6302_s7]]   ;;  %s6306_s7 = smov 22  }
  0x20   :  { %7522 = sst [smem:[#allocation48_spill]] %s6433_s6 }
  0x21   :  { %7523 = sst [smem:[#allocation49_spill]] %s6438_s12 }
  0x22   :  { %7524 = sst [smem:[#allocation50_spill]] %s6443_s20 }
  0x23   :  { %7525 = sst [smem:[#allocation51_spill]] %s6448_s27 }
  0x24   :  { %7526 = sst [smem:[#allocation52_spill]] %s6453_s4 }
  0x25   :  { %7527 = sst [smem:[#allocation53_spill]] %s6458_s25 }
  0x26   :  { %s6463_s17 = sld [smem:[%s7430_s0 + %s6303_s15]]   ;;  %s6307_s15 = smov 23  }
  0x27   :  { %s6468_s27 = sld [smem:[%s7430_s0 + %s6304_s22]]   ;;  %s6308_s22 = smov 24  }
  0x28   :  { %s6473_s12 = sld [smem:[%s7430_s0 + %s6305_s28]]   ;;  %s6309_s28 = smov 25  }
  0x29   :  { %s6478_s25 = sld [smem:[%s7430_s0 + %s6306_s7]]   ;;  %s6310_s7 = smov 26  }
  0x2a   :  { %s6483_s4 = sld [smem:[%s7430_s0 + %s6307_s15]]   ;;  %s6311_s15 = smov 27  }
  0x2b   :  { %s6493_s30 = sld [smem:[%s7430_s0 + %s6309_s28]]   ;;  %s6313_s28 = smov 29  }
  0x2c   :  { %7528 = sst [smem:[#allocation54_spill]] %s6463_s17 }
  0x2d   :  { %7529 = sst [smem:[#allocation55_spill]] %s6468_s27 }
  0x2e   :  { %7530 = sst [smem:[#allocation56_spill]] %s6473_s12 }
  0x2f   :  { %7531 = sst [smem:[#allocation57_spill]] %s6478_s25 }
  0x30   :  { %7532 = sst [smem:[#allocation58_spill]] %s6483_s4 }
  0x31   :  { %s6488_s27 = sld [smem:[%s7430_s0 + %s6308_s22]]   ;;  %s6312_s22 = smov 28  }
  0x32   :  { %s6498_s25 = sld [smem:[%s7430_s0 + %s6310_s7]]   ;;  %s6314_s7 = smov 30  }
  0x33   :  { %s6503_s19 = sld [smem:[%s7430_s0 + %s6311_s15]]   ;;  %s6315_s15 = smov 31  }
  0x34   :  { %s6513_s21 = sld [smem:[%s7430_s0 + %s6313_s28]]   ;;  %s6317_s28 = smov 33  }
  0x35   :  { %s6523_s14 = sld [smem:[%s7430_s0 + %s6315_s15]]   ;;  %s6319_s15 = smov 35  }
  0x36   :  { %s6533_s3 = sld [smem:[%s7430_s0 + %s6317_s28]]   ;;  %s6321_s28 = smov 37  }
  0x37   :  { %7533 = sst [smem:[#allocation59_spill]] %s6488_s27 }
  0x38   :  { %7534 = sst [smem:[#allocation60_spill]] %s6498_s25 }
  0x39   :  { %7535 = sst [smem:[#allocation61_spill]] %s6503_s19 }
  0x3a   :  { %s6508_s27 = sld [smem:[%s7430_s0 + %s6312_s22]]   ;;  %s6316_s22 = smov 32  }
  0x3b   :  { %7537 = sst [smem:[#allocation63_spill]] %s6513_s21 }
  0x3c   :  { %s6518_s25 = sld [smem:[%s7430_s0 + %s6314_s7]]   ;;  %s6318_s7 = smov 34  }
  0x3d   :  { %7539 = sst [smem:[#allocation65_spill]] %s6523_s14 }
  0x3e   :  { %7541 = sst [smem:[#allocation67_spill]] %s6533_s3 }
  0x3f   :  { %s6543_s13 = sld [smem:[%s7430_s0 + %s6319_s15]]   ;;  %s6323_s15 = smov 39  }
  0x40   :  { %7536 = sst [smem:[#allocation62_spill]] %s6508_s27 }
  0x41   :  { %s6528_s27 = sld [smem:[%s7430_s0 + %s6316_s22]]   ;;  %s6320_s22 = smov 36  }
  0x42   :  { %7538 = sst [smem:[#allocation64_spill]] %s6518_s25 }
  0x43   :  { %s6538_s25 = sld [smem:[%s7430_s0 + %s6318_s7]]   ;;  %s6322_s7 = smov 38  }
  0x44   :  { %s6553_s9 = sld [smem:[%s7430_s0 + %s6321_s28]]   ;;  %s6325_s28 = smov 41  }
  0x45   :  { %7543 = sst [smem:[#allocation69_spill]] %s6543_s13 }
  0x46   :  { %s6563_s13 = sld [smem:[%s7430_s0 + %s6323_s15]]  }
  0x47   :  { %7540 = sst [smem:[#allocation66_spill]] %s6528_s27 }
  0x48   :  { %s6548_s27 = sld [smem:[%s7430_s0 + %s6320_s22]]   ;;  %s6324_s22 = smov 40  }
  0x49   :  { %7542 = sst [smem:[#allocation68_spill]] %s6538_s25 }
  0x4a   :  { %7545 = sst [smem:[#allocation71_spill]] %s6553_s9 }
  0x4b   :  { %s6558_s25 = sld [smem:[%s7430_s0 + %s6322_s7]]  }
  0x4c   :  { %7546 = sst [smem:[#allocation72_spill]] %s6563_s13 }
  0x4d   :  { %s6573_s9 = sld [smem:[%s7430_s0 + %s6325_s28]]  }
  0x4e   :  { %7544 = sst [smem:[#allocation70_spill]] %s6548_s27 }
  0x4f   :  { %s6568_s27 = sld [smem:[%s7430_s0 + %s6324_s22]]  }
  0x53   :  { %7547 = sst [smem:[#allocation73_spill]] %s6573_s9 }
  0x54   :  { %88 = vsyncpa [#allocation3], 0 }
  0x55   :  { %89 = vsyncpa [#allocation6], 0 }
  0x56   :  { %90 = vsyncpa [#allocation9], 0 }
  0x57   :  { %91 = vsyncpa [#allocation12], 0 }
  0x58   :  { %92 = vsyncpa [#allocation15], 0 }
  0x59   :  { %93 = vsyncpa [#allocation18], 0 }
  0x5a   :  { %94 = vsyncpa [#allocation21], 0 }
  0x5b   :  { %95 = vsyncpa [#allocation24], 0 }
  0x5c   :  { %96 = vsyncpa [#allocation4], 0 }
  0x5d   :  { %98 = vsyncpa [#allocation4 + $0x1], 0  ;;  %s6575_s7 = smov 0   ;;  %s6577_s10 = smov 0  }
  0x5e   :  { %s6579_s11 = smov 0   ;;  %s6581_s15 = smov 0  }
  0x5f LB: > { %s7548_s24 = sld [smem:[#allocation46_spill]]  ;;  %s6596_s0 = sadd.s32 4294967295, %s6283_s15   ;;  %s6283_s15 = sphi %s6581_s15, %s7644_s15   ;;  %s6279_s11 = sphi %s6579_s11, %s7647_s11   ;;  %s6275_s10 = sphi %s6577_s10, %s7646_s10   ;;  %s6271_s7 = sphi %s6575_s7, %s7645_s7  }
  0x60   : > { %s7549_s21 = sld [smem:[#allocation63_spill]]  ;;  %s5168_s16 = sadd.s32 4294967294, %s6283_s15  }
  0x61   : > { %s7550_s20 = sld [smem:[#allocation50_spill]]  ;;  %s6600_s18 = sadd.s32 1, %s6283_s15  }
  0x62   : > { %s7551_s19 = sld [smem:[#allocation61_spill]]  ;;  %s1002_s22 = sadd.s32 1, %s6279_s11 }
  0x63   : > { %s7552_s17 = sld [smem:[#allocation54_spill]]  ;;  %s999_s23 = ssub.s32 %s6283_s15, %s6600_s18 }
  0x64   : > { %s7553_s14 = sld [smem:[#allocation65_spill]]  ;;  %p1012_p0 = scmp.ne.s32.totalorder %s6279_s11, %s6275_s10 }
  0x65   : > { %s7554_s13 = sld [smem:[#allocation72_spill]]  ;;  %p1000_p1 = scmp.eq.s32.totalorder %s999_s23, 0 }
  0x66   : > { %s7555_s12 = sld [smem:[#allocation56_spill]]  ;;  %p1013_p2 = scmp.eq.s32.totalorder %s6596_s0, 1 }
  0x67   : > { %s7556_s8 = sld [smem:[#allocation43_spill]]  ;;  %p1018_p3 = scmp.ne.s32.totalorder %s6275_s10, %s6271_s7 }
  0x68   : > { %s7557_s4 = sld [smem:[#allocation58_spill]]  ;;  %p1019_p4 = scmp.eq.s32.totalorder %s5168_s16, 1 }
  0x69   : > { %s7558_s3 = sld [smem:[#allocation67_spill]]  ;;  %p6613_p5 = por %p1013_p2, %p1012_p0 }
  0x6a   : > { %s7559_s6 = sld [smem:[#allocation48_spill]]  ;;  %p6617_p6 = por %p1019_p4, %p1018_p3 }
  0x6b   : > { %7560 = sst [smem:[#allocation74_spill]] %s6271_s7  ;;  %p5169_p7 = scmp.ge.s32.totalorder %s6283_s15, 1 }
  0x6c   : > { %7561 = sst [smem:[#allocation75_spill]] %s6275_s10  ;;  %p1026_p8 = scmp.lt.s32.totalorder %s6283_s15, 3 }
  0x6d   : > { %7562 = sst [smem:[#allocation76_spill]] %s6279_s11  ;;  %p5455_p9 = scmp.eq.s32.totalorder %s6596_s0, 0 }
  0x6e   : > { %7563 = sst [smem:[#allocation77_spill]] %s6283_s15  ;;  %p6624_p10 = pnand %p5169_p7, %p1026_p8 }
  0x6f   : > { %7564 = sst [smem:[#allocation78_spill]] %s6600_s18  ;;  %s1053_s23 = sshll.u32 %s7556_s8, 4  ;;  %s1054_s23 = int_to_ptr.hbm [resolvable:$true] %s1053_s23 }
  0x70   : > { %s6611_s26 = scalar_select %p1000_p1, %s6279_s11, %s1002_s22  }
  0x71   : > { %s7566_s28 = scalar_select %p6613_p5, 1, 0 }
  0x72   : > { %7565 = sst [smem:[#allocation79_spill]] %s6611_s26  ;;  %p5405_p11 = pneg %p6624_p10 }
  0x73   : > { %7567 = sst [smem:[#allocation80_spill]] %s7566_s28  ;;  %s6326_s16 = smov [#allocation5]  }
  0x74   : > { %s7568_s1 = scalar_select %p6617_p6, 1, 0 }
  0x75   : > { %s1055_s22 = sshll.u32 %s6326_s16, 4  ;;  %p6633_p12 = pnand %p5455_p9, %p5405_p11  ;;  %s1056_s22 = int_to_ptr.vmem [resolvable:$true] %s1055_s22 }
  0x76   : > { %7569 = sst [smem:[#allocation81_spill]] %s7568_s1  ;;  %s1087_s11 = sshll.u32 %s7559_s6, 4  ;;  %s6638_s11 = int_to_ptr.hbm [resolvable:$true] %s1087_s11 }
  0x77   : > { %s5739_s18 = sshra.s32 %s1054_s23, 4  ;;  %p6642_p0 = pneg %p6633_p12  ;;  %s5740_s18 = int_to_ptr.hbm [resolvable:$true] %s5739_s18 }
  0x78   : > { %s5741_s1 = scalar_lea.hbm %s5740_s18, 8  ;;  %s5746_s16 = scalar_lea.hbm %s7556_s8, 8 }
  0x79   : > { %p5742_p13 = scmp.ne.s32.totalorder %s5740_s18, %s5741_s1  ;;  %p5747_p3 = scmp.lt.s32.totalorder %s5740_s18, %s7556_s8 }
  0x7a   : > { %p5748_p4 = scmp.lt.s32.totalorder %s5746_s16, %s5741_s1 }
  0x7b   : > { %p5744_p1 = pnand %p6642_p0, %p5742_p13 }
  0x7c   : > { %p5749_p7 = por %p5748_p4, %p5747_p3 }
  0x7d   : > { %p5745_p2 = pneg %p5744_p1 }
  0x7f   : > { %p5750_p8 = pnand %p5749_p7, %p5745_p2 }
  0x81   : > { %5753 = shalt.err (!%p5750_p8)
}
  0x82   : > { %5411 = dma.hbm_to_vmem [thread:$0]  (!%p6633_p12), %s1054_s23, 128, %s1056_s22, [#allocation6]  }
  0x83   : > { %s6327_s15 = smov [#allocation8]   ;;  %s1128_s9 = sshll.u32 %s7552_s17, 4  ;;  %s6653_s9 = int_to_ptr.hbm [resolvable:$true] %s1128_s9 }
  0x84   : > { %s1089_s28 = sshll.u32 %s6327_s15, 4  ;;  %s5769_s10 = sshra.s32 %s6638_s11, 4  ;;  %s1090_s28 = int_to_ptr.vmem [resolvable:$true] %s1089_s28  ;;  %s5770_s10 = int_to_ptr.hbm [resolvable:$true] %s5769_s10 }
  0x85   : > { %s5771_s18 = scalar_lea.hbm %s5770_s10, 64  ;;  %s5776_s1 = scalar_lea.hbm %s7559_s6, 64 }
  0x86   : > { %p5772_p11 = scmp.ne.s32.totalorder %s5770_s10, %s5771_s18  ;;  %p5777_p2 = scmp.lt.s32.totalorder %s5770_s10, %s7559_s6 }
  0x87   : > { %p5778_p3 = scmp.lt.s32.totalorder %s5776_s1, %s5771_s18 }
  0x88   : > { %p5774_p13 = pnand %p5772_p11, %p6642_p0 }
  0x89   : > { %p5779_p4 = por %p5778_p3, %p5777_p2 }
  0x8a   : > { %p5775_p1 = pneg %p5774_p13 }
  0x8c   : > { %p5780_p7 = pnand %p5779_p4, %p5775_p1 }
  0x8e   : > { %5783 = shalt.err (!%p5780_p7)
}
  0x8f   : > { %s6328_s23 = smov 128   ;;  %s6329_s15 = smov 8  }
  0x90   : > { %5417 = dma.hbm_to_vmem [thread:$0]  (!%p6633_p12), %s6638_s11, 1024, %s1090_s28, [#allocation9], %s6328_s23, %s6328_s23, %s6329_s15  }
  0x91   : > { %s1159_s22 = sshll.u32 %s7557_s4, 4  ;;  %s6330_s10 = smov [#allocation11]   ;;  %s6667_s22 = int_to_ptr.hbm [resolvable:$true] %s1159_s22 }
  0x92   : > { %s1130_s16 = sshll.u32 %s6330_s10, 4  ;;  %s5799_s18 = sshra.s32 %s6653_s9, 4  ;;  %s1131_s16 = int_to_ptr.vmem [resolvable:$true] %s1130_s16  ;;  %s5800_s18 = int_to_ptr.hbm [resolvable:$true] %s5799_s18 }
  0x93   : > { %s5801_s1 = scalar_lea.hbm %s5800_s18, 2  ;;  %s5806_s6 = scalar_lea.hbm %s7552_s17, 2 }
  0x94   : > { %p5802_p8 = scmp.ne.s32.totalorder %s5800_s18, %s5801_s1  ;;  %p5807_p1 = scmp.lt.s32.totalorder %s5800_s18, %s7552_s17 }
  0x95   : > { %p5808_p2 = scmp.lt.s32.totalorder %s5806_s6, %s5801_s1 }
  0x96   : > { %p5804_p11 = pnand %p5802_p8, %p6642_p0 }
  0x97   : > { %p5809_p3 = por %p5808_p2, %p5807_p1 }
  0x98   : > { %p5805_p13 = pneg %p5804_p11 }
  0x9a   : > { %p5810_p4 = pnand %p5809_p3, %p5805_p13 }
  0x9c   : > { %5813 = shalt.err (!%p5810_p4)
}
  0x9d   : > { %5423 = dma.hbm_to_vmem [thread:$0]  (!%p6633_p12), %s6653_s9, 32, %s1131_s16, [#allocation12]  }
  0x9e   : > { %s6331_s11 = smov [#allocation14]   ;;  %s1193_s10 = sshll.u32 %s7551_s19, 4  ;;  %s6678_s10 = int_to_ptr.hbm [resolvable:$true] %s1193_s10 }
  0x9f   : > { %s1161_s28 = sshll.u32 %s6331_s11, 4  ;;  %s5829_s18 = sshra.s32 %s6667_s22, 4  ;;  %s1162_s28 = int_to_ptr.vmem [resolvable:$true] %s1161_s28  ;;  %s5830_s18 = int_to_ptr.hbm [resolvable:$true] %s5829_s18 }
  0xa0   : > { %s5831_s6 = scalar_lea.hbm %s5830_s18, 64  ;;  %s5836_s1 = scalar_lea.hbm %s7557_s4, 64 }
  0xa1   : > { %p5832_p7 = scmp.ne.s32.totalorder %s5830_s18, %s5831_s6  ;;  %p5837_p13 = scmp.lt.s32.totalorder %s5830_s18, %s7557_s4 }
  0xa2   : > { %p5838_p1 = scmp.lt.s32.totalorder %s5836_s1, %s5831_s6 }
  0xa3   : > { %p5834_p8 = pnand %p5832_p7, %p6642_p0 }
  0xa4   : > { %p5839_p2 = por %p5838_p1, %p5837_p13 }
  0xa5   : > { %p5835_p11 = pneg %p5834_p8 }
  0xa7   : > { %p5840_p3 = pnand %p5839_p2, %p5835_p11 }
  0xa9   : > { %5843 = shalt.err (!%p5840_p3)
}
  0xaa   : > { %5429 = dma.hbm_to_vmem [thread:$0]  (!%p6633_p12), %s6667_s22, 1024, %s1162_s28, [#allocation15], %s6328_s23, %s6328_s23, %s6329_s15  }
  0xab   : > { %s1227_s9 = sshll.u32 %s7553_s14, 4  ;;  %s6332_s16 = smov [#allocation17]   ;;  %s6692_s9 = int_to_ptr.hbm [resolvable:$true] %s1227_s9 }
  0xac   : > { %s1195_s11 = sshll.u32 %s6332_s16, 4  ;;  %s5859_s18 = sshra.s32 %s6678_s10, 4  ;;  %s1196_s11 = int_to_ptr.vmem [resolvable:$true] %s1195_s11  ;;  %s5860_s18 = int_to_ptr.hbm [resolvable:$true] %s5859_s18 }
  0xad   : > { %s5861_s6 = scalar_lea.hbm %s5860_s18, 64  ;;  %s5866_s1 = scalar_lea.hbm %s7551_s19, 64 }
  0xae   : > { %p5862_p4 = scmp.ne.s32.totalorder %s5860_s18, %s5861_s6  ;;  %p5867_p11 = scmp.lt.s32.totalorder %s5860_s18, %s7551_s19 }
  0xaf   : > { %p5868_p13 = scmp.lt.s32.totalorder %s5866_s1, %s5861_s6 }
  0xb0   : > { %p5864_p7 = pnand %p5862_p4, %p6642_p0 }
  0xb1   : > { %p5869_p1 = por %p5868_p13, %p5867_p11 }
  0xb2   : > { %p5865_p8 = pneg %p5864_p7 }
  0xb4   : > { %p5870_p2 = pnand %p5869_p1, %p5865_p8 }
  0xb6   : > { %5873 = shalt.err (!%p5870_p2)
}
  0xb7   : > { %5435 = dma.hbm_to_vmem [thread:$0]  (!%p6633_p12), %s6678_s10, 1024, %s1196_s11, [#allocation18], %s6328_s23, %s6328_s23, %s6329_s15  }
  0xb8   : > { %s6333_s22 = smov [#allocation20]   ;;  %s1271_s16 = sshll.u32 %s6558_s25, 4  ;;  %s6706_s16 = int_to_ptr.hbm [resolvable:$true] %s1271_s16 }
  0xb9   : > { %s1229_s28 = sshll.u32 %s6333_s22, 4  ;;  %s5889_s18 = sshra.s32 %s6692_s9, 4  ;;  %s1230_s28 = int_to_ptr.vmem [resolvable:$true] %s1229_s28  ;;  %s5890_s18 = int_to_ptr.hbm [resolvable:$true] %s5889_s18 }
  0xba   : > { %s5891_s6 = scalar_lea.hbm %s5890_s18, 64  ;;  %s5896_s1 = scalar_lea.hbm %s7553_s14, 64 }
  0xbb   : > { %p5892_p3 = scmp.ne.s32.totalorder %s5890_s18, %s5891_s6  ;;  %p5897_p8 = scmp.lt.s32.totalorder %s5890_s18, %s7553_s14 }
  0xbc   : > { %p5898_p11 = scmp.lt.s32.totalorder %s5896_s1, %s5891_s6 }
  0xbd   : > { %p5894_p4 = pnand %p5892_p3, %p6642_p0 }
  0xbe   : > { %p5899_p13 = por %p5898_p11, %p5897_p8 }
  0xbf   : > { %p5895_p7 = pneg %p5894_p4 }
  0xc1   : > { %p5900_p1 = pnand %p5899_p13, %p5895_p7 }
  0xc3   : > { %5903 = shalt.err (!%p5900_p1)
}
  0xc4   : > { %5441 = dma.hbm_to_vmem [thread:$0]  (!%p6633_p12), %s6692_s9, 1024, %s1230_s28, [#allocation21], %s6328_s23, %s6328_s23, %s6329_s15  }
  0xc5   : > { %s1038_s10 = sshll.u32 %s6398_s29, 4  ;;  %s6334_s11 = smov [#allocation23]   ;;  %s6720_s10 = int_to_ptr.hbm [resolvable:$true] %s1038_s10 }
  0xc6   : > { %s1273_s22 = sshll.u32 %s6334_s11, 4  ;;  %s5919_s18 = sshra.s32 %s6706_s16, 4  ;;  %s1274_s22 = int_to_ptr.vmem [resolvable:$true] %s1273_s22  ;;  %s5920_s18 = int_to_ptr.hbm [resolvable:$true] %s5919_s18 }
  0xc7   : > { %s5921_s6 = scalar_lea.hbm %s5920_s18, 2  ;;  %s5926_s1 = scalar_lea.hbm %s6558_s25, 2 }
  0xc8   : > { %p5922_p2 = scmp.ne.s32.totalorder %s5920_s18, %s5921_s6  ;;  %p5927_p7 = scmp.lt.s32.totalorder %s5920_s18, %s6558_s25 }
  0xc9   : > { %p5928_p8 = scmp.lt.s32.totalorder %s5926_s1, %s5921_s6 }
  0xca   : > { %p5924_p3 = pnand %p5922_p2, %p6642_p0 }
  0xcb   : > { %p5929_p11 = por %p5928_p8, %p5927_p7 }
  0xcc   : > { %p5925_p4 = pneg %p5924_p3 }
  0xce   : > { %p5930_p13 = pnand %p5929_p11, %p5925_p4 }
  0xd0   : > { %5933 = shalt.err (!%p5930_p13)
}
  0xd1   : > { %5447 = dma.hbm_to_vmem [thread:$0]  (!%p6633_p12), %s6706_s16, 32, %s1274_s22, [#allocation24]  }
  0xd2   : > { %s6335_s9 = smov [#allocation2]   ;;  %s1070_s11 = sshll.u32 %s7548_s24, 4  ;;  %s6731_s11 = int_to_ptr.hbm [resolvable:$true] %s1070_s11 }
  0xd3   : > { %s1040_s28 = sshll.u32 %s6335_s9, 4  ;;  %s5949_s18 = sshra.s32 %s6720_s10, 4  ;;  %s1041_s28 = int_to_ptr.vmem [resolvable:$true] %s1040_s28  ;;  %s5950_s18 = int_to_ptr.hbm [resolvable:$true] %s5949_s18 }
  0xd4   : > { %s5951_s6 = scalar_lea.hbm %s5950_s18, 8  ;;  %s5956_s1 = scalar_lea.hbm %s6398_s29, 8 }
  0xd5   : > { %p5952_p1 = scmp.ne.s32.totalorder %s5950_s18, %s5951_s6  ;;  %p5957_p4 = scmp.lt.s32.totalorder %s5950_s18, %s6398_s29 }
  0xd6   : > { %p5958_p7 = scmp.lt.s32.totalorder %s5956_s1, %s5951_s6 }
  0xd7   : > { %p5954_p2 = pnand %p5952_p1, %p6642_p0 }
  0xd8   : > { %p5959_p8 = por %p5958_p7, %p5957_p4 }
  0xd9   : > { %p5955_p3 = pneg %p5954_p2 }
  0xdb   : > { %p5960_p11 = pnand %p5959_p8, %p5955_p3 }
  0xdd   : > { %5963 = shalt.err (!%p5960_p11)
}
  0xde   : > { %5408 = dma.hbm_to_vmem [thread:$0]  (!%p6633_p12), %s6720_s10, 128, %s1041_s28, [#allocation3]  }
  0xdf   : > { %s1104_s16 = sshll.u32 %s7550_s20, 4  ;;  %s6336_s22 = smov [#allocation7]   ;;  %s6742_s16 = int_to_ptr.hbm [resolvable:$true] %s1104_s16 }
  0xe0   : > { %s1072_s9 = sshll.u32 %s6336_s22, 4  ;;  %s5979_s18 = sshra.s32 %s6731_s11, 4  ;;  %s1073_s9 = int_to_ptr.vmem [resolvable:$true] %s1072_s9  ;;  %s5980_s18 = int_to_ptr.hbm [resolvable:$true] %s5979_s18 }
  0xe1   : > { %s5981_s6 = scalar_lea.hbm %s5980_s18, 64  ;;  %s5986_s1 = scalar_lea.hbm %s7548_s24, 64 }
  0xe2   : > { %p5982_p13 = scmp.ne.s32.totalorder %s5980_s18, %s5981_s6  ;;  %p5987_p3 = scmp.lt.s32.totalorder %s5980_s18, %s7548_s24 }
  0xe3   : > { %p5988_p4 = scmp.lt.s32.totalorder %s5986_s1, %s5981_s6 }
  0xe4   : > { %p5984_p1 = pnand %p5982_p13, %p6642_p0 }
  0xe5   : > { %p5989_p7 = por %p5988_p4, %p5987_p3 }
  0xe6   : > { %p5985_p2 = pneg %p5984_p1 }
  0xe8   : > { %p5990_p8 = pnand %p5989_p7, %p5985_p2 }
  0xea   : > { %5993 = shalt.err (!%p5990_p8)
}
  0xeb   : > { %5414 = dma.hbm_to_vmem [thread:$0]  (!%p6633_p12), %s6731_s11, 1024, %s1073_s9, [#allocation6], %s6328_s23, %s6328_s23, %s6329_s15  }
  0xec   : > { %s6337_s10 = smov [#allocation10]   ;;  %s1142_s22 = sshll.u32 %s7555_s12, 4  ;;  %s6756_s22 = int_to_ptr.hbm [resolvable:$true] %s1142_s22 }
  0xed   : > { %s1106_s28 = sshll.u32 %s6337_s10, 4  ;;  %s6009_s18 = sshra.s32 %s6742_s16, 4  ;;  %s1107_s28 = int_to_ptr.vmem [resolvable:$true] %s1106_s28  ;;  %s6010_s18 = int_to_ptr.hbm [resolvable:$true] %s6009_s18 }
  0xee   : > { %s6011_s6 = scalar_lea.hbm %s6010_s18, 128  ;;  %s6016_s1 = scalar_lea.hbm %s7550_s20, 128 }
  0xef   : > { %p6012_p11 = scmp.ne.s32.totalorder %s6010_s18, %s6011_s6  ;;  %p6017_p2 = scmp.lt.s32.totalorder %s6010_s18, %s7550_s20 }
  0xf0   : > { %p6018_p3 = scmp.lt.s32.totalorder %s6016_s1, %s6011_s6 }
  0xf1   : > { %p6014_p13 = pnand %p6012_p11, %p6642_p0 }
  0xf2   : > { %p6019_p4 = por %p6018_p3, %p6017_p2 }
  0xf3   : > { %p6015_p1 = pneg %p6014_p13 }
  0xf5   : > { %p6020_p7 = pnand %p6019_p4, %p6015_p1 }
  0xf7   : > { %6023 = shalt.err (!%p6020_p7)
}
  0xf8   : > { %5420 = dma.hbm_to_vmem [thread:$0]  (!%p6633_p12), %s6742_s16, 2048, %s1107_s28, [#allocation9], %s6328_s23, %s6328_s23, %s6329_s15  }
  0xf9   : > { %s1176_s11 = sshll.u32 %s6493_s30, 4  ;;  %s6338_s9 = smov [#allocation13]   ;;  %s6770_s11 = int_to_ptr.hbm [resolvable:$true] %s1176_s11 }
  0xfa   : > { %s1144_s10 = sshll.u32 %s6338_s9, 4  ;;  %s6039_s18 = sshra.s32 %s6756_s22, 4  ;;  %s1145_s10 = int_to_ptr.vmem [resolvable:$true] %s1144_s10  ;;  %s6040_s18 = int_to_ptr.hbm [resolvable:$true] %s6039_s18 }
  0xfb   : > { %s6041_s6 = scalar_lea.hbm %s6040_s18, 64  ;;  %s6046_s1 = scalar_lea.hbm %s7555_s12, 64 }
  0xfc   : > { %p6042_p8 = scmp.ne.s32.totalorder %s6040_s18, %s6041_s6  ;;  %p6047_p1 = scmp.lt.s32.totalorder %s6040_s18, %s7555_s12 }
  0xfd   : > { %p6048_p2 = scmp.lt.s32.totalorder %s6046_s1, %s6041_s6 }
  0xfe   : > { %p6044_p11 = pnand %p6042_p8, %p6642_p0 }
  0xff   : > { %p6049_p3 = por %p6048_p2, %p6047_p1 }
 0x100   : > { %p6045_p13 = pneg %p6044_p11 }
 0x102   : > { %p6050_p4 = pnand %p6049_p3, %p6045_p13 }
 0x104   : > { %6053 = shalt.err (!%p6050_p4)
}
 0x105   : > { %5426 = dma.hbm_to_vmem [thread:$0]  (!%p6633_p12), %s6756_s22, 1024, %s1145_s10, [#allocation12], %s6328_s23, %s6328_s23, %s6329_s15  }
 0x106   : > { %s6339_s16 = smov [#allocation16]   ;;  %s1210_s9 = sshll.u32 %s7549_s21, 4  ;;  %s6784_s9 = int_to_ptr.hbm [resolvable:$true] %s1210_s9 }
 0x107   : > { %s1178_s28 = sshll.u32 %s6339_s16, 4  ;;  %s6069_s18 = sshra.s32 %s6770_s11, 4  ;;  %s1179_s28 = int_to_ptr.vmem [resolvable:$true] %s1178_s28  ;;  %s6070_s18 = int_to_ptr.hbm [resolvable:$true] %s6069_s18 }
 0x108   : > { %s6071_s6 = scalar_lea.hbm %s6070_s18, 64  ;;  %s6076_s1 = scalar_lea.hbm %s6493_s30, 64 }
 0x109   : > { %p6072_p7 = scmp.ne.s32.totalorder %s6070_s18, %s6071_s6  ;;  %p6077_p13 = scmp.lt.s32.totalorder %s6070_s18, %s6493_s30 }
 0x10a   : > { %p6078_p1 = scmp.lt.s32.totalorder %s6076_s1, %s6071_s6 }
 0x10b   : > { %p6074_p8 = pnand %p6072_p7, %p6642_p0 }
 0x10c   : > { %p6079_p2 = por %p6078_p1, %p6077_p13 }
 0x10d   : > { %p6075_p11 = pneg %p6074_p8 }
 0x10f   : > { %p6080_p3 = pnand %p6079_p2, %p6075_p11 }
 0x111   : > { %6083 = shalt.err (!%p6080_p3)
}
 0x112   : > { %5432 = dma.hbm_to_vmem [thread:$0]  (!%p6633_p12), %s6770_s11, 1024, %s1179_s28, [#allocation15], %s6328_s23, %s6328_s23, %s6329_s15  }
 0x113   : > { %s1244_s22 = sshll.u32 %s7558_s3, 4  ;;  %s6340_s10 = smov [#allocation19]   ;;  %s6798_s22 = int_to_ptr.hbm [resolvable:$true] %s1244_s22 }
 0x114   : > { %s1212_s16 = sshll.u32 %s6340_s10, 4  ;;  %s6099_s18 = sshra.s32 %s6784_s9, 4  ;;  %s1213_s16 = int_to_ptr.vmem [resolvable:$true] %s1212_s16  ;;  %s6100_s18 = int_to_ptr.hbm [resolvable:$true] %s6099_s18 }
 0x115   : > { %s6101_s6 = scalar_lea.hbm %s6100_s18, 64  ;;  %s6106_s1 = scalar_lea.hbm %s7549_s21, 64 }
 0x116   : > { %p6102_p4 = scmp.ne.s32.totalorder %s6100_s18, %s6101_s6  ;;  %p6107_p11 = scmp.lt.s32.totalorder %s6100_s18, %s7549_s21 }
 0x117   : > { %p6108_p13 = scmp.lt.s32.totalorder %s6106_s1, %s6101_s6 }
 0x118   : > { %p6104_p7 = pnand %p6102_p4, %p6642_p0 }
 0x119   : > { %p6109_p1 = por %p6108_p13, %p6107_p11 }
 0x11a   : > { %p6105_p8 = pneg %p6104_p7 }
 0x11c   : > { %p6110_p2 = pnand %p6109_p1, %p6105_p8 }
 0x11e   : > { %6113 = shalt.err (!%p6110_p2)
}
 0x11f   : > { %5438 = dma.hbm_to_vmem [thread:$0]  (!%p6633_p12), %s6784_s9, 1024, %s1213_s16, [#allocation18], %s6328_s23, %s6328_s23, %s6329_s15  }
 0x120   : > { %s6341_s11 = smov [#allocation22]   ;;  %s1282_s10 = sshll.u32 %s7554_s13, 4  ;;  %s1283_s10 = int_to_ptr.hbm [resolvable:$true] %s1282_s10 }
 0x121   : > { %s1246_s28 = sshll.u32 %s6341_s11, 4  ;;  %s6129_s18 = sshra.s32 %s6798_s22, 4  ;;  %s1247_s28 = int_to_ptr.vmem [resolvable:$true] %s1246_s28  ;;  %s6130_s18 = int_to_ptr.hbm [resolvable:$true] %s6129_s18 }
 0x122   : > { %s6131_s6 = scalar_lea.hbm %s6130_s18, 128  ;;  %s6136_s1 = scalar_lea.hbm %s7558_s3, 128 }
 0x123   : > { %p6132_p3 = scmp.ne.s32.totalorder %s6130_s18, %s6131_s6  ;;  %p6137_p8 = scmp.lt.s32.totalorder %s6130_s18, %s7558_s3 }
 0x124   : > { %p6138_p11 = scmp.lt.s32.totalorder %s6136_s1, %s6131_s6 }
 0x125   : > { %p6134_p4 = pnand %p6132_p3, %p6642_p0 }
 0x126   : > { %p6139_p13 = por %p6138_p11, %p6137_p8 }
 0x127   : > { %p6135_p7 = pneg %p6134_p4 }
 0x129   : > { %p6140_p1 = pnand %p6139_p13, %p6135_p7 }
 0x12b   : > { %6143 = shalt.err (!%p6140_p1)
}
 0x12c   : > { %5444 = dma.hbm_to_vmem [thread:$0]  (!%p6633_p12), %s6798_s22, 2048, %s1247_s28, [#allocation21], %s6328_s23, %s6328_s23, %s6329_s15  }
 0x12d   : > { %s6342_s9 = smov [#allocation25]   ;;  %s6159_s11 = sshra.s32 %s1283_s10, 4  ;;  %s6160_s11 = int_to_ptr.hbm [resolvable:$true] %s6159_s11 }
 0x12e   : > { %s1284_s16 = sshll.u32 %s6342_s9, 4  ;;  %s6161_s18 = scalar_lea.hbm %s6160_s11, 128  ;;  %s1285_s16 = int_to_ptr.vmem [resolvable:$true] %s1284_s16 }
 0x12f   : > { %p6162_p2 = scmp.ne.s32.totalorder %s6160_s11, %s6161_s18  ;;  %s6166_s6 = scalar_lea.hbm %s7554_s13, 128 }
 0x130   : > { %p6167_p7 = scmp.lt.s32.totalorder %s6160_s11, %s7554_s13  ;;  %p6168_p8 = scmp.lt.s32.totalorder %s6166_s6, %s6161_s18 }
 0x131   : > { %p6164_p3 = pnand %p6162_p2, %p6642_p0 }
 0x132   : > { %p6169_p11 = por %p6168_p8, %p6167_p7 }
 0x133   : > { %p6165_p4 = pneg %p6164_p3 }
 0x135   : > { %p6170_p13 = pnand %p6169_p11, %p6165_p4 }
 0x137   : > { %6173 = shalt.err (!%p6170_p13)
}
 0x138   : > { %5450 = dma.hbm_to_vmem [thread:$0]  (!%p6633_p12), %s1283_s10, 2048, %s1285_s16, [#allocation24], %s6328_s23, %s6328_s23, %s6329_s15  }
 0x139   : > { %1345 = sbr.rel (%p6624_p10) target bundleno = 10975 (0x2adf), region = 184 }
 0x13e   : > { %6234 = dma.done.wait (%p5455_p9), [#allocation3], 128  }
 0x13f   : > { %6236 = vsyncadd (%p5455_p9), [#allocation3], 4294967168 }
 0x140   : > { %6238 = dma.done.wait (%p5455_p9), [#allocation6], 1152  }
 0x141   : > { %6240 = vsyncadd (%p5455_p9), [#allocation6], 4294966144 }
 0x142   : > { %6242 = dma.done.wait (%p5455_p9), [#allocation9], 3072  }
 0x143   : > { %6244 = vsyncadd (%p5455_p9), [#allocation9], 4294964224 }
 0x144   : > { %6246 = dma.done.wait (%p5455_p9), [#allocation12], 1056  }
 0x145   : > { %6248 = vsyncadd (%p5455_p9), [#allocation12], 4294966240 }
 0x146   : > { %6250 = dma.done.wait (%p5455_p9), [#allocation15], 2048  }
 0x147   : > { %6252 = vsyncadd (%p5455_p9), [#allocation15], 4294965248 }
 0x148   : > { %6254 = dma.done.wait (%p5455_p9), [#allocation18], 2048  }
 0x149   : > { %6256 = vsyncadd (%p5455_p9), [#allocation18], 4294965248 }
 0x14a   : > { %6258 = dma.done.wait (%p5455_p9), [#allocation21], 3072  }
 0x14b   : > { %6260 = vsyncadd (%p5455_p9), [#allocation21], 4294964224 }
 0x14c   : > { %6262 = dma.done.wait (%p5455_p9), [#allocation24], 2080  }
 0x14d   : > { %6264 = vsyncadd (%p5455_p9), [#allocation24], 4294965216  ;;  %s7573_s5 = sld [smem:[#allocation36_spill]]  ;;  %p1534_p10 = scmp.lt.s32.totalorder %s6596_s0, 1  ;;  %v6343_v0 = vmov 0   ;;  %vm1609_vm0 = vcmask 1045504   ;;  %v1559_v8 = vlaneseq }
 0x14e   : > { %s7574_s7 = sld [smem:[#allocation37_spill]]  ;;  %5593 = vset.pattern.permute.xlu0 %v6343_v0  ;;  %v1574_v3 = vld [vmem:[#allocation2] sm:$0x3f]  ;;  %v1634_v4 = vld [vmem:[#allocation5] sm:$0xff]  ;;  %vm1635_vm1 = vcmask 64512   ;;  %vm1581_vm2 = vcmask 1041408  }
 0x14f   : > { %s7575_s26 = sld [smem:[#allocation38_spill]]  ;;  %5212 = vmatpush.msk.msra.mxu1 %vm1609_vm0, %v1574_v3  ;;  %1654 = vmatpush.msra.mxu2 %v1634_v4  ;;  %v1560_v9 = vand.u32 127, %v1559_v8  ;;  %vm1605_vm3 = vcmask 48128   ;;  %v6344_v11 = vmov 0.0   ;;  %vm1577_vm5 = vcmask 80896   ;;  %s7460_s18 = smov 72  }
 0x150   : > { %s7576_s2 = sld [smem:[#allocation42_spill]]  ;;  %vm1676_vm7 = vcmask 261120   ;;  %s7484_s6 = smov 120  }
 0x151   : > { %s6868_s23 = scalar_select %p1534_p10, %s6596_s0, 1 }
 0x152   : > { %s7577_s1 = sld [smem:[#allocation44_spill]]  ;;  %s7594_s3 = smov 56  }
 0x153   : > { %s6871_s15 = sshll.u32 %s6868_s23, 3  ;;  %s7578_s9 = sld [smem:[#allocation40_spill]] }
 0x154   : > { %s1537_s22 = scalar_lea.vmem %s7573_s5, %s6871_s15  ;;  %s1541_s28 = scalar_lea.vmem %s7574_s7, %s6871_s15 }
 0x155   : > { %v1558_v1 = vld [vmem:[%s1537_s22] sm:$0xff]  ;;  %s1545_s10 = scalar_lea.vmem %s7575_s26, %s6871_s15  ;;  %s7579_s16 = sld [smem:[#allocation45_spill]] }
 0x156   : > { %1562 = vperm.xlu0 %5593, %v1558_v1   ;;  %v1567_v2 = vld [vmem:[%s1541_s28] sm:$0xff]  ;;  %v1576_v6 = vld [vmem:[%s7576_s2 + $0x8] sm:$0x3]  ;;  %s7486_s7 = smov 96   ;;  %s7480_s26 = smov 80  }
 0x157   : > { %v1633_v5 = vld [vmem:[%s1545_s10] sm:$0xff]  ;;  %5210 = vmatpush.msk.msra.mxu0 %vm1581_vm2, %v1576_v6  ;;  %s7478_s22 = smov 104   ;;  %s7468_s28 = smov 112  }
 0x158   : > { %5214 = vmatmul.msk.f32.vlgmr.msra.gmra.mxu2 %vm1635_vm1, %v1633_v5  ;;  %v1575_v7 = vld [vmem:[%s7576_s2] sm:$0xff]  ;;  %v1666_v15 = vld [vmem:[%s7577_s1 + $0x18] sm:$0xff]  ;;  %v1665_v16 = vld [vmem:[%s7577_s1 + $0x10] sm:$0xff]  ;;  %s7482_s10 = smov 64   ;;  %s7492_s2 = sshll.u32 %s6868_s23, 2 }
 0x159   : > { %1600 = vmatpush.msra.mxu0 %v1575_v7  ;;  %1692 = vmatpush.msra.mxu3 %v1666_v15  ;;  %v1664_v17 = vld [vmem:[%s7577_s1 + $0x8] sm:$0xff]  ;;  %v1663_v18 = vld [vmem:[%s7577_s1] sm:$0xff]  ;;  %s1553_s11 = scalar_lea.vmem %s7578_s9, %s6871_s15  ;;  %s7476_s15 = smov 88  }
 0x15a   : > { %v1660_v23 = vld [vmem:[%s1553_s11] sm:$0xff]  ;;  %s7464_s9 = smov 40   ;;  %s7466_s11 = smov 56  }
 0x15b   : > { %1693 = vmatpush.msra.mxu3 %v1665_v16  ;;  %v5594_v27 = vld [vmem:[%s7579_s16] ss:$0 sm:$0xff]  ;;  %s7598_s5 = sld [smem:[#allocation41_spill]]  ;;  %s7599_s8 = sshll.u32 %s6868_s23, 2 }
 0x15c   : > { %s7604_s23 = smov 16   ;;  %s7605_s13 = smov 120  }
 0x15d   : > { %1694 = vmatpush.msra.mxu3 %v1664_v17  ;;  %s7606_s14 = smov 64   ;;  %s7609_s17 = sld [smem:[#allocation62_spill]] }
 0x15e   : > { %1569 = vperm.xlu0 %5593, %v1567_v2   ;;  %s7611_s19 = sld [smem:[#allocation64_spill]] }
 0x15f   : > { %1695 = vmatpush.msra.mxu3 %v1663_v18  ;;  %s7612_s20 = sld [smem:[#allocation70_spill]] }
 0x160   : > { %s7613_s21 = sld [smem:[#allocation66_spill]] }
 0x161   : > { %s1557_s12 = scalar_lea.vmem %s7598_s5, %s7599_s8  ;;  %s7600_s5 = sld [smem:[#allocation57_spill]] }
 0x162   : > { %s7601_s8 = smov 8   ;;  %s7615_s24 = sld [smem:[#allocation71_spill]] }
 0x1c8   : > { %v1563_v10 = vpop.permute.xlu0 %1562 }
 0x1c9   : > { %vm1564_vm4 = vcmp.eq.s32.totalorder %v1563_v10, %v1560_v9 }
 0x1ca   : > { %v5208_v12 = vsel %vm1564_vm4, 1.0, %v6344_v11 }
 0x1cb   : > { %5213 = vmatmul.msk.f32.vlgmr.msra.gmra.mxu1 %vm1605_vm3, %v5208_v12 }
 0x1d0   : > { %v1570_v13 = vpop.permute.xlu0 %1569 }
 0x1d1   : > { %vm1571_vm6 = vcmp.eq.s32.totalorder %v1570_v13, %v1560_v9 }
 0x1d2   : > { %v5209_v14 = vsel %vm1571_vm6, 1.0, %v6344_v11 }
 0x1d3   : > { %5211 = vmatmul.msk.f32.vlgmr.msra.gmra.mxu0 %vm1577_vm5, %v5209_v14 }
 0x1db   : > { %v1656_v19 = vpop.f32.mrf.mxu2 }
 0x248   : > { %v1630_v20 = vpop.f32.mrf.mxu1 }
 0x250   : > { %v1602_v21 = vpop.f32.mrf.mxu0 }
 0x251   : > { %v1631_v22 = vadd.f32 %v1630_v20, %v1602_v21 }
 0x253   : > { %v1659_v24 = vadd.f32 %v1656_v19, %v1631_v22 }
 0x255   : > { %v6888_v25 = vadd.f32 %v1660_v23, %v1659_v24 }
 0x257   : > { %v1662_v26 = vmax.f32 %v6888_v25, 0.0 }
 0x259   : > { %5215 = vmatmul.msk.f32.vlgmr.msra.gmra.mxu3 %vm1676_vm7, %v1662_v26 }
 0x2dc   : > { %v1697_v28 = vpop.f32.mrf.mxu3 }
 0x2dd   : > { %v6895_v29 = vadd.f32 %v5594_v27, %v1697_v28 }
 0x2df   : > { %1938 = vrot.lane.b32.xlu0 %v6895_v29, %s7460_s18  ;;  %1778 = vrot.lane.b32.xlu2 %v6895_v29, %s7484_s6  ;;  %s7462_s18 = smov 48  }
 0x2e0   : > { %1701 = vrot.lane.b32.xlu1 %v6895_v29, %s7486_s7 }
 0x2e7   : > { %1859 = vrot.lane.b32.xlu2 %v6895_v29, %s7480_s26 }
 0x2e8   : > { %1780 = vrot.lane.b32.xlu1 %v6895_v29, %s7476_s15  ;;  %s7584_s15 = sld [smem:[#allocation51_spill]] }
 0x2ef   : > { %1936 = vrot.lane.b32.xlu2 %v6895_v29, %s7478_s22  ;;  %s7585_s22 = smov %s7584_s15 }
 0x2f0   : > { %1857 = vrot.lane.b32.xlu1 %v6895_v29, %s7468_s28  ;;  %s7580_s28 = sld [smem:[#allocation47_spill]] }
 0x339   : > { %v1779_v30 = vpop.permute.xlu2 %1778 }
 0x341   : > { %v1860_v32 = vpop.permute.xlu2 %1859 }
 0x349   : > { %v1937_v36 = vpop.permute.xlu2 %1936 }
 0x351   : > { %v1939_v34 = vpop.permute.xlu0 %1938 }
 0x352   : > { %v1702_v31 = vpop.permute.xlu1 %1701 }
 0x353   : > { %5216 = vmatpush.xpose.msk.msrb.mxu1 %vm1635_vm1, %v1702_v31 }
 0x356   : > { %5217 = vmatmul.msk.f32.vlgmr.msrb.gmra.mxu1 %vm1635_vm1, %v6895_v29 }
 0x357   : > { %5222 = vmatpush.xpose.msk.msra.mxu1 %vm1635_vm1, %v1860_v32 }
 0x35a   : > { %v1781_v33 = vpop.permute.xlu1 %1780 }
 0x35b   : > { %5219 = vmatpush.xpose.msk.msrb.mxu0 %vm1635_vm1, %v1781_v33 }
 0x35e   : > { %5220 = vmatmul.msk.f32.vlgmr.msrb.gmra.mxu0 %vm1635_vm1, %v1779_v30 }
 0x35f   : > { %5225 = vmatpush.xpose.msk.msra.mxu0 %vm1635_vm1, %v1939_v34 }
 0x362   : > { %v1858_v35 = vpop.permute.xlu1 %1857 }
 0x363   : > { %5223 = vmatmul.msk.f32.vlgmr.msra.gmra.mxu1 %vm1635_vm1, %v1858_v35 }
 0x366   : > { %5226 = vmatmul.msk.f32.vlgmr.msra.gmra.mxu0 %vm1635_vm1, %v1937_v36 }
 0x3d3   : > { %v1724_v37 = vpop.f32.mrf.mxu1 }
 0x3d4   : > { %v1727_v38 = vmul.f32 0.35355338, %v1724_v37 }
 0x3d6   : > { %v1728_v39 = vsel %vm1635_vm1, %v1727_v38, -inf }
 0x3d7   : > { %1729 = vmax.xlane.f32.xlu0 %v1728_v39 }
 0x3db   : > { %v1803_v40 = vpop.f32.mrf.mxu0 }
 0x3dc   : > { %v1806_v41 = vmul.f32 0.35355338, %v1803_v40 }
 0x3de   : > { %v1807_v42 = vsel %vm1635_vm1, %v1806_v41, -inf }
 0x3df   : > { %1808 = vmax.xlane.f32.xlu1 %v1807_v42 }
 0x3e0   : > { %v1882_v43 = vpop.f32.mrf.mxu1 }
 0x3e1   : > { %v1885_v44 = vmul.f32 0.35355338, %v1882_v43 }
 0x3e3   : > { %v1886_v45 = vsel %vm1635_vm1, %v1885_v44, -inf  ;;  %v1961_v46 = vpop.f32.mrf.mxu0 }
 0x3e4   : > { %1887 = vmax.xlane.f32.xlu2 %v1886_v45  ;;  %v1964_v47 = vmul.f32 0.35355338, %v1961_v46 }
 0x3e6   : > { %v1965_v48 = vsel %vm1635_vm1, %v1964_v47, -inf }
 0x3ec   : > { %1966 = vmax.xlane.f32.xlu2 %v1965_v48 }
 0x3f8   : > { %1752 = vrot.lane.b32.xlu1 %v6895_v29, %s7482_s10 }
 0x44a   : > { %v1730_v49 = vpop.xlane.xlu0 %1729 }
 0x44b   : > { %v1731_v50 = vsub.f32 %v1727_v38, %v1730_v49 }
 0x44d   : > { %v1732_v51 = vmul.f32 1.442695, %v1731_v50 }
 0x44f   : > { %5617 = vpow2.f32 %v1732_v51 }
 0x452   : > { %v1809_v52 = vpop.xlane.xlu1 %1808 }
 0x453   : > { %v1810_v53 = vsub.f32 %v1806_v41, %v1809_v52 }
 0x455   : > { %v5618_v54 = vpop.eup %5617  ;;  %v1811_v55 = vmul.f32 1.442695, %v1810_v53 }
 0x456   : > { %v1734_v56 = vsel %vm1635_vm1, %v5618_v54, 0.0 }
 0x457   : > { %5619 = vpow2.f32 %v1811_v55  ;;  %1735 = vadd.xlane.f32.xlu0 %v1734_v56  ;;  %v1888_v57 = vpop.xlane.xlu2 %1887 }
 0x458   : > { %v1889_v58 = vsub.f32 %v1885_v44, %v1888_v57 }
 0x45a   : > { %v1890_v59 = vmul.f32 1.442695, %v1889_v58 }
 0x45c   : > { %5621 = vpow2.f32 %v1890_v59 }
 0x45d   : > { %v6927_v60 = vpop.eup %5619 }
 0x45e   : > { %v1813_v61 = vsel %vm1635_vm1, %v6927_v60, 0.0 }
 0x45f   : > { %v1967_v62 = vpop.xlane.xlu2 %1966  ;;  %1814 = vadd.xlane.f32.xlu1 %v1813_v61 }
 0x460   : > { %v1968_v63 = vsub.f32 %v1964_v47, %v1967_v62 }
 0x462   : > { %v6931_v0 = vpop.eup %5621  ;;  %v1969_v1 = vmul.f32 1.442695, %v1968_v63  ;;  %v1671_v63 = vld [vmem:[#allocation7 + $0x18] sm:$0xff] }
 0x463   : > { %v1892_v2 = vsel %vm1635_vm1, %v6931_v0, 0.0  ;;  %2050 = vmatpush.msrb.mxu1 %v1671_v63 }
 0x464   : > { %5623 = vpow2.f32 %v1969_v1  ;;  %1893 = vadd.xlane.f32.xlu2 %v1892_v2  ;;  %v1669_v1 = vld [vmem:[#allocation7 + $0x8] sm:$0xff]  ;;  %v1668_v2 = vld [vmem:[#allocation7] sm:$0xff] }
 0x46a   : > { %v6935_v3 = vpop.eup %5623  ;;  %v1753_v4 = vpop.permute.xlu1 %1752 }
 0x46b   : > { %1773 = vmatpush.msrb.mxu2 %v1753_v4  ;;  %v1971_v5 = vsel %vm1635_vm1, %v6935_v3, 0.0 }
 0x46c   : > { %1972 = vadd.xlane.f32.xlu0 %v1971_v5 }
 0x478   : > { %1989 = vrot.lane.b32.xlu1 %v6895_v29, %s7464_s9  ;;  %s7472_s9 = smov 24  }
 0x47c   : > { %1831 = vrot.lane.b32.xlu2 %v6895_v29, %s7466_s11  ;;  %s7470_s11 = smov 16  }
 0x480   : > { %1910 = vrot.lane.b32.xlu0 %v6895_v29, %s7462_s18  ;;  %s7474_s18 = smov 8  }
 0x4ca   : > { %v1736_v6 = vpop.xlane.xlu0 %1735 }
 0x4cb   : > { %5625 = vrcp.f32 %v1736_v6  ;;  %v1748_v12 = vand.u32 2147483648, %v1736_v6  ;;  %v1746_v14 = vand.u32 2147483647, %v1736_v6  ;;  %vm1742_vm9 = vweird.f32 %v1736_v6 }
 0x4cd   : > { %v1749_v17 = vor.u32 1.1754944e-38, %v1748_v12  ;;  %vm1747_vm11 = vcmp.eq.f32.partialorder %v1746_v14, 8.507059e+37  ;;  %v6359_v14 = vmov 32.0  }
 0x4d1   : > { %v5626_v7 = vpop.eup %5625 }
 0x4d2   : > { %v1738_v8 = vmul.f32 %v5626_v7, %v1736_v6  ;;  %v1815_v9 = vpop.xlane.xlu1 %1814  ;;  %vm1743_vm8 = vweird.f32 %v5626_v7 }
 0x4d3   : > { %5627 = vrcp.f32 %v1815_v9  ;;  %vm1744_vm10 = vmor %vm1742_vm9, %vm1743_vm8  ;;  %v1827_v22 = vand.u32 2147483648, %v1815_v9  ;;  %v1825_v28 = vand.u32 2147483647, %v1815_v9  ;;  %vm1821_vm13 = vweird.f32 %v1815_v9 }
 0x4d4   : > { %v1739_v10 = vsub.f32 1.0, %v1738_v8 }
 0x4d5   : > { %v1828_v33 = vor.u32 1.1754944e-38, %v1827_v22  ;;  %vm1826_vm15 = vcmp.eq.f32.partialorder %v1825_v28, 8.507059e+37  ;;  %v2094_v28 = vld [vmem:[#allocation8 + $0x8] sm:$0xff] }
 0x4d6   : > { %v1740_v11 = vmul.f32 %v5626_v7, %v1739_v10 }
 0x4d7   : > { %v1894_v13 = vpop.xlane.xlu2 %1893 }
 0x4d8   : > { %5629 = vrcp.f32 %v1894_v13  ;;  %v1741_v16 = vadd.f32 %v5626_v7, %v1740_v11  ;;  %v1906_v42 = vand.u32 2147483648, %v1894_v13  ;;  %vm1900_vm2 = vweird.f32 %v1894_v13 }
 0x4d9   : > { %v5628_v15 = vpop.eup %5627  ;;  %v1904_v44 = vand.u32 2147483647, %v1894_v13 }
 0x4da   : > { %v1817_v18 = vmul.f32 %v5628_v15, %v1815_v9  ;;  %v1745_v19 = vsel %vm1744_vm10, %v5626_v7, %v1741_v16  ;;  %vm1822_vm12 = vweird.f32 %v5628_v15  ;;  %v1907_v50 = vor.u32 1.1754944e-38, %v1906_v42  ;;  %v5595_v9 = vld [vmem:[%s7580_s28] ss:$0 sm:$0xff] }
 0x4db   : > { %v1750_v21 = vsel %vm1747_vm11, %v1749_v17, %v1745_v19  ;;  %vm1823_vm14 = vmor %vm1821_vm13, %vm1822_vm12  ;;  %vm1905_vm6 = vcmp.eq.f32.partialorder %v1904_v44, 8.507059e+37  ;;  %vm2028_vm10 = vcmask 130048   ;;  %vm2030_vm11 = vcmask 195584  }
 0x4dc   : > { %v1818_v20 = vsub.f32 1.0, %v1817_v18  ;;  %v1751_v23 = vmul.f32 %v5618_v54, %v1750_v21 }
 0x4de   : > { %v5630_v24 = vpop.eup %5629  ;;  %v1819_v27 = vmul.f32 %v5628_v15, %v1818_v20  ;;  %5218 = vmatmul.msk.f32.vlgmr.msrb.gmra.mxu2 %vm1635_vm1, %v1751_v23 }
 0x4df   : > { %v1896_v29 = vmul.f32 %v5630_v24, %v1894_v13  ;;  %v1973_v30 = vpop.xlane.xlu0 %1972  ;;  %v1832_v31 = vpop.permute.xlu2 %1831  ;;  %vm1901_vm0 = vweird.f32 %v5630_v24 }
 0x4e0   : > { %v1820_v32 = vadd.f32 %v5628_v15, %v1819_v27  ;;  %5631 = vrcp.f32 %v1973_v30  ;;  %1852 = vmatpush.msrb.mxu3 %v1832_v31  ;;  %v1985_v45 = vand.u32 2147483648, %v1973_v30  ;;  %vm1902_vm3 = vmor %vm1900_vm2, %vm1901_vm0  ;;  %v1983_v48 = vand.u32 2147483647, %v1973_v30  ;;  %v2095_v27 = vld [vmem:[#allocation8 + $0x10] sm:$0xff] }
 0x4e1   : > { %v1897_v34 = vsub.f32 1.0, %v1896_v29  ;;  %vm1979_vm5 = vweird.f32 %v1973_v30  ;;  %5633 = vrcp.f32 %v6359_v14  ;;  %v2093_v29 = vld [vmem:[#allocation8] sm:$0xff]  ;;  %v2104_v31 = vld [vmem:[#allocation10 + $0x30] sm:$0xff]  ;;  %vm2137_vm0 = vcmask 523264  }
 0x4e2   : > { %v1824_v35 = vsel %vm1823_vm14, %v5628_v15, %v1820_v32  ;;  %v1986_v52 = vor.u32 1.1754944e-38, %v1985_v45  ;;  %vm1984_vm9 = vcmp.eq.f32.partialorder %v1983_v48, 8.507059e+37  ;;  %v2103_v32 = vld [vmem:[#allocation10 + $0x28] sm:$0xff] }
 0x4e3   : > { %v1829_v36 = vsel %vm1826_vm15, %v1828_v33, %v1824_v35  ;;  %v1898_v37 = vmul.f32 %v5630_v24, %v1897_v34  ;;  %v2102_v35 = vld [vmem:[#allocation10 + $0x20] sm:$0xff] }
 0x4e4   : > { %v1830_v38 = vmul.f32 %v6927_v60, %v1829_v36 }
 0x4e5   : > { %v1899_v41 = vadd.f32 %v5630_v24, %v1898_v37  ;;  %v2101_v37 = vld [vmem:[#allocation10 + $0x18] sm:$0xff] }
 0x4e6   : > { %v5632_v39 = vpop.eup %5631  ;;  %5221 = vmatmul.msk.f32.vlgmr.msrb.gmra.mxu3 %vm1635_vm1, %v1830_v38 }
 0x4e7   : > { %v1975_v40 = vmul.f32 %v5632_v39, %v1973_v30  ;;  %vm1980_vm4 = vweird.f32 %v5632_v39  ;;  %v1903_v49 = vsel %vm1902_vm3, %v5630_v24, %v1899_v41  ;;  %v5634_v15 = vpop.eup %5633  ;;  %v2105_v30 = vld [vmem:[#allocation10 + $0x38] sm:$0xff] }
 0x4e8   : > { %vm1981_vm8 = vmor %vm1979_vm5, %vm1980_vm4  ;;  %v1908_v53 = vsel %vm1905_vm6, %v1907_v50, %v1903_v49  ;;  %v2064_v16 = vmul.f32 32.0, %v5634_v15  ;;  %vm2068_vm12 = vweird.f32 %v5634_v15  ;;  %2149 = vmatpush.msrb.mxu0 %v2105_v30 }
 0x4e9   : > { %v1976_v43 = vsub.f32 1.0, %v1975_v40  ;;  %v1909_v58 = vmul.f32 %v6931_v0, %v1908_v53  ;;  %v1670_v0 = vld [vmem:[#allocation7 + $0x10] sm:$0xff]  ;;  %v2098_v53 = vld [vmem:[#allocation10] sm:$0xff] }
 0x4ea   : > { %v1990_v46 = vpop.permute.xlu1 %1989  ;;  %2051 = vmatpush.msrb.mxu1 %v1670_v0  ;;  %v2065_v17 = vsub.f32 1.0, %v2064_v16  ;;  %2150 = vmatpush.msrb.mxu0 %v2104_v31 }
 0x4eb   : > { %v1977_v47 = vmul.f32 %v5632_v39, %v1976_v43  ;;  %2010 = vmatpush.msra.mxu3 %v1990_v46 }
 0x4ec   : > { %2052 = vmatpush.msrb.mxu1 %v1669_v1  ;;  %v2066_v18 = vmul.f32 %v5634_v15, %v2065_v17  ;;  %2151 = vmatpush.msrb.mxu0 %v2103_v32 }
 0x4ed   : > { %v1978_v51 = vadd.f32 %v5632_v39, %v1977_v47 }
 0x4ee   : > { %2053 = vmatpush.msrb.mxu1 %v1668_v2  ;;  %v2067_v19 = vadd.f32 %v5634_v15, %v2066_v18  ;;  %2152 = vmatpush.msrb.mxu0 %v2102_v35 }
 0x4ef   : > { %v1982_v54 = vsel %vm1981_vm8, %v5632_v39, %v1978_v51  ;;  %v2100_v51 = vld [vmem:[#allocation10 + $0x10] sm:$0xff] }
 0x4f0   : > { %v1987_v55 = vsel %vm1984_vm9, %v1986_v52, %v1982_v54  ;;  %v6963_v20 = vsel %vm2068_vm12, %v5634_v15, %v2067_v19  ;;  %2153 = vmatpush.msrb.mxu0 %v2101_v37  ;;  %v2099_v52 = vld [vmem:[#allocation10 + $0x8] sm:$0xff] }
 0x4f1   : > { %v1988_v56 = vmul.f32 %v6935_v3, %v1987_v55 }
 0x4f2   : > { %v1911_v57 = vpop.permute.xlu0 %1910  ;;  %2154 = vmatpush.msrb.mxu0 %v2100_v51 }
 0x4f3   : > { %1931 = vmatpush.msra.mxu2 %v1911_v57  ;;  %5227 = vmatmul.msk.f32.vlgmr.msra.gmra.mxu3 %vm1635_vm1, %v1988_v56 }
 0x4f4   : > { %5224 = vmatmul.msk.f32.vlgmr.msra.gmra.mxu2 %vm1635_vm1, %v1909_v58  ;;  %2155 = vmatpush.msrb.mxu0 %v2099_v52  ;;  %v5597_v58 = vld [vmem:[%s7584_s15] ss:$0 sm:$0xff]  ;;  %s7588_s15 = smov 80  }
 0x4f6   : > { %2156 = vmatpush.msrb.mxu0 %v2098_v53 }
 0x561   : > { %v1775_v60 = vpop.f32.mrf.mxu2 }
 0x569   : > { %v1854_v59 = vpop.f32.mrf.mxu3 }
 0x56a   : > { %2016 = vrot.lane.b32.xlu0 %v1854_v59, %s7474_s18  ;;  %s7583_s18 = sld [smem:[#allocation49_spill]] }
 0x570   : > { %v5596_v54 = vld [vmem:[%s7583_s18] ss:$0 sm:$0xff] }
 0x576   : > { %v2012_v61 = vpop.f32.mrf.mxu3 }
 0x577   : > { %v1933_v62 = vpop.f32.mrf.mxu2  ;;  %2024 = vrot.lane.b32.xlu1 %v2012_v61, %s7472_s9 }
 0x578   : > { %2020 = vrot.lane.b32.xlu2 %v1933_v62, %s7470_s11  ;;  %s7581_s11 = sld [smem:[#allocation52_spill]] }
 0x57e   : > { %s7582_s9 = smov %s7581_s11  ;;  %v2059_v42 = vld [vmem:[%s7581_s11] sm:$0x3]  ;;  %s7586_s11 = sld [smem:[#allocation53_spill]] }
 0x57f   : > { %v2089_v45 = vperm.slane %v2059_v42, 0  ;;  %v2091_v48 = vperm.slane %v2059_v42, 1 }
 0x584   : > { %s7587_s26 = smov %s7586_s11  ;;  %v2162_v15 = vld [vmem:[%s7586_s11] sm:$0x3]  ;;  %s7589_s11 = smov 104  }
 0x585   : > { %v2185_v18 = vperm.slane %v2162_v15, 0 }
 0x5d2   : > { %v2021_v5 = vpop.permute.xlu2 %2020 }
 0x5dc   : > { %v2017_v3 = vpop.permute.xlu0 %2016 }
 0x5dd   : > { %v2027_v4 = vsel %vm1635_vm1, %v1775_v60, %v2017_v3 }
 0x5de   : > { %v2029_v6 = vsel %vm2028_vm10, %v2027_v4, %v2021_v5  ;;  %v5234_v4 = vld [vmem:[%s7577_s1 + $0x38] sm:$0xff]  ;;  %v5233_v5 = vld [vmem:[%s7577_s1 + $0x30] sm:$0xff] }
 0x5df   : > { %2221 = vmatpush.msrb.mxu3 %v5234_v4 }
 0x5e1   : > { %2222 = vmatpush.msrb.mxu3 %v5233_v5 }
 0x5e9   : > { %v2025_v7 = vpop.permute.xlu1 %2024 }
 0x5ea   : > { %v2031_v8 = vsel %vm2030_vm11, %v2029_v6, %v2025_v7  ;;  %v5232_v6 = vld [vmem:[%s7577_s1 + $0x28] sm:$0xff]  ;;  %v5231_v7 = vld [vmem:[%s7577_s1 + $0x20] sm:$0xff]  ;;  %s7593_s1 = sld [smem:[#allocation39_spill]] }
 0x5eb   : > { %5228 = vmatmul.msk.f32.vlgmr.msrb.gmra.mxu1 %vm1676_vm7, %v2031_v8  ;;  %2223 = vmatpush.msrb.mxu3 %v5232_v6 }
 0x5ed   : > { %2224 = vmatpush.msrb.mxu3 %v5231_v7 }
 0x5f0   : > { %s1549_s4 = scalar_lea.vmem %s7593_s1, %s7492_s2  ;;  %s7596_s1 = smov 48  }
 0x5f1   : > { %v2741_v7 = vld [vmem:[%s1549_s4] sm:$0xf]  ;;  %s7595_s4 = smov 40   ;;  %s7597_s2 = sld [smem:[#allocation55_spill]] }
 0x668   : > { %v2055_v10 = vpop.f32.mrf.mxu1 }
 0x669   : > { %v2056_v11 = vadd.f32 %v5595_v9, %v2055_v10 }
 0x66b   : > { %v2058_v12 = vadd.f32 %v2056_v11, %v1662_v26  ;;  %v2096_v26 = vld [vmem:[#allocation8 + $0x18] sm:$0xff] }
 0x66c   : > { %2125 = vmatpush.msrb.mxu2 %v2096_v26 }
 0x66d   : > { %v2060_v13 = vsel %vm1676_vm7, %v2058_v12, 0.0 }
 0x66e   : > { %2061 = vadd.xlane.f32.xlu0 %v2060_v13  ;;  %2126 = vmatpush.msrb.mxu2 %v2095_v27 }
 0x670   : > { %2127 = vmatpush.msrb.mxu2 %v2094_v28 }
 0x672   : > { %2128 = vmatpush.msrb.mxu2 %v2093_v29 }
 0x6e1   : > { %v2062_v21 = vpop.xlane.xlu0 %2061 }
 0x6e2   : > { %v2070_v22 = vmul.f32 %v6963_v20, %v2062_v21 }
 0x6e4   : > { %v2071_v23 = vsub.f32 %v2058_v12, %v2070_v22  ;;  %v2187_v22 = vperm.slane %v2162_v15, 1 }
 0x6e6   : > { %v2072_v24 = vmul.f32 %v2071_v23, %v2071_v23 }
 0x6e8   : > { %v2073_v25 = vsel %vm1676_vm7, %v2072_v24, 0.0 }
 0x6e9   : > { %2074 = vadd.xlane.f32.xlu2 %v2073_v25  ;;  %v5598_v25 = vld [vmem:[%s7579_s16 + $0x1] ss:$0 sm:$0xff]  ;;  %s7608_s16 = sld [smem:[#allocation69_spill]] }
 0x75c   : > { %v2075_v33 = vpop.xlane.xlu2 %2074 }
 0x75d   : > { %v2076_v34 = vmul.f32 %v2075_v33, %v6963_v20 }
 0x75f   : > { %v2077_v36 = vadd.f32 1e-05, %v2076_v34 }
 0x761   : > { %5635 = vrsqrt.f32 %v2077_v36  ;;  %vm2084_vm14 = vweird.f32 %v2077_v36 }
 0x767   : > { %v5636_v38 = vpop.eup %5635 }
 0x768   : > { %v2079_v39 = vmul.f32 %v5636_v38, %v2077_v36  ;;  %vm2085_vm13 = vweird.f32 %v5636_v38 }
 0x769   : > { %vm2086_vm15 = vmor %vm2084_vm14, %vm2085_vm13 }
 0x76a   : > { %v2080_v40 = vmul.f32 %v5636_v38, %v2079_v39 }
 0x76c   : > { %v2081_v41 = vmul.f32 0.5, %v2080_v40 }
 0x76e   : > { %v2082_v43 = vsub.f32 1.5, %v2081_v41 }
 0x770   : > { %v2083_v44 = vmul.f32 %v5636_v38, %v2082_v43 }
 0x772   : > { %v2087_v46 = vsel %vm2086_vm15, %v5636_v38, %v2083_v44 }
 0x773   : > { %v2088_v47 = vmul.f32 %v2087_v46, %v2071_v23 }
 0x775   : > { %v2090_v49 = vmul.f32 %v2089_v45, %v2088_v47 }
 0x777   : > { %v2092_v50 = vadd.f32 %v2091_v48, %v2090_v49 }
 0x779   : > { %5229 = vmatmul.msk.f32.vlgmr.msrb.gmra.mxu2 %vm1676_vm7, %v2092_v50 }
 0x7fc   : > { %v2130_v55 = vpop.f32.mrf.mxu2 }
 0x7fd   : > { %v2131_v56 = vadd.f32 %v5596_v54, %v2130_v55 }
 0x7ff   : > { %v2133_v57 = vmax.f32 %v2131_v56, 0.0 }
 0x801   : > { %5230 = vmatmul.msk.f32.vlgmr.msrb.gmra.mxu0 %vm2137_vm0, %v2133_v57 }
 0x87e   : > { %v2158_v59 = vpop.f32.mrf.mxu0 }
 0x87f   : > { %v2159_v60 = vadd.f32 %v5597_v58, %v2158_v59 }
 0x881   : > { %v2161_v61 = vadd.f32 %v2159_v60, %v2092_v50 }
 0x883   : > { %v2163_v62 = vsel %vm1676_vm7, %v2161_v61, 0.0 }
 0x884   : > { %2164 = vadd.xlane.f32.xlu1 %v2163_v62 }
 0x8f7   : > { %v2165_v63 = vpop.xlane.xlu1 %2164 }
 0x8f8   : > { %v2166_v0 = vmul.f32 %v2165_v63, %v6963_v20 }
 0x8fa   : > { %v2167_v1 = vsub.f32 %v2161_v61, %v2166_v0 }
 0x8fc   : > { %v2168_v2 = vmul.f32 %v2167_v1, %v2167_v1 }
 0x8fe   : > { %v2169_v3 = vsel %vm1676_vm7, %v2168_v2, 0.0 }
 0x8ff   : > { %2170 = vadd.xlane.f32.xlu0 %v2169_v3 }
 0x972   : > { %v2171_v8 = vpop.xlane.xlu0 %2170 }
 0x973   : > { %v2172_v9 = vmul.f32 %v2171_v8, %v6963_v20 }
 0x975   : > { %v2173_v10 = vadd.f32 1e-05, %v2172_v9 }
 0x977   : > { %5637 = vrsqrt.f32 %v2173_v10  ;;  %vm2180_vm3 = vweird.f32 %v2173_v10 }
 0x97d   : > { %v5638_v11 = vpop.eup %5637 }
 0x97e   : > { %v2175_v12 = vmul.f32 %v5638_v11, %v2173_v10  ;;  %vm2181_vm2 = vweird.f32 %v5638_v11 }
 0x97f   : > { %vm2182_vm4 = vmor %vm2180_vm3, %vm2181_vm2 }
 0x980   : > { %v2176_v13 = vmul.f32 %v5638_v11, %v2175_v12 }
 0x982   : > { %v2177_v14 = vmul.f32 0.5, %v2176_v13 }
 0x984   : > { %v2178_v16 = vsub.f32 1.5, %v2177_v14 }
 0x986   : > { %v2179_v17 = vmul.f32 %v5638_v11, %v2178_v16 }
 0x988   : > { %v2183_v19 = vsel %vm2182_vm4, %v5638_v11, %v2179_v17 }
 0x989   : > { %v2184_v21 = vmul.f32 %v2183_v19, %v2167_v1 }
 0x98b   : > { %v2186_v23 = vmul.f32 %v2185_v18, %v2184_v21 }
 0x98d   : > { %v6982_v24 = vadd.f32 %v2187_v22, %v2186_v23 }
 0x98f   : > { %5237 = vmatmul.msk.f32.vlgmr.msrb.gmra.mxu3 %vm1676_vm7, %v6982_v24 }
 0xa12   : > { %v2226_v26 = vpop.f32.mrf.mxu3 }
 0xa13   : > { %v6987_v27 = vadd.f32 %v5598_v25, %v2226_v26 }
 0xa15   : > { %2281 = vrot.lane.b32.xlu0 %v6987_v27, %s7482_s10  ;;  %2230 = vrot.lane.b32.xlu2 %v6987_v27, %s7486_s7  ;;  %s7590_s10 = smov 88   ;;  %s7592_s7 = smov 72  }
 0xa1d   : > { %2307 = vrot.lane.b32.xlu2 %v6987_v27, %s7484_s6  ;;  %s7591_s6 = smov 112  }
 0xa25   : > { %2388 = vrot.lane.b32.xlu2 %v6987_v27, %s7588_s15 }
 0xa2d   : > { %2465 = vrot.lane.b32.xlu2 %v6987_v27, %s7589_s11 }
 0xa6f   : > { %v2231_v28 = vpop.permute.xlu2 %2230 }
 0xa70   : > { %5238 = vmatpush.xpose.msk.msra.mxu1 %vm1635_vm1, %v2231_v28 }
 0xa73   : > { %5239 = vmatmul.msk.f32.vlgmr.msra.gmra.mxu1 %vm1635_vm1, %v6987_v27 }
 0xa77   : > { %v2308_v29 = vpop.permute.xlu2 %2307 }
 0xa7f   : > { %v2389_v31 = vpop.permute.xlu2 %2388 }
 0xa87   : > { %v2282_v30 = vpop.permute.xlu0 %2281  ;;  %v2466_v54 = vpop.permute.xlu2 %2465 }
 0xa88   : > { %2302 = vmatpush.msra.mxu2 %v2282_v30 }
 0xa8a   : > { %5244 = vmatpush.xpose.msk.msrb.mxu2 %vm1635_vm1, %v2389_v31 }
 0xaf0   : > { %v2253_v32 = vpop.f32.mrf.mxu1 }
 0xaf1   : > { %v2256_v33 = vmul.f32 0.35355338, %v2253_v32 }
 0xaf3   : > { %v2257_v34 = vsel %vm1635_vm1, %v2256_v33, -inf }
 0xaf4   : > { %2258 = vmax.xlane.f32.xlu1 %v2257_v34 }
 0xb0d   : > { %2309 = vrot.lane.b32.xlu1 %v6987_v27, %s7590_s10 }
 0xb15   : > { %2386 = vrot.lane.b32.xlu1 %v6987_v27, %s7591_s6 }
 0xb67   : > { %v2259_v35 = vpop.xlane.xlu1 %2258 }
 0xb68   : > { %v2260_v36 = vsub.f32 %v2256_v33, %v2259_v35 }
 0xb6a   : > { %v2261_v37 = vmul.f32 1.442695, %v2260_v36 }
 0xb6c   : > { %5639 = vpow2.f32 %v2261_v37  ;;  %v2758_v37 = vld [vmem:[#allocation13 + $0x18] sm:$0xff] }
 0xb72   : > { %v5640_v38 = vpop.eup %5639 }
 0xb73   : > { %v2263_v39 = vsel %vm1635_vm1, %v5640_v38, 0.0 }
 0xb74   : > { %2264 = vadd.xlane.f32.xlu0 %v2263_v39 }
 0xb7f   : > { %v2310_v40 = vpop.permute.xlu1 %2309 }
 0xb80   : > { %5241 = vmatpush.xpose.msk.msra.mxu3 %vm1635_vm1, %v2310_v40  ;;  %v2757_v40 = vld [vmem:[#allocation13 + $0x10] sm:$0xff] }
 0xb83   : > { %5242 = vmatmul.msk.f32.vlgmr.msra.gmra.mxu3 %vm1635_vm1, %v2308_v29 }
 0xb87   : > { %v2387_v55 = vpop.permute.xlu1 %2386 }
 0xb88   : > { %2467 = vrot.lane.b32.xlu0 %v6987_v27, %s7592_s7 }
 0xbe7   : > { %v2265_v41 = vpop.xlane.xlu0 %2264 }
 0xbe8   : > { %5641 = vrcp.f32 %v2265_v41  ;;  %v2277_v45 = vand.u32 2147483648, %v2265_v41  ;;  %v2275_v47 = vand.u32 2147483647, %v2265_v41  ;;  %vm2271_vm6 = vweird.f32 %v2265_v41 }
 0xbea   : > { %v2278_v49 = vor.u32 1.1754944e-38, %v2277_v45  ;;  %vm2276_vm9 = vcmp.eq.f32.partialorder %v2275_v47, 8.507059e+37  ;;  %v5599_v47 = vld [vmem:[%s7597_s2] ss:$0 sm:$0xff]  ;;  %s7603_s2 = smov 96  }
 0xbee   : > { %v5642_v42 = vpop.eup %5641 }
 0xbef   : > { %v2267_v43 = vmul.f32 %v5642_v42, %v2265_v41  ;;  %vm2272_vm5 = vweird.f32 %v5642_v42 }
 0xbf0   : > { %vm2273_vm8 = vmor %vm2271_vm6, %vm2272_vm5 }
 0xbf1   : > { %v2268_v44 = vsub.f32 1.0, %v2267_v43  ;;  %v2756_v43 = vld [vmem:[#allocation13 + $0x8] sm:$0xff] }
 0xbf3   : > { %v2269_v46 = vmul.f32 %v5642_v42, %v2268_v44 }
 0xbf5   : > { %v2270_v48 = vadd.f32 %v5642_v42, %v2269_v46  ;;  %v2755_v46 = vld [vmem:[#allocation13] sm:$0xff] }
 0xbf7   : > { %v2274_v50 = vsel %vm2273_vm8, %v5642_v42, %v2270_v48 }
 0xbf8   : > { %v2279_v51 = vsel %vm2276_vm9, %v2278_v49, %v2274_v50 }
 0xbf9   : > { %v2280_v52 = vmul.f32 %v5640_v38, %v2279_v51 }
 0xbfa   : > { %v2468_v53 = vpop.permute.xlu0 %2467 }
 0xbfb   : > { %5240 = vmatmul.msk.f32.vlgmr.msra.gmra.mxu2 %vm1635_vm1, %v2280_v52  ;;  %5247 = vmatpush.xpose.msk.msrb.mxu3 %vm1635_vm1, %v2468_v53 }
 0xbfe   : > { %5248 = vmatmul.msk.f32.vlgmr.msrb.gmra.mxu3 %vm1635_vm1, %v2466_v54 }
 0xc03   : > { %5245 = vmatmul.msk.f32.vlgmr.msrb.gmra.mxu2 %vm1635_vm1, %v2387_v55 }
 0xc06   : > { %v2332_v56 = vpop.f32.mrf.mxu3 }
 0xc07   : > { %v2335_v57 = vmul.f32 0.35355338, %v2332_v56 }
 0xc09   : > { %v2336_v58 = vsel %vm1635_vm1, %v2335_v57, -inf }
 0xc0a   : > { %2337 = vmax.xlane.f32.xlu0 %v2336_v58  ;;  %v2752_v58 = vld [vmem:[%s1557_s12] sm:$0xf]  ;;  %s7602_s12 = smov 24  }
 0xc7d   : > { %v2338_v59 = vpop.xlane.xlu0 %2337 }
 0xc7e   : > { %v2339_v60 = vsub.f32 %v2335_v57, %v2338_v59  ;;  %v7018_v61 = vpop.f32.mrf.mxu2 }
 0xc80   : > { %v2340_v62 = vmul.f32 1.442695, %v2339_v60 }
 0xc81   : > { %v2490_v63 = vpop.f32.mrf.mxu3 }
 0xc82   : > { %5643 = vpow2.f32 %v2340_v62  ;;  %v2493_v0 = vmul.f32 0.35355338, %v2490_v63 }
 0xc84   : > { %v2494_v1 = vsel %vm1635_vm1, %v2493_v0, -inf }
 0xc85   : > { %2495 = vmax.xlane.f32.xlu2 %v2494_v1 }
 0xc86   : > { %v2411_v2 = vpop.f32.mrf.mxu2 }
 0xc87   : > { %v2414_v3 = vmul.f32 0.35355338, %v2411_v2 }
 0xc88   : > { %v5644_v4 = vpop.eup %5643 }
 0xc89   : > { %v2342_v5 = vsel %vm1635_vm1, %v5644_v4, 0.0  ;;  %v2415_v6 = vsel %vm1635_vm1, %v2414_v3, -inf }
 0xc8a   : > { %2343 = vadd.xlane.f32.xlu0 %v2342_v5  ;;  %2416 = vmax.xlane.f32.xlu1 %v2415_v6 }
 0xc9e   : > { %2360 = vrot.lane.b32.xlu0 %v6987_v27, %s7594_s3 }
 0xca6   : > { %2745 = vperm.xlu0 %5593, %v2741_v7  }
 0xcf8   : > { %v2496_v8 = vpop.xlane.xlu2 %2495 }
 0xcf9   : > { %v2497_v9 = vsub.f32 %v2493_v0, %v2496_v8  ;;  %v5600_v8 = vld [vmem:[%s7600_s5] ss:$0 sm:$0xff] }
 0xcfb   : > { %v2498_v10 = vmul.f32 1.442695, %v2497_v9 }
 0xcfd   : > { %5645 = vpow2.f32 %v2498_v10  ;;  %v2344_v11 = vpop.xlane.xlu0 %2343  ;;  %v2417_v12 = vpop.xlane.xlu1 %2416 }
 0xcfe   : > { %5647 = vrcp.f32 %v2344_v11  ;;  %v2418_v13 = vsub.f32 %v2414_v3, %v2417_v12  ;;  %v2356_v21 = vand.u32 2147483648, %v2344_v11  ;;  %v2354_v25 = vand.u32 2147483647, %v2344_v11  ;;  %v2200_v12 = vld [vmem:[#allocation7 + $0x38] sm:$0xff] }
 0xcff   : > { %vm2350_vm13 = vweird.f32 %v2344_v11  ;;  %2577 = vmatpush.msra.mxu2 %v2200_v12 }
 0xd00   : > { %v2419_v14 = vmul.f32 1.442695, %v2418_v13  ;;  %v2357_v29 = vor.u32 1.1754944e-38, %v2356_v21  ;;  %vm2355_vm15 = vcmp.eq.f32.partialorder %v2354_v25, 8.507059e+37  ;;  %v2199_v13 = vld [vmem:[#allocation7 + $0x30] sm:$0xff] }
 0xd01   : > { %2578 = vmatpush.msra.mxu2 %v2199_v13  ;;  %v5601_v25 = vld [vmem:[%s7580_s28 + $0x1] ss:$0 sm:$0xff] }
 0xd02   : > { %5649 = vpow2.f32 %v2419_v14  ;;  %v2198_v14 = vld [vmem:[#allocation7 + $0x28] sm:$0xff] }
 0xd03   : > { %v7029_v15 = vpop.eup %5645  ;;  %2579 = vmatpush.msra.mxu2 %v2198_v14 }
 0xd04   : > { %v5648_v16 = vpop.eup %5647  ;;  %v2500_v17 = vsel %vm1635_vm1, %v7029_v15, 0.0 }
 0xd05   : > { %v2346_v18 = vmul.f32 %v5648_v16, %v2344_v11  ;;  %2501 = vadd.xlane.f32.xlu2 %v2500_v17  ;;  %vm2351_vm12 = vweird.f32 %v5648_v16 }
 0xd06   : > { %vm2352_vm14 = vmor %vm2350_vm13, %vm2351_vm12  ;;  %vm7503_vm13 = vcmask 27648  }
 0xd07   : > { %v2347_v19 = vsub.f32 1.0, %v2346_v18 }
 0xd08   : > { %v7033_v22 = vpop.eup %5649 }
 0xd09   : > { %v2348_v23 = vmul.f32 %v5648_v16, %v2347_v19  ;;  %v2421_v26 = vsel %vm1635_vm1, %v7033_v22, 0.0 }
 0xd0a   : > { %2422 = vadd.xlane.f32.xlu1 %v2421_v26 }
 0xd0b   : > { %v2349_v28 = vadd.f32 %v5648_v16, %v2348_v23 }
 0xd0d   : > { %v2353_v30 = vsel %vm2352_vm14, %v5648_v16, %v2349_v28 }
 0xd0e   : > { %v2358_v31 = vsel %vm2355_vm15, %v2357_v29, %v2353_v30 }
 0xd0f   : > { %v2359_v32 = vmul.f32 %v5644_v4, %v2358_v31 }
 0xd10   : > { %v2361_v33 = vpop.permute.xlu0 %2360 }
 0xd11   : > { %2381 = vmatpush.msrb.mxu1 %v2361_v33 }
 0xd12   : > { %5243 = vmatmul.msk.f32.vlgmr.msrb.gmra.mxu1 %vm1635_vm1, %v2359_v32 }
 0xd18   : > { %v2746_v50 = vpop.permute.xlu0 %2745 }
 0xd19   : > { %v2751_v55 = vmul.f32 %v5599_v47, %v2746_v50 }
 0xd1b   : > { %v7048_v62 = vadd.f32 %v2752_v58, %v2751_v55 }
 0xd1d   : > { %2518 = vrot.lane.b32.xlu2 %v6987_v27, %s7595_s4  ;;  %v2754_v3 = vmax.f32 %v7048_v62, 0.0  ;;  %v3191_v62 = vld [vmem:[#allocation17 + $0x18] sm:$0xff] }
 0xd23   : > { %2439 = vrot.lane.b32.xlu1 %v6987_v27, %s7596_s1 }
 0xd78   : > { %v2502_v34 = vpop.xlane.xlu2 %2501 }
 0xd79   : > { %5651 = vrcp.f32 %v2502_v34  ;;  %v2514_v42 = vand.u32 2147483648, %v2502_v34  ;;  %v2512_v27 = vand.u32 2147483647, %v2502_v34  ;;  %vm2508_vm3 = vweird.f32 %v2502_v34 }
 0xd7b   : > { %v2515_v51 = vor.u32 1.1754944e-38, %v2514_v42  ;;  %vm2513_vm5 = vcmp.eq.f32.partialorder %v2512_v27, 8.507059e+37  ;;  %v2617_v27 = vld [vmem:[#allocation8 + $0x30] sm:$0xff] }
 0xd7d   : > { %v2423_v35 = vpop.xlane.xlu1 %2422 }
 0xd7e   : > { %5653 = vrcp.f32 %v2423_v35  ;;  %v2435_v60 = vand.u32 2147483648, %v2423_v35  ;;  %vm2429_vm8 = vweird.f32 %v2423_v35  ;;  %v2433_v63 = vand.u32 2147483647, %v2423_v35 }
 0xd7f   : > { %v5652_v36 = vpop.eup %5651 }
 0xd80   : > { %v2504_v38 = vmul.f32 %v5652_v36, %v2502_v34  ;;  %v2519_v39 = vpop.permute.xlu2 %2518  ;;  %vm2509_vm2 = vweird.f32 %v5652_v36  ;;  %v2436_v2 = vor.u32 1.1754944e-38, %v2435_v60  ;;  %vm2434_vm12 = vcmp.eq.f32.partialorder %v2433_v63, 8.507059e+37 }
 0xd81   : > { %2539 = vmatpush.msra.mxu1 %v2519_v39  ;;  %vm2510_vm4 = vmor %vm2508_vm3, %vm2509_vm2  ;;  %vm7504_vm3 = vcmask 1043456  }
 0xd82   : > { %v2505_v41 = vsub.f32 1.0, %v2504_v38 }
 0xd83   : > { %2783 = vmatpush.msrb.mxu1 %v2758_v37 }
 0xd84   : > { %v2506_v44 = vmul.f32 %v5652_v36, %v2505_v41  ;;  %v5654_v45 = vpop.eup %5653 }
 0xd85   : > { %2784 = vmatpush.msrb.mxu1 %v2757_v40  ;;  %v2425_v49 = vmul.f32 %v5654_v45, %v2423_v35  ;;  %vm2430_vm6 = vweird.f32 %v5654_v45 }
 0xd86   : > { %v2507_v48 = vadd.f32 %v5652_v36, %v2506_v44  ;;  %vm2431_vm9 = vmor %vm2429_vm8, %vm2430_vm6  ;;  %v2618_v44 = vld [vmem:[#allocation8 + $0x38] sm:$0xff] }
 0xd87   : > { %2785 = vmatpush.msrb.mxu1 %v2756_v43  ;;  %v2426_v53 = vsub.f32 1.0, %v2425_v49 }
 0xd88   : > { %v2511_v52 = vsel %vm2510_vm4, %v5652_v36, %v2507_v48 }
 0xd89   : > { %2786 = vmatpush.msrb.mxu1 %v2755_v46  ;;  %v2516_v54 = vsel %vm2513_vm5, %v2515_v51, %v2511_v52  ;;  %v2427_v56 = vmul.f32 %v5654_v45, %v2426_v53  ;;  %v2615_v46 = vld [vmem:[#allocation8 + $0x20] sm:$0xff] }
 0xd8a   : > { %v2517_v57 = vmul.f32 %v7029_v15, %v2516_v54  ;;  %v2197_v15 = vld [vmem:[#allocation7 + $0x20] sm:$0xff] }
 0xd8b   : > { %v2428_v59 = vadd.f32 %v5654_v45, %v2427_v56  ;;  %2580 = vmatpush.msra.mxu2 %v2197_v15  ;;  %v5251_v56 = vld [vmem:[%s7582_s9 + $0x2] sm:$0x3]  ;;  %s7607_s9 = sld [smem:[#allocation59_spill]] }
 0xd8c   : > { %5249 = vmatmul.msk.f32.vlgmr.msra.gmra.mxu1 %vm1635_vm1, %v2517_v57  ;;  %v2610_v60 = vperm.slane %v5251_v56, 0 }
 0xd8d   : > { %v2432_v1 = vsel %vm2431_vm9, %v5654_v45, %v2428_v59  ;;  %v2616_v45 = vld [vmem:[#allocation8 + $0x28] sm:$0xff]  ;;  %vm7502_vm9 = vcmask 31744  }
 0xd8e   : > { %v2437_v4 = vsel %vm2434_vm12, %v2436_v2, %v2432_v1 }
 0xd8f   : > { %v2383_v0 = vpop.f32.mrf.mxu1  ;;  %v2438_v6 = vmul.f32 %v7033_v22, %v2437_v4 }
 0xd90   : > { %2545 = vrot.lane.b32.xlu1 %v2383_v0, %s7601_s8 }
 0xd94   : > { %5257 = vmatmul.msk.f32.vlgmr.msrb.gmra.mxu1 %vm1676_vm7, %v2754_v3 }
 0xd95   : > { %v2440_v5 = vpop.permute.xlu1 %2439 }
 0xd96   : > { %2460 = vmatpush.msra.mxu0 %v2440_v5 }
 0xd97   : > { %5246 = vmatmul.msk.f32.vlgmr.msra.gmra.mxu0 %vm1635_vm1, %v2438_v6 }
 0xd98   : > { %2650 = vmatpush.msrb.mxu0 %v2618_v44 }
 0xd9a   : > { %2651 = vmatpush.msrb.mxu0 %v2617_v27 }
 0xd9c   : > { %2652 = vmatpush.msrb.mxu0 %v2616_v45 }
 0xd9e   : > { %2653 = vmatpush.msrb.mxu0 %v2615_v46 }
 0xe02   : > { %v2546_v16 = vpop.permute.xlu1 %2545 }
 0xe03   : > { %v2556_v18 = vsel %vm1635_vm1, %v7018_v61, %v2546_v16 }
 0xe09   : > { %v2541_v7 = vpop.f32.mrf.mxu1 }
 0xe0a   : > { %2553 = vrot.lane.b32.xlu2 %v2541_v7, %s7602_s12  ;;  %v2612_v7 = vperm.slane %v5251_v56, 1 }
 0xe11   : > { %v2788_v9 = vpop.f32.mrf.mxu1 }
 0xe12   : > { %v7059_v10 = vadd.f32 %v5600_v8, %v2788_v9 }
 0xe14   : > { %2792 = vrot.lane.b32.xlu1 %v7059_v10, %s7603_s2  ;;  %v2462_v11 = vpop.f32.mrf.mxu0 }
 0xe15   : > { %2549 = vrot.lane.b32.xlu0 %v2462_v11, %s7604_s23 }
 0xe64   : > { %v2554_v21 = vpop.permute.xlu2 %2553 }
 0xe86   : > { %v2793_v17 = vpop.permute.xlu1 %2792 }
 0xe87   : > { %5258 = vmatpush.xpose.msk.msrb.mxu2 %vm1635_vm1, %v2793_v17  ;;  %v2550_v19 = vpop.permute.xlu0 %2549 }
 0xe88   : > { %v2557_v22 = vsel %vm2028_vm10, %v2556_v18, %v2550_v19 }
 0xe89   : > { %v2558_v23 = vsel %vm2030_vm11, %v2557_v22, %v2554_v21 }
 0xe8a   : > { %5250 = vmatmul.msk.f32.vlgmr.msra.gmra.mxu2 %vm1676_vm7, %v2558_v23 }
 0xe92   : > { %5259 = vmatmul.msk.f32.vlgmr.msrb.gmra.mxu2 %vm1635_vm1, %v7059_v10 }
 0xf0d   : > { %v2582_v26 = vpop.f32.mrf.mxu2 }
 0xf0e   : > { %v2583_v28 = vadd.f32 %v5601_v25, %v2582_v26  ;;  %v2629_v25 = vld [vmem:[#allocation10 + $0x78] sm:$0xff]  ;;  %v2628_v26 = vld [vmem:[#allocation10 + $0x70] sm:$0xff] }
 0xf0f   : > { %2673 = vmatpush.msra.mxu3 %v2629_v25 }
 0xf10   : > { %v2585_v29 = vadd.f32 %v2583_v28, %v6982_v24  ;;  %v2627_v28 = vld [vmem:[#allocation10 + $0x68] sm:$0xff] }
 0xf11   : > { %2674 = vmatpush.msra.mxu3 %v2628_v26 }
 0xf12   : > { %v2588_v30 = vsel %vm1676_vm7, %v2585_v29, 0.0 }
 0xf13   : > { %2589 = vadd.xlane.f32.xlu0 %v2588_v30  ;;  %2675 = vmatpush.msra.mxu3 %v2627_v28  ;;  %v2625_v30 = vld [vmem:[#allocation10 + $0x58] sm:$0xff] }
 0xf15   : > { %v2815_v61 = vpop.f32.mrf.mxu2 }
 0xf16   : > { %v2818_v31 = vmul.f32 0.35355338, %v2815_v61  ;;  %v2624_v61 = vld [vmem:[#allocation10 + $0x50] sm:$0xff] }
 0xf18   : > { %v2820_v32 = vsel %vm7503_vm13, %v2818_v31, -inf }
 0xf19   : > { %2821 = vmax.xlane.f32.xlu2 %v2820_v32  ;;  %v2622_v32 = vld [vmem:[#allocation10 + $0x40] sm:$0xff] }
 0xf27   : > { %2873 = vrot.lane.b32.xlu0 %v7059_v10, %s7605_s13 }
 0xf31   : > { %2875 = vrot.lane.b32.xlu2 %v7059_v10, %s7590_s10 }
 0xf39   : > { %2955 = vrot.lane.b32.xlu2 %v7059_v10, %s7588_s15 }
 0xf41   : > { %3033 = vrot.lane.b32.xlu2 %v7059_v10, %s7589_s11 }
 0xf86   : > { %v2590_v24 = vpop.xlane.xlu0 %2589 }
 0xf87   : > { %v2591_v33 = vmul.f32 %v2590_v24, %v6963_v20 }
 0xf89   : > { %v2592_v34 = vsub.f32 %v2585_v29, %v2591_v33  ;;  %v2626_v29 = vld [vmem:[#allocation10 + $0x60] sm:$0xff] }
 0xf8a   : > { %2676 = vmatpush.msra.mxu3 %v2626_v29 }
 0xf8b   : > { %v2593_v35 = vmul.f32 %v2592_v34, %v2592_v34 }
 0xf8c   : > { %v2822_v36 = vpop.xlane.xlu2 %2821  ;;  %2677 = vmatpush.msra.mxu3 %v2625_v30 }
 0xf8d   : > { %v2823_v37 = vsub.f32 %v2818_v31, %v2822_v36  ;;  %v2594_v38 = vsel %vm1676_vm7, %v2593_v35, 0.0  ;;  %v2623_v31 = vld [vmem:[#allocation10 + $0x48] sm:$0xff]  ;;  %v5602_v35 = vld [vmem:[%s7583_s18 + $0x1] ss:$0 sm:$0xff]  ;;  %s7610_s18 = sld [smem:[#allocation60_spill]] }
 0xf8e   : > { %2595 = vadd.xlane.f32.xlu1 %v2594_v38  ;;  %2678 = vmatpush.msra.mxu3 %v2624_v61 }
 0xf8f   : > { %v2824_v39 = vmul.f32 1.442695, %v2823_v37 }
 0xf90   : > { %2679 = vmatpush.msra.mxu3 %v2623_v31 }
 0xf91   : > { %5655 = vpow2.f32 %v2824_v39 }
 0xf92   : > { %2680 = vmatpush.msra.mxu3 %v2622_v32 }
 0xf94   : > { %v2876_v40 = vpop.permute.xlu2 %2875 }
 0xf95   : > { %5262 = vmatpush.xpose.msk.msra.mxu1 %vm1635_vm1, %v2876_v40 }
 0xf97   : > { %v7087_v41 = vpop.eup %5655 }
 0xf98   : > { %v2826_v42 = vsel %vm7503_vm13, %v7087_v41, 0.0 }
 0xf99   : > { %v2874_v43 = vpop.permute.xlu0 %2873  ;;  %2827 = vadd.xlane.f32.xlu0 %v2826_v42 }
 0xf9a   : > { %5263 = vmatmul.msk.f32.vlgmr.msra.gmra.mxu1 %vm1635_vm1, %v2874_v43 }
 0xf9c   : > { %v2956_v2 = vpop.permute.xlu2 %2955 }
 0xfa4   : > { %v3034_v21 = vpop.permute.xlu2 %3033 }
 0xfa7   : > { %2844 = vrot.lane.b32.xlu1 %v7059_v10, %s7606_s14 }
 0xfad   : > { %3035 = vrot.lane.b32.xlu0 %v7059_v10, %s7592_s7 }
 0xfaf   : > { %2953 = vrot.lane.b32.xlu1 %v7059_v10, %s7591_s6 }
0x1001   : > { %v2596_v47 = vpop.xlane.xlu1 %2595 }
0x1002   : > { %v2597_v48 = vmul.f32 %v2596_v47, %v6963_v20 }
0x1004   : > { %v2598_v49 = vadd.f32 1e-05, %v2597_v48 }
0x1006   : > { %5657 = vrsqrt.f32 %v2598_v49  ;;  %vm2605_vm15 = vweird.f32 %v2598_v49 }
0x100c   : > { %v5658_v50 = vpop.eup %5657  ;;  %v2828_v51 = vpop.xlane.xlu0 %2827 }
0x100d   : > { %v2600_v52 = vmul.f32 %v5658_v50, %v2598_v49  ;;  %5659 = vrcp.f32 %v2828_v51  ;;  %vm2606_vm14 = vweird.f32 %v5658_v50  ;;  %v2840_v13 = vand.u32 2147483648, %v2828_v51 }
0x100e   : > { %vm2607_vm2 = vmor %vm2605_vm15, %vm2606_vm14  ;;  %vm2834_vm5 = vweird.f32 %v2828_v51  ;;  %v2838_v14 = vand.u32 2147483647, %v2828_v51 }
0x100f   : > { %v2601_v53 = vmul.f32 %v5658_v50, %v2600_v52  ;;  %v2841_v17 = vor.u32 1.1754944e-38, %v2840_v13 }
0x1010   : > { %vm2839_vm8 = vcmp.eq.f32.partialorder %v2838_v14, 8.507059e+37 }
0x1011   : > { %v2602_v54 = vmul.f32 0.5, %v2601_v53 }
0x1013   : > { %v5660_v55 = vpop.eup %5659  ;;  %v2603_v57 = vsub.f32 1.5, %v2602_v54 }
0x1014   : > { %v2830_v58 = vmul.f32 %v5660_v55, %v2828_v51  ;;  %vm2835_vm4 = vweird.f32 %v5660_v55 }
0x1015   : > { %v2604_v59 = vmul.f32 %v5658_v50, %v2603_v57  ;;  %vm2836_vm6 = vmor %vm2834_vm5, %vm2835_vm4 }
0x1016   : > { %v2831_v63 = vsub.f32 1.0, %v2830_v58 }
0x1017   : > { %v2608_v0 = vsel %vm2607_vm2, %v5658_v50, %v2604_v59  ;;  %v2898_v1 = vpop.f32.mrf.mxu1 }
0x1018   : > { %v2609_v4 = vmul.f32 %v2608_v0, %v2592_v34  ;;  %v2832_v5 = vmul.f32 %v5660_v55, %v2831_v63  ;;  %v2901_v6 = vmul.f32 0.35355338, %v2898_v1 }
0x1019   : > { %v2845_v8 = vpop.permute.xlu1 %2844 }
0x101a   : > { %v2611_v9 = vmul.f32 %v2610_v60, %v2609_v4  ;;  %v2833_v11 = vadd.f32 %v5660_v55, %v2832_v5  ;;  %5260 = vmatpush.msk.msra.mxu0 %vm7504_vm3, %v2845_v8  ;;  %v2902_v12 = vsel %vm7503_vm13, %v2901_v6, -inf }
0x101b   : > { %2903 = vmax.xlane.f32.xlu0 %v2902_v12 }
0x101c   : > { %v7102_v15 = vadd.f32 %v2612_v7, %v2611_v9  ;;  %v2837_v16 = vsel %vm2836_vm6, %v5660_v55, %v2833_v11  ;;  %v5603_v9 = vld [vmem:[%s7585_s22 + $0x1] ss:$0 sm:$0xff]  ;;  %s7614_s22 = sld [smem:[#allocation68_spill]] }
0x101d   : > { %v2842_v19 = vsel %vm2839_vm8, %v2841_v17, %v2837_v16 }
0x101e   : > { %5254 = vmatmul.msk.f32.vlgmr.msrb.gmra.mxu0 %vm1676_vm7, %v7102_v15  ;;  %v2843_v22 = vmul.f32 %v7087_v41, %v2842_v19 }
0x101f   : > { %5266 = vmatpush.xpose.msk.msrb.mxu0 %vm1635_vm1, %v2956_v2  ;;  %v3036_v18 = vpop.permute.xlu0 %3035 }
0x1020   : > { %5270 = vmatpush.xpose.msk.msrb.mxu1 %vm1635_vm1, %v3036_v18 }
0x1021   : > { %v2954_v23 = vpop.permute.xlu1 %2953 }
0x1023   : > { %5271 = vmatmul.msk.f32.vlgmr.msrb.gmra.mxu1 %vm1635_vm1, %v3034_v21 }
0x1024   : > { %3242 = vmatpush.msra.mxu1 %v3191_v62 }
0x1026   : > { %5261 = vmatmul.msk.f32.vlgmr.msra.gmra.mxu0 %vm7502_vm9, %v2843_v22 }
0x102e   : > { %5267 = vmatmul.msk.f32.vlgmr.msrb.gmra.mxu0 %vm1635_vm1, %v2954_v23 }
0x108e   : > { %v2904_v24 = vpop.xlane.xlu0 %2903 }
0x108f   : > { %v2905_v33 = vsub.f32 %v2901_v6, %v2904_v24 }
0x1091   : > { %v2906_v34 = vmul.f32 1.442695, %v2905_v33 }
0x1093   : > { %5661 = vpow2.f32 %v2906_v34 }
0x1099   : > { %v5662_v36 = vpop.eup %5661 }
0x109a   : > { %v2908_v37 = vsel %vm7503_vm13, %v5662_v36, 0.0 }
0x109b   : > { %2909 = vadd.xlane.f32.xlu0 %v2908_v37  ;;  %v2655_v38 = vpop.f32.mrf.mxu0 }
0x109c   : > { %v2656_v39 = vadd.f32 %v5602_v35, %v2655_v38 }
0x109e   : > { %v2658_v40 = vmax.f32 %v2656_v39, 0.0 }
0x10a0   : > { %5255 = vmatmul.msk.f32.vlgmr.msra.gmra.mxu3 %vm2137_vm0, %v2658_v40  ;;  %v3058_v41 = vpop.f32.mrf.mxu1 }
0x10a1   : > { %v3061_v42 = vmul.f32 0.35355338, %v3058_v41 }
0x10a3   : > { %v7115_v43 = vpop.f32.mrf.mxu0  ;;  %v3062_v44 = vsel %vm7503_vm13, %v3061_v42, -inf }
0x10a4   : > { %3063 = vmax.xlane.f32.xlu2 %v3062_v44 }
0x10ab   : > { %v2978_v27 = vpop.f32.mrf.mxu0 }
0x10ac   : > { %v2981_v45 = vmul.f32 0.35355338, %v2978_v27 }
0x10ae   : > { %v2982_v46 = vsel %vm7503_vm13, %v2981_v45, -inf }
0x10af   : > { %2926 = vrot.lane.b32.xlu0 %v7059_v10, %s7594_s3  ;;  %2983 = vmax.xlane.f32.xlu1 %v2982_v46 }
0x110e   : > { %v2910_v47 = vpop.xlane.xlu0 %2909 }
0x110f   : > { %5663 = vrcp.f32 %v2910_v47  ;;  %v2922_v53 = vand.u32 2147483648, %v2910_v47  ;;  %v2920_v55 = vand.u32 2147483647, %v2910_v47  ;;  %vm2916_vm14 = vweird.f32 %v2910_v47 }
0x1111   : > { %v2923_v58 = vor.u32 1.1754944e-38, %v2922_v53  ;;  %vm2921_vm2 = vcmp.eq.f32.partialorder %v2920_v55, 8.507059e+37 }
0x1115   : > { %v5664_v48 = vpop.eup %5663 }
0x1116   : > { %v2912_v49 = vmul.f32 %v5664_v48, %v2910_v47  ;;  %vm2917_vm12 = vweird.f32 %v5664_v48 }
0x1117   : > { %v3064_v50 = vpop.xlane.xlu2 %3063  ;;  %vm2918_vm15 = vmor %vm2916_vm14, %vm2917_vm12 }
0x1118   : > { %v2913_v51 = vsub.f32 1.0, %v2912_v49  ;;  %v3065_v52 = vsub.f32 %v3061_v42, %v3064_v50  ;;  %v2763_v49 = vld [vmem:[#allocation14 + $0x18] sm:$0xff]  ;;  %v2762_v50 = vld [vmem:[#allocation14 + $0x10] sm:$0xff] }
0x1119   : > { %3146 = vmatpush.msra.mxu0 %v2763_v49  ;;  %v3185_v49 = vld [vmem:[#allocation16 + $0x10] sm:$0xff] }
0x111a   : > { %v2914_v54 = vmul.f32 %v5664_v48, %v2913_v51  ;;  %v3066_v56 = vmul.f32 1.442695, %v3065_v52  ;;  %v2761_v51 = vld [vmem:[#allocation14 + $0x8] sm:$0xff]  ;;  %v2760_v52 = vld [vmem:[#allocation14] sm:$0xff] }
0x111b   : > { %3147 = vmatpush.msra.mxu0 %v2762_v50  ;;  %v3184_v50 = vld [vmem:[#allocation16 + $0x8] sm:$0xff] }
0x111c   : > { %v2915_v57 = vadd.f32 %v5664_v48, %v2914_v54  ;;  %5665 = vpow2.f32 %v3066_v56 }
0x111d   : > { %3148 = vmatpush.msra.mxu0 %v2761_v51  ;;  %v3183_v51 = vld [vmem:[#allocation16] sm:$0xff] }
0x111e   : > { %v2919_v59 = vsel %vm2918_vm15, %v5664_v48, %v2915_v57 }
0x111f   : > { %v2924_v60 = vsel %vm2921_vm2, %v2923_v58, %v2919_v59  ;;  %3149 = vmatpush.msra.mxu0 %v2760_v52 }
0x1120   : > { %v2925_v63 = vmul.f32 %v5662_v36, %v2924_v60 }
0x1121   : > { %v2927_v0 = vpop.permute.xlu0 %2926 }
0x1122   : > { %v5666_v1 = vpop.eup %5665  ;;  %5264 = vmatpush.msk.msra.mxu2 %vm7504_vm3, %v2927_v0  ;;  %v2984_v2 = vpop.xlane.xlu1 %2983 }
0x1123   : > { %v2985_v4 = vsub.f32 %v2981_v45, %v2984_v2  ;;  %5265 = vmatmul.msk.f32.vlgmr.msra.gmra.mxu2 %vm7502_vm9, %v2925_v63  ;;  %v3068_v5 = vsel %vm7503_vm13, %v5666_v1, 0.0  ;;  %v2682_v11 = vpop.f32.mrf.mxu3 }
0x1124   : > { %3069 = vadd.xlane.f32.xlu1 %v3068_v5  ;;  %v2683_v12 = vadd.f32 %v5603_v9, %v2682_v11 }
0x1125   : > { %v2986_v6 = vmul.f32 1.442695, %v2985_v4 }
0x1126   : > { %v2685_v13 = vadd.f32 %v2683_v12, %v7102_v15 }
0x1127   : > { %5667 = vpow2.f32 %v2986_v6 }
0x1128   : > { %v2688_v14 = vsel %vm1676_vm7, %v2685_v13, 0.0 }
0x112d   : > { %v5668_v7 = vpop.eup %5667 }
0x112e   : > { %v2988_v8 = vsel %vm7503_vm13, %v5668_v7, 0.0 }
0x112f   : > { %2989 = vadd.xlane.f32.xlu2 %v2988_v8 }
0x113d   : > { %3086 = vrot.lane.b32.xlu1 %v7059_v10, %s7595_s4 }
0x1147   : > { %3006 = vrot.lane.b32.xlu2 %v7059_v10, %s7596_s1 }
0x1167   : > { %2689 = vadd.xlane.f32.xlu1 %v2688_v14 }
0x1197   : > { %v3070_v16 = vpop.xlane.xlu1 %3069 }
0x1198   : > { %5669 = vrcp.f32 %v3070_v16  ;;  %v3082_v25 = vand.u32 2147483648, %v3070_v16  ;;  %vm3076_vm5 = vweird.f32 %v3070_v16  ;;  %v3080_v26 = vand.u32 2147483647, %v3070_v16 }
0x119a   : > { %v3083_v29 = vor.u32 1.1754944e-38, %v3082_v25  ;;  %vm3081_vm8 = vcmp.eq.f32.partialorder %v3080_v26, 8.507059e+37 }
0x119e   : > { %v5670_v17 = vpop.eup %5669 }
0x119f   : > { %v3072_v18 = vmul.f32 %v5670_v17, %v3070_v16  ;;  %vm3077_vm4 = vweird.f32 %v5670_v17  ;;  %v5604_v16 = vld [vmem:[%s7607_s9] ss:$0 sm:$0xff] }
0x11a0   : > { %vm3078_vm6 = vmor %vm3076_vm5, %vm3077_vm4 }
0x11a1   : > { %v3073_v19 = vsub.f32 1.0, %v3072_v18 }
0x11a2   : > { %v2990_v21 = vpop.xlane.xlu2 %2989 }
0x11a3   : > { %v3074_v22 = vmul.f32 %v5670_v17, %v3073_v19  ;;  %5671 = vrcp.f32 %v2990_v21  ;;  %v3002_v24 = vand.u32 2147483648, %v2990_v21  ;;  %v3000_v34 = vand.u32 2147483647, %v2990_v21 }
0x11a4   : > { %vm2996_vm14 = vweird.f32 %v2990_v21 }
0x11a5   : > { %v3075_v23 = vadd.f32 %v5670_v17, %v3074_v22  ;;  %v3003_v38 = vor.u32 1.1754944e-38, %v3002_v24  ;;  %vm3001_vm2 = vcmp.eq.f32.partialorder %v3000_v34, 8.507059e+37 }
0x11a6   : > { %v2950_v10 = vpop.f32.mrf.mxu2 }
0x11a7   : > { %3114 = vrot.lane.b32.xlu0 %v2950_v10, %s7601_s8  ;;  %v3079_v28 = vsel %vm3078_vm6, %v5670_v17, %v3075_v23 }
0x11a8   : > { %v3084_v31 = vsel %vm3081_vm8, %v3083_v29, %v3079_v28  ;;  %vm3156_vm8 = vcmask 257024  }
0x11a9   : > { %v5672_v15 = vpop.eup %5671  ;;  %v3085_v36 = vmul.f32 %v5666_v1, %v3084_v31  ;;  %v3189_v31 = vld [vmem:[#allocation17 + $0x8] sm:$0xff] }
0x11aa   : > { %v2992_v30 = vmul.f32 %v5672_v15, %v2990_v21  ;;  %v3007_v61 = vpop.permute.xlu2 %3006  ;;  %vm2997_vm12 = vweird.f32 %v5672_v15 }
0x11ab   : > { %5268 = vmatpush.msk.msrb.mxu3 %vm7504_vm3, %v3007_v61  ;;  %vm2998_vm15 = vmor %vm2996_vm14, %vm2997_vm12 }
0x11ac   : > { %v2993_v32 = vsub.f32 1.0, %v2992_v30 }
0x11ae   : > { %v2994_v33 = vmul.f32 %v5672_v15, %v2993_v32  ;;  %v3188_v32 = vld [vmem:[#allocation17] sm:$0xff] }
0x11af   : > { %v3087_v35 = vpop.permute.xlu1 %3086 }
0x11b0   : > { %v2995_v37 = vadd.f32 %v5672_v15, %v2994_v33  ;;  %5272 = vmatpush.msk.msrb.mxu2 %vm7504_vm3, %v3087_v35 }
0x11b1   : > { %5273 = vmatmul.msk.f32.vlgmr.msrb.gmra.mxu2 %vm7502_vm9, %v3085_v36 }
0x11b2   : > { %v2999_v39 = vsel %vm2998_vm15, %v5672_v15, %v2995_v37 }
0x11b3   : > { %v3004_v40 = vsel %vm3001_vm2, %v3003_v38, %v2999_v39  ;;  %v2714_v39 = vld [vmem:[#allocation11] sm:$0x3] }
0x11b4   : > { %v3005_v41 = vmul.f32 %v5668_v7, %v3004_v40 }
0x11b6   : > { %5269 = vmatmul.msk.f32.vlgmr.msrb.gmra.mxu3 %vm7502_vm9, %v3005_v41 }
0x11da   : > { %v2690_v27 = vpop.xlane.xlu1 %2689 }
0x11db   : > { %v2691_v45 = vmul.f32 %v2690_v27, %v6963_v20 }
0x11dd   : > { %v2692_v46 = vsub.f32 %v2685_v13, %v2691_v45  ;;  %v2739_v45 = vperm.slane %v2714_v39, 1 }
0x11df   : > { %v2693_v47 = vmul.f32 %v2692_v46, %v2692_v46 }
0x11e1   : > { %v2694_v48 = vsel %vm1676_vm7, %v2693_v47, 0.0 }
0x1219   : > { %v3115_v53 = vpop.permute.xlu0 %3114 }
0x121a   : > { %v3125_v55 = vsel %vm1635_vm1, %v7115_v43, %v3115_v53  ;;  %v5256_v43 = vld [vmem:[%s7587_s26 + $0x2] sm:$0x3] }
0x121b   : > { %v2710_v7 = vperm.slane %v5256_v43, 0  ;;  %v2712_v11 = vperm.slane %v5256_v43, 1 }
0x1234   : > { %v3110_v42 = vpop.f32.mrf.mxu2 }
0x1235   : > { %3122 = vrot.lane.b32.xlu0 %v3110_v42, %s7602_s12  ;;  %v2737_v42 = vperm.slane %v2714_v39, 0 }
0x1239   : > { %v3030_v44 = vpop.f32.mrf.mxu3 }
0x123a   : > { %3118 = vrot.lane.b32.xlu2 %v3030_v44, %s7604_s23 }
0x1263   : > { %2695 = vadd.xlane.f32.xlu2 %v2694_v48  ;;  %v3186_v48 = vld [vmem:[#allocation16 + $0x18] sm:$0xff] }
0x1264   : > { %3216 = vmatpush.msra.mxu3 %v3186_v48 }
0x1266   : > { %3217 = vmatpush.msra.mxu3 %v3185_v49 }
0x1268   : > { %3218 = vmatpush.msra.mxu3 %v3184_v50 }
0x126a   : > { %3219 = vmatpush.msra.mxu3 %v3183_v51 }
0x1294   : > { %v3119_v54 = vpop.permute.xlu2 %3118 }
0x1295   : > { %v3126_v56 = vsel %vm2028_vm10, %v3125_v55, %v3119_v54 }
0x12a7   : > { %v3123_v57 = vpop.permute.xlu0 %3122 }
0x12a8   : > { %v3127_v58 = vsel %vm2030_vm11, %v3126_v56, %v3123_v57 }
0x12a9   : > { %5274 = vmatmul.msk.f32.vlgmr.msra.gmra.mxu0 %vm1676_vm7, %v3127_v58 }
0x12d6   : > { %v2696_v59 = vpop.xlane.xlu2 %2695 }
0x12d7   : > { %v2697_v60 = vmul.f32 %v2696_v59, %v6963_v20  ;;  %v3155_v59 = vld [vmem:[%s7608_s16] sm:$0x3] }
0x12d9   : > { %v2698_v63 = vadd.f32 1e-05, %v2697_v60 }
0x12db   : > { %5673 = vrsqrt.f32 %v2698_v63  ;;  %vm2705_vm5 = vweird.f32 %v2698_v63 }
0x12e1   : > { %v5674_v0 = vpop.eup %5673 }
0x12e2   : > { %v2700_v1 = vmul.f32 %v5674_v0, %v2698_v63  ;;  %vm2706_vm4 = vweird.f32 %v5674_v0 }
0x12e3   : > { %vm2707_vm6 = vmor %vm2705_vm5, %vm2706_vm4 }
0x12e4   : > { %v2701_v2 = vmul.f32 %v5674_v0, %v2700_v1 }
0x12e6   : > { %v2702_v4 = vmul.f32 0.5, %v2701_v2 }
0x12e8   : > { %v2703_v5 = vsub.f32 1.5, %v2702_v4  ;;  %v3181_v4 = vperm.slane %v3155_v59, 1 }
0x12ea   : > { %v2704_v6 = vmul.f32 %v5674_v0, %v2703_v5 }
0x12ec   : > { %v2708_v8 = vsel %vm2707_vm6, %v5674_v0, %v2704_v6  ;;  %v3179_v0 = vperm.slane %v3155_v59, 0  ;;  %v5605_v6 = vld [vmem:[%s7609_s17] ss:$0 sm:$0xff]  ;;  %vm7501_vm6 = vcmask 60416  }
0x12ed   : > { %v2709_v9 = vmul.f32 %v2708_v8, %v2692_v46 }
0x12ef   : > { %v2711_v12 = vmul.f32 %v2710_v7, %v2709_v9  ;;  %v5606_v9 = vld [vmem:[%s7610_s18] ss:$0 sm:$0xff] }
0x12f1   : > { %v2713_v13 = vadd.f32 %v2712_v11, %v2711_v12 }
0x12f3   : > { %v2715_v14 = vsel %vm1676_vm7, %v2713_v13, 0.0 }
0x12f4   : > { %2716 = vadd.xlane.f32.xlu1 %v2715_v14 }
0x1326   : > { %v3151_v17 = vpop.f32.mrf.mxu0 }
0x1327   : > { %v3152_v18 = vadd.f32 %v5604_v16, %v3151_v17 }
0x1329   : > { %v3154_v19 = vadd.f32 %v3152_v18, %v2754_v3  ;;  %v3190_v3 = vld [vmem:[#allocation17 + $0x10] sm:$0xff] }
0x132a   : > { %3243 = vmatpush.msra.mxu1 %v3190_v3 }
0x132b   : > { %v3157_v21 = vsel %vm3156_vm8, %v3154_v19, 0.0 }
0x132c   : > { %3158 = vadd.xlane.f32.xlu0 %v3157_v21  ;;  %3244 = vmatpush.msra.mxu1 %v3189_v31 }
0x132e   : > { %3245 = vmatpush.msra.mxu1 %v3188_v32 }
0x1367   : > { %v2717_v22 = vpop.xlane.xlu1 %2716 }
0x1368   : > { %v2718_v23 = vmul.f32 %v2717_v22, %v6963_v20 }
0x136a   : > { %v2719_v25 = vsub.f32 %v2713_v13, %v2718_v23 }
0x136c   : > { %v2720_v10 = vmul.f32 %v2719_v25, %v2719_v25 }
0x136e   : > { %v2721_v26 = vsel %vm1676_vm7, %v2720_v10, 0.0 }
0x136f   : > { %2722 = vadd.xlane.f32.xlu0 %v2721_v26 }
0x139f   : > { %v3159_v15 = vpop.xlane.xlu0 %3158 }
0x13a0   : > { %v3160_v28 = vmul.f32 %v3159_v15, %v6963_v20 }
0x13a2   : > { %v3161_v29 = vsub.f32 %v3154_v19, %v3160_v28 }
0x13a4   : > { %v3162_v30 = vmul.f32 %v3161_v29, %v3161_v29 }
0x13a6   : > { %v3163_v61 = vsel %vm3156_vm8, %v3162_v30, 0.0 }
0x13a7   : > { %3164 = vadd.xlane.f32.xlu2 %v3163_v61 }
0x13e2   : > { %v2723_v24 = vpop.xlane.xlu0 %2722 }
0x13e3   : > { %v2724_v33 = vmul.f32 %v2723_v24, %v6963_v20 }
0x13e5   : > { %v2725_v34 = vadd.f32 1e-05, %v2724_v33 }
0x13e7   : > { %5675 = vrsqrt.f32 %v2725_v34  ;;  %vm2732_vm14 = vweird.f32 %v2725_v34 }
0x13ed   : > { %v5676_v35 = vpop.eup %5675 }
0x13ee   : > { %v2727_v36 = vmul.f32 %v5676_v35, %v2725_v34  ;;  %vm2733_vm12 = vweird.f32 %v5676_v35 }
0x13ef   : > { %vm2734_vm15 = vmor %vm2732_vm14, %vm2733_vm12 }
0x13f0   : > { %v2728_v37 = vmul.f32 %v5676_v35, %v2727_v36 }
0x13f2   : > { %v2729_v38 = vmul.f32 0.5, %v2728_v37 }
0x13f4   : > { %v2730_v40 = vsub.f32 1.5, %v2729_v38 }
0x13f6   : > { %v2731_v41 = vmul.f32 %v5676_v35, %v2730_v40 }
0x13f8   : > { %v2735_v44 = vsel %vm2734_vm15, %v5676_v35, %v2731_v41 }
0x13f9   : > { %v2736_v27 = vmul.f32 %v2735_v44, %v2719_v25 }
0x13fb   : > { %v2738_v46 = vmul.f32 %v2737_v42, %v2736_v27 }
0x13fd   : > { %v7158_v47 = vadd.f32 %v2739_v45, %v2738_v46 }
0x13ff   : > { %5276 = vmatmul.msk.f32.vlgmr.msra.gmra.mxu1 %vm1676_vm7, %v7158_v47 }
0x141a   : > { %v3165_v52 = vpop.xlane.xlu2 %3164 }
0x141b   : > { %v3166_v53 = vmul.f32 %v3165_v52, %v6963_v20 }
0x141d   : > { %v3167_v54 = vadd.f32 1e-05, %v3166_v53 }
0x141f   : > { %5677 = vrsqrt.f32 %v3167_v54  ;;  %vm3174_vm4 = vweird.f32 %v3167_v54 }
0x1425   : > { %v5678_v55 = vpop.eup %5677 }
0x1426   : > { %v3169_v56 = vmul.f32 %v5678_v55, %v3167_v54  ;;  %vm3175_vm2 = vweird.f32 %v5678_v55 }
0x1427   : > { %vm3176_vm5 = vmor %vm3174_vm4, %vm3175_vm2 }
0x1428   : > { %v3170_v57 = vmul.f32 %v5678_v55, %v3169_v56 }
0x142a   : > { %v3171_v58 = vmul.f32 0.5, %v3170_v57 }
0x142c   : > { %v3172_v60 = vsub.f32 1.5, %v3171_v58 }
0x142e   : > { %v3173_v63 = vmul.f32 %v5678_v55, %v3172_v60 }
0x1430   : > { %v3177_v1 = vsel %vm3176_vm5, %v5678_v55, %v3173_v63 }
0x1431   : > { %v3178_v2 = vmul.f32 %v3177_v1, %v3161_v29 }
0x1433   : > { %v3180_v5 = vmul.f32 %v3179_v0, %v3178_v2 }
0x1435   : > { %v7164_v43 = vadd.f32 %v3181_v4, %v3180_v5 }
0x1437   : > { %5275 = vmatmul.msk.f32.vlgmr.msra.gmra.mxu3 %vm1676_vm7, %v7164_v43 }
0x147c   : > { %v3247_v7 = vpop.f32.mrf.mxu1 }
0x147d   : > { %v7169_v8 = vadd.f32 %v5605_v6, %v3247_v7 }
0x147f   : > { %3409 = vrot.lane.b32.xlu0 %v7169_v8, %s7591_s6  ;;  %3330 = vrot.lane.b32.xlu1 %v7169_v8, %s7605_s13 }
0x1480   : > { %5277 = vmatpush.xpose.msk.msra.mxu2 %vm1635_vm1, %v7169_v8 }
0x1487   : > { %3488 = vrot.lane.b32.xlu1 %v7169_v8, %s7589_s11 }
0x14ba   : > { %v3221_v11 = vpop.f32.mrf.mxu3 }
0x14bb   : > { %v3222_v12 = vadd.f32 %v5606_v9, %v3221_v11 }
0x14bd   : > { %3407 = vrot.lane.b32.xlu0 %v3222_v12, %s7591_s6  ;;  %3328 = vrot.lane.b32.xlu2 %v3222_v12, %s7605_s13 }
0x14be   : > { %5278 = vmatmul.msk.f32.vlgmr.msra.gmra.mxu2 %vm1635_vm1, %v3222_v12 }
0x14c5   : > { %3486 = vrot.lane.b32.xlu2 %v3222_v12, %s7589_s11 }
0x14f1   : > { %v3410_v13 = vpop.permute.xlu0 %3409  ;;  %v3331_v14 = vpop.permute.xlu1 %3330 }
0x14f2   : > { %5280 = vmatpush.xpose.msk.msrb.mxu3 %vm1635_vm1, %v3331_v14  ;;  %5283 = vmatpush.xpose.msk.msrb.mxu2 %vm1635_vm1, %v3410_v13 }
0x14f9   : > { %v3489_v16 = vpop.permute.xlu1 %3488 }
0x14fa   : > { %5286 = vmatpush.xpose.msk.msra.mxu3 %vm1635_vm1, %v3489_v16 }
0x1517   : > { %v3329_v17 = vpop.permute.xlu2 %3328 }
0x1518   : > { %5281 = vmatmul.msk.f32.vlgmr.msrb.gmra.mxu3 %vm1635_vm1, %v3329_v17 }
0x151f   : > { %v3487_v18 = vpop.permute.xlu2 %3486 }
0x1520   : > { %5287 = vmatmul.msk.f32.vlgmr.msra.gmra.mxu3 %vm1635_vm1, %v3487_v18 }
0x152f   : > { %v3408_v19 = vpop.permute.xlu0 %3407 }
0x1530   : > { %5284 = vmatmul.msk.f32.vlgmr.msrb.gmra.mxu2 %vm1635_vm1, %v3408_v19 }
0x1541   : > { %v3273_v21 = vpop.f32.mrf.mxu2 }
0x1542   : > { %v3276_v22 = vmul.f32 0.35355338, %v3273_v21 }
0x1544   : > { %v3278_v23 = vsel %vm7501_vm6, %v3276_v22, -inf }
0x1545   : > { %3279 = vmax.xlane.f32.xlu1 %v3278_v23 }
0x159b   : > { %v3353_v25 = vpop.f32.mrf.mxu3 }
0x159c   : > { %v3356_v10 = vmul.f32 0.35355338, %v3353_v25 }
0x159e   : > { %v3357_v26 = vsel %vm7501_vm6, %v3356_v10, -inf }
0x159f   : > { %3358 = vmax.xlane.f32.xlu0 %v3357_v26 }
0x15a3   : > { %v3511_v15 = vpop.f32.mrf.mxu3 }
0x15a4   : > { %v3514_v28 = vmul.f32 0.35355338, %v3511_v15 }
0x15a6   : > { %v3515_v29 = vsel %vm7501_vm6, %v3514_v28, -inf }
0x15a7   : > { %3516 = vmax.xlane.f32.xlu1 %v3515_v29 }
0x15b3   : > { %v3432_v30 = vpop.f32.mrf.mxu2 }
0x15b4   : > { %v3435_v61 = vmul.f32 0.35355338, %v3432_v30 }
0x15b6   : > { %v3436_v62 = vsel %vm7501_vm6, %v3435_v61, -inf }
0x15b7   : > { %3437 = vmax.xlane.f32.xlu2 %v3436_v62 }
0x15b8   : > { %v3280_v3 = vpop.xlane.xlu1 %3279 }
0x15b9   : > { %v3281_v31 = vsub.f32 %v3276_v22, %v3280_v3 }
0x15bb   : > { %v3282_v32 = vmul.f32 1.442695, %v3281_v31 }
0x15bd   : > { %5679 = vpow2.f32 %v3282_v32 }
0x15c3   : > { %v5680_v24 = vpop.eup %5679 }
0x15c4   : > { %v3284_v33 = vsel %vm7501_vm6, %v5680_v24, 0.0 }
0x15c5   : > { %3285 = vadd.xlane.f32.xlu0 %v3284_v33 }
0x15cf   : > { %3302 = vrot.lane.b32.xlu2 %v7169_v8, %s7603_s2 }
0x1612   : > { %v3359_v34 = vpop.xlane.xlu0 %3358 }
0x1613   : > { %v3360_v35 = vsub.f32 %v3356_v10, %v3359_v34 }
0x1615   : > { %v3361_v36 = vmul.f32 1.442695, %v3360_v35 }
0x1617   : > { %5681 = vpow2.f32 %v3361_v36 }
0x161a   : > { %v3517_v37 = vpop.xlane.xlu1 %3516 }
0x161b   : > { %v3518_v38 = vsub.f32 %v3514_v28, %v3517_v37 }
0x161d   : > { %v7197_v39 = vpop.eup %5681  ;;  %v3519_v40 = vmul.f32 1.442695, %v3518_v38 }
0x161e   : > { %v3363_v41 = vsel %vm7501_vm6, %v7197_v39, 0.0 }
0x161f   : > { %5683 = vpow2.f32 %v3519_v40  ;;  %3364 = vadd.xlane.f32.xlu2 %v3363_v41 }
0x1625   : > { %v7201_v42 = vpop.eup %5683 }
0x1626   : > { %v3521_v44 = vsel %vm7501_vm6, %v7201_v42, 0.0 }
0x1627   : > { %3522 = vadd.xlane.f32.xlu0 %v3521_v44 }
0x162a   : > { %v3438_v27 = vpop.xlane.xlu2 %3437 }
0x162b   : > { %v3439_v45 = vsub.f32 %v3435_v61, %v3438_v27 }
0x162d   : > { %v3440_v46 = vmul.f32 1.442695, %v3439_v45  ;;  %v3196_v45 = vld [vmem:[#allocation19 + $0x18] sm:$0xff] }
0x162e   : > { %3598 = vmatpush.msra.mxu2 %v3196_v45  ;;  %v3733_v45 = vld [vmem:[#allocation13 + $0x38] sm:$0xff] }
0x162f   : > { %5685 = vpow2.f32 %v3440_v46  ;;  %v3195_v46 = vld [vmem:[#allocation19 + $0x10] sm:$0xff] }
0x1630   : > { %3599 = vmatpush.msra.mxu2 %v3195_v46  ;;  %v3732_v46 = vld [vmem:[#allocation13 + $0x30] sm:$0xff] }
0x1632   : > { %v3303_v48 = vpop.permute.xlu2 %3302 }
0x1633   : > { %3323 = vmatpush.msrb.mxu0 %v3303_v48  ;;  %v3194_v48 = vld [vmem:[#allocation19 + $0x8] sm:$0xff] }
0x1634   : > { %3600 = vmatpush.msra.mxu2 %v3194_v48  ;;  %v3731_v48 = vld [vmem:[#allocation13 + $0x28] sm:$0xff] }
0x1635   : > { %v5686_v49 = vpop.eup %5685 }
0x1636   : > { %v3442_v50 = vsel %vm7501_vm6, %v5686_v49, 0.0 }
0x1637   : > { %3539 = vrot.lane.b32.xlu2 %v7169_v8, %s7592_s7  ;;  %3443 = vadd.xlane.f32.xlu1 %v3442_v50 }
0x1638   : > { %v3286_v51 = vpop.xlane.xlu0 %3285 }
0x1639   : > { %5687 = vrcp.f32 %v3286_v51  ;;  %v3298_v55 = vand.u32 2147483648, %v3286_v51  ;;  %v3296_v57 = vand.u32 2147483647, %v3286_v51  ;;  %vm3292_vm14 = vweird.f32 %v3286_v51 }
0x163b   : > { %3460 = vrot.lane.b32.xlu0 %v7169_v8, %s7588_s15  ;;  %v3299_v59 = vor.u32 1.1754944e-38, %v3298_v55  ;;  %vm3297_vm2 = vcmp.eq.f32.partialorder %v3296_v57, 8.507059e+37  ;;  %v5607_v55 = vld [vmem:[%s7611_s19] ss:$0 sm:$0xff] }
0x163f   : > { %v5688_v52 = vpop.eup %5687 }
0x1640   : > { %v3288_v53 = vmul.f32 %v5688_v52, %v3286_v51  ;;  %vm3293_vm12 = vweird.f32 %v5688_v52 }
0x1641   : > { %vm3294_vm15 = vmor %vm3292_vm14, %vm3293_vm12 }
0x1642   : > { %v3289_v54 = vsub.f32 1.0, %v3288_v53 }
0x1644   : > { %v3290_v56 = vmul.f32 %v5688_v52, %v3289_v54 }
0x1646   : > { %v3291_v58 = vadd.f32 %v5688_v52, %v3290_v56 }
0x1648   : > { %v3295_v60 = vsel %vm3294_vm15, %v5688_v52, %v3291_v58 }
0x1649   : > { %v3300_v63 = vsel %vm3297_vm2, %v3299_v59, %v3295_v60 }
0x164a   : > { %v3301_v0 = vmul.f32 %v5680_v24, %v3300_v63 }
0x164c   : > { %5279 = vmatmul.msk.f32.vlgmr.msrb.gmra.mxu0 %vm1635_vm1, %v3301_v0 }
0x1650   : > { %3381 = vrot.lane.b32.xlu1 %v7169_v8, %s7590_s10 }
0x1692   : > { %v3365_v1 = vpop.xlane.xlu2 %3364 }
0x1693   : > { %5689 = vrcp.f32 %v3365_v1  ;;  %v3377_v25 = vand.u32 2147483648, %v3365_v1  ;;  %vm3371_vm15 = vweird.f32 %v3365_v1  ;;  %v3375_v26 = vand.u32 2147483647, %v3365_v1 }
0x1695   : > { %v3378_v62 = vor.u32 1.1754944e-38, %v3377_v25  ;;  %vm3376_vm9 = vcmp.eq.f32.partialorder %v3375_v26, 8.507059e+37 }
0x1699   : > { %v5690_v4 = vpop.eup %5689 }
0x169a   : > { %v3523_v2 = vpop.xlane.xlu0 %3522  ;;  %v3367_v6 = vmul.f32 %v5690_v4, %v3365_v1  ;;  %vm3372_vm5 = vweird.f32 %v5690_v4  ;;  %v3540_v35 = vpop.permute.xlu2 %3539 }
0x169b   : > { %5691 = vrcp.f32 %v3523_v2  ;;  %vm3373_vm6 = vmor %vm3371_vm15, %vm3372_vm5  ;;  %v3535_v32 = vand.u32 2147483648, %v3523_v2  ;;  %vm3529_vm3 = vweird.f32 %v3523_v2  ;;  %v3533_v24 = vand.u32 2147483647, %v3523_v2 }
0x169c   : > { %v3368_v11 = vsub.f32 1.0, %v3367_v6  ;;  %v3635_v6 = vld [vmem:[#allocation20 + $0x8] sm:$0xff]  ;;  %vm7616_vm15 = vcmask 1043456  }
0x169d   : > { %v3536_v37 = vor.u32 1.1754944e-38, %v3535_v32 }
0x169e   : > { %v3369_v14 = vmul.f32 %v5690_v4, %v3368_v11  ;;  %v3644_v11 = vld [vmem:[#allocation22 + $0x28] sm:$0xff] }
0x16a0   : > { %v3370_v21 = vadd.f32 %v5690_v4, %v3369_v14  ;;  %v3643_v14 = vld [vmem:[#allocation22 + $0x20] sm:$0xff] }
0x16a1   : > { %v5692_v9 = vpop.eup %5691 }
0x16a2   : > { %v3525_v16 = vmul.f32 %v5692_v9, %v3523_v2  ;;  %v3374_v29 = vsel %vm3373_vm6, %v5690_v4, %v3370_v21  ;;  %vm3530_vm13 = vweird.f32 %v5692_v9  ;;  %vm3534_vm6 = vcmp.eq.f32.partialorder %v3533_v24, 8.507059e+37  ;;  %v3637_v4 = vld [vmem:[#allocation20 + $0x18] sm:$0xff] }
0x16a3   : > { %v3379_v3 = vsel %vm3376_vm9, %v3378_v62, %v3374_v29  ;;  %v3640_v62 = vld [vmem:[#allocation22 + $0x8] sm:$0xff] }
0x16a4   : > { %v3526_v22 = vsub.f32 1.0, %v3525_v16  ;;  %v3380_v34 = vmul.f32 %v7197_v39, %v3379_v3  ;;  %v3639_v3 = vld [vmem:[#allocation22] sm:$0xff] }
0x16a6   : > { %v3527_v30 = vmul.f32 %v5692_v9, %v3526_v22  ;;  %v3607_v22 = vld [vmem:[%s7612_s20] sm:$0x3] }
0x16a8   : > { %v3528_v31 = vadd.f32 %v5692_v9, %v3527_v30 }
0x16aa   : > { %v3444_v5 = vpop.xlane.xlu1 %3443 }
0x16ab   : > { %5693 = vrcp.f32 %v3444_v5  ;;  %v3456_v18 = vand.u32 2147483648, %v3444_v5  ;;  %v3454_v8 = vand.u32 2147483647, %v3444_v5  ;;  %vm3450_vm12 = vweird.f32 %v3444_v5 }
0x16ad   : > { %v3461_v7 = vpop.permute.xlu0 %3460  ;;  %v3457_v10 = vor.u32 1.1754944e-38, %v3456_v18  ;;  %vm3455_vm2 = vcmp.eq.f32.partialorder %v3454_v8, 8.507059e+37 }
0x16ae   : > { %3481 = vmatpush.msra.mxu0 %v3461_v7  ;;  %v3634_v7 = vld [vmem:[#allocation20] sm:$0xff] }
0x16b0   : > { %3666 = vmatpush.msrb.mxu0 %v3637_v4  ;;  %v5610_v4 = vld [vmem:[%s7600_s5 + $0x1] ss:$0 sm:$0xff] }
0x16b1   : > { %v5694_v12 = vpop.eup %5693 }
0x16b2   : > { %v3446_v13 = vmul.f32 %v5694_v12, %v3444_v5  ;;  %vm3451_vm4 = vweird.f32 %v5694_v12  ;;  %v3636_v5 = vld [vmem:[#allocation20 + $0x10] sm:$0xff] }
0x16b3   : > { %vm3452_vm14 = vmor %vm3450_vm12, %vm3451_vm4  ;;  %3667 = vmatpush.msrb.mxu0 %v3636_v5 }
0x16b4   : > { %v3447_v17 = vsub.f32 1.0, %v3446_v13  ;;  %vm3531_vm4 = vmor %vm3529_vm3, %vm3530_vm13 }
0x16b5   : > { %v3532_v36 = vsel %vm3531_vm4, %v5692_v9, %v3528_v31  ;;  %3668 = vmatpush.msrb.mxu0 %v3635_v6  ;;  %v3645_v9 = vld [vmem:[#allocation22 + $0x30] sm:$0xff]  ;;  %v5608_v31 = vld [vmem:[%s7613_s21] ss:$0 sm:$0xff] }
0x16b6   : > { %v3448_v19 = vmul.f32 %v5694_v12, %v3447_v17  ;;  %v3537_v38 = vsel %vm3534_vm6, %v3536_v37, %v3532_v36  ;;  %v3642_v17 = vld [vmem:[#allocation22 + $0x18] sm:$0xff] }
0x16b7   : > { %v3538_v40 = vmul.f32 %v7201_v42, %v3537_v38  ;;  %v3193_v42 = vld [vmem:[#allocation19] sm:$0xff]  ;;  %3669 = vmatpush.msrb.mxu0 %v3634_v7 }
0x16b8   : > { %v3449_v23 = vadd.f32 %v5694_v12, %v3448_v19  ;;  %3601 = vmatpush.msra.mxu2 %v3193_v42  ;;  %v3730_v42 = vld [vmem:[#allocation13 + $0x20] sm:$0xff] }
0x16ba   : > { %v3453_v15 = vsel %vm3452_vm14, %v5694_v12, %v3449_v23 }
0x16bb   : > { %v3458_v28 = vsel %vm3455_vm2, %v3457_v10, %v3453_v15  ;;  %v3630_v10 = vperm.slane %v3607_v22, 0  ;;  %vm7617_vm2 = vcmask 27648  }
0x16bc   : > { %v3459_v61 = vmul.f32 %v5686_v49, %v3458_v28  ;;  %v3632_v28 = vperm.slane %v3607_v22, 1  ;;  %vm7618_vm4 = vmmov %vm7617_vm2 }
0x16be   : > { %5285 = vmatmul.msk.f32.vlgmr.msra.gmra.mxu0 %vm1635_vm1, %v3459_v61  ;;  %v3641_v61 = vld [vmem:[#allocation22 + $0x10] sm:$0xff] }
0x16c2   : > { %v3382_v33 = vpop.permute.xlu1 %3381 }
0x16c3   : > { %3402 = vmatpush.msrb.mxu1 %v3382_v33 }
0x16c4   : > { %5282 = vmatmul.msk.f32.vlgmr.msrb.gmra.mxu1 %vm1635_vm1, %v3380_v34  ;;  %v5609_v34 = vld [vmem:[%s7614_s22] ss:$0 sm:$0xff] }
0x16c5   : > { %3560 = vmatpush.msra.mxu1 %v3540_v35 }
0x16c7   : > { %3761 = vmatpush.msrb.mxu1 %v3733_v45 }
0x16c9   : > { %v3325_v41 = vpop.f32.mrf.mxu0  ;;  %3762 = vmatpush.msrb.mxu1 %v3732_v46 }
0x16cb   : > { %3763 = vmatpush.msrb.mxu1 %v3731_v48 }
0x16cc   : > { %5288 = vmatmul.msk.f32.vlgmr.msra.gmra.mxu1 %vm1635_vm1, %v3538_v40 }
0x16cd   : > { %3764 = vmatpush.msrb.mxu1 %v3730_v42 }
0x173b   : > { %v3483_v44 = vpop.f32.mrf.mxu0 }
0x173c   : > { %3570 = vrot.lane.b32.xlu1 %v3483_v44, %s7604_s23 }
0x1741   : > { %v3404_v27 = vpop.f32.mrf.mxu1 }
0x1742   : > { %3566 = vrot.lane.b32.xlu0 %v3404_v27, %s7601_s8 }
0x1749   : > { %v3562_v39 = vpop.f32.mrf.mxu1 }
0x174a   : > { %3574 = vrot.lane.b32.xlu2 %v3562_v39, %s7602_s12 }
0x17a4   : > { %v3575_v52 = vpop.permute.xlu2 %3574 }
0x17ae   : > { %v3571_v50 = vpop.permute.xlu1 %3570 }
0x17b4   : > { %v3567_v49 = vpop.permute.xlu0 %3566 }
0x17b5   : > { %v3577_v51 = vsel %vm1635_vm1, %v3325_v41, %v3567_v49 }
0x17b6   : > { %v3578_v53 = vsel %vm2028_vm10, %v3577_v51, %v3571_v50 }
0x17b7   : > { %v3579_v54 = vsel %vm2030_vm11, %v3578_v53, %v3575_v52 }
0x17b8   : > { %5289 = vmatmul.msk.f32.vlgmr.msra.gmra.mxu2 %vm1676_vm7, %v3579_v54 }
0x183b   : > { %v3603_v56 = vpop.f32.mrf.mxu2 }
0x183c   : > { %v3604_v57 = vadd.f32 %v5607_v55, %v3603_v56  ;;  %v3702_v56 = vld [vmem:[%s7615_s24] sm:$0x3] }
0x183e   : > { %v3606_v58 = vadd.f32 %v3604_v57, %v7164_v43  ;;  %v3646_v43 = vld [vmem:[#allocation22 + $0x38] sm:$0xff] }
0x183f   : > { %3689 = vmatpush.msrb.mxu3 %v3646_v43 }
0x1840   : > { %v3608_v59 = vsel %vm3156_vm8, %v3606_v58, 0.0 }
0x1841   : > { %3609 = vadd.xlane.f32.xlu0 %v3608_v59  ;;  %3690 = vmatpush.msrb.mxu3 %v3645_v9  ;;  %v3725_v59 = vperm.slane %v3702_v56, 0 }
0x1843   : > { %3691 = vmatpush.msrb.mxu3 %v3644_v11 }
0x1845   : > { %3692 = vmatpush.msrb.mxu3 %v3643_v14 }
0x1847   : > { %3693 = vmatpush.msrb.mxu3 %v3642_v17 }
0x1849   : > { %3694 = vmatpush.msrb.mxu3 %v3641_v61 }
0x184b   : > { %3695 = vmatpush.msrb.mxu3 %v3640_v62 }
0x184d   : > { %3696 = vmatpush.msrb.mxu3 %v3639_v3 }
0x18b4   : > { %v3610_v60 = vpop.xlane.xlu0 %3609 }
0x18b5   : > { %v3611_v63 = vmul.f32 %v3610_v60, %v6963_v20 }
0x18b7   : > { %v3612_v0 = vsub.f32 %v3606_v58, %v3611_v63 }
0x18b9   : > { %v3613_v1 = vmul.f32 %v3612_v0, %v3612_v0 }
0x18bb   : > { %v3614_v2 = vsel %vm3156_vm8, %v3613_v1, 0.0 }
0x18bc   : > { %3615 = vadd.xlane.f32.xlu1 %v3614_v2 }
0x192f   : > { %v3616_v12 = vpop.xlane.xlu1 %3615 }
0x1930   : > { %v3617_v13 = vmul.f32 %v3616_v12, %v6963_v20 }
0x1932   : > { %v3618_v16 = vadd.f32 1e-05, %v3617_v13 }
0x1934   : > { %5695 = vrsqrt.f32 %v3618_v16  ;;  %vm3625_vm3 = vweird.f32 %v3618_v16 }
0x193a   : > { %v5696_v18 = vpop.eup %5695 }
0x193b   : > { %v3620_v19 = vmul.f32 %v5696_v18, %v3618_v16  ;;  %vm3626_vm13 = vweird.f32 %v5696_v18 }
0x193c   : > { %vm3627_vm9 = vmor %vm3625_vm3, %vm3626_vm13 }
0x193d   : > { %v3621_v8 = vmul.f32 %v5696_v18, %v3620_v19  ;;  %vm7619_vm13 = vmmov %vm7617_vm2 }
0x193f   : > { %v3622_v21 = vmul.f32 0.5, %v3621_v8 }
0x1941   : > { %v3623_v23 = vsub.f32 1.5, %v3622_v21 }
0x1943   : > { %v3624_v25 = vmul.f32 %v5696_v18, %v3623_v23  ;;  %v4169_v23 = vld [vmem:[#allocation17 + $0x38] sm:$0xff] }
0x1945   : > { %v3628_v26 = vsel %vm3627_vm9, %v5696_v18, %v3624_v25  ;;  %v4168_v25 = vld [vmem:[#allocation17 + $0x30] sm:$0xff] }
0x1946   : > { %v3629_v15 = vmul.f32 %v3628_v26, %v3612_v0  ;;  %v3727_v0 = vperm.slane %v3702_v56, 1  ;;  %v4166_v26 = vld [vmem:[#allocation17 + $0x20] sm:$0xff] }
0x1948   : > { %v3631_v29 = vmul.f32 %v3630_v10, %v3629_v15  ;;  %v4167_v10 = vld [vmem:[#allocation17 + $0x28] sm:$0xff] }
0x194a   : > { %v3633_v30 = vadd.f32 %v3632_v28, %v3631_v29 }
0x194c   : > { %5290 = vmatmul.msk.f32.vlgmr.msrb.gmra.mxu0 %vm1676_vm7, %v3633_v30 }
0x19c9   : > { %v3671_v32 = vpop.f32.mrf.mxu0 }
0x19ca   : > { %v3672_v24 = vadd.f32 %v5608_v31, %v3671_v32 }
0x19cc   : > { %v3674_v33 = vmax.f32 %v3672_v24, 0.0 }
0x19ce   : > { %5291 = vmatmul.msk.f32.vlgmr.msrb.gmra.mxu3 %vm2137_vm0, %v3674_v33 }
0x1a51   : > { %v3698_v35 = vpop.f32.mrf.mxu3 }
0x1a52   : > { %v3699_v36 = vadd.f32 %v5609_v34, %v3698_v35 }
0x1a54   : > { %v3701_v37 = vadd.f32 %v3699_v36, %v3633_v30 }
0x1a56   : > { %v3703_v38 = vsel %vm3156_vm8, %v3701_v37, 0.0 }
0x1a57   : > { %3704 = vadd.xlane.f32.xlu2 %v3703_v38 }
0x1aca   : > { %v3705_v40 = vpop.xlane.xlu2 %3704 }
0x1acb   : > { %v3706_v41 = vmul.f32 %v3705_v40, %v6963_v20 }
0x1acd   : > { %v3707_v44 = vsub.f32 %v3701_v37, %v3706_v41 }
0x1acf   : > { %v3708_v27 = vmul.f32 %v3707_v44, %v3707_v44 }
0x1ad1   : > { %v3709_v39 = vsel %vm3156_vm8, %v3708_v27, 0.0 }
0x1ad2   : > { %3710 = vadd.xlane.f32.xlu0 %v3709_v39 }
0x1b45   : > { %v3711_v49 = vpop.xlane.xlu0 %3710 }
0x1b46   : > { %v3712_v50 = vmul.f32 %v3711_v49, %v6963_v20 }
0x1b48   : > { %v3713_v51 = vadd.f32 1e-05, %v3712_v50 }
0x1b4a   : > { %5697 = vrsqrt.f32 %v3713_v51  ;;  %vm3720_vm12 = vweird.f32 %v3713_v51 }
0x1b50   : > { %v5698_v52 = vpop.eup %5697 }
0x1b51   : > { %v3715_v53 = vmul.f32 %v5698_v52, %v3713_v51  ;;  %vm3721_vm5 = vweird.f32 %v5698_v52 }
0x1b52   : > { %vm3722_vm14 = vmor %vm3720_vm12, %vm3721_vm5  ;;  %vm7620_vm12 = vcmask 31744  }
0x1b53   : > { %v3716_v54 = vmul.f32 %v5698_v52, %v3715_v53 }
0x1b55   : > { %v3717_v55 = vmul.f32 0.5, %v3716_v54 }
0x1b57   : > { %v3718_v57 = vsub.f32 1.5, %v3717_v55 }
0x1b59   : > { %v3719_v58 = vmul.f32 %v5698_v52, %v3718_v57 }
0x1b5b   : > { %v3723_v60 = vsel %vm3722_vm14, %v5698_v52, %v3719_v58  ;;  %vm7621_vm14 = vmmov %vm7617_vm2 }
0x1b5c   : > { %v3724_v63 = vmul.f32 %v3723_v60, %v3707_v44 }
0x1b5e   : > { %v3726_v1 = vmul.f32 %v3725_v59, %v3724_v63 }
0x1b60   : > { %v7241_v2 = vadd.f32 %v3727_v0, %v3726_v1 }
0x1b62   : > { %5294 = vmatmul.msk.f32.vlgmr.msrb.gmra.mxu1 %vm1676_vm7, %v7241_v2 }
0x1bdf   : > { %v3766_v5 = vpop.f32.mrf.mxu1 }
0x1be0   : > { %v7246_v6 = vadd.f32 %v5610_v4, %v3766_v5 }
0x1be2   : > { %3821 = vrot.lane.b32.xlu0 %v7246_v6, %s7606_s14  ;;  %3770 = vrot.lane.b32.xlu1 %v7246_v6, %s7603_s2 }
0x1bea   : > { %3930 = vrot.lane.b32.xlu0 %v7246_v6, %s7588_s15  ;;  %3848 = vrot.lane.b32.xlu1 %v7246_v6, %s7605_s13 }
0x1bf2   : > { %4010 = vrot.lane.b32.xlu1 %v7246_v6, %s7592_s7 }
0x1c54   : > { %v3822_v7 = vpop.permute.xlu0 %3821  ;;  %v3771_v43 = vpop.permute.xlu1 %3770 }
0x1c55   : > { %5295 = vmatpush.xpose.msk.msrb.mxu2 %vm1635_vm1, %v3771_v43  ;;  %5297 = vmatpush.msk.msra.mxu0 %vm7616_vm15, %v3822_v7  ;;  %vm7622_vm15 = vmmov %vm7617_vm2 }
0x1c58   : > { %5296 = vmatmul.msk.f32.vlgmr.msrb.gmra.mxu2 %vm1635_vm1, %v7246_v6 }
0x1c5c   : > { %v3931_v9 = vpop.permute.xlu0 %3930  ;;  %v3849_v14 = vpop.permute.xlu1 %3848 }
0x1c5d   : > { %5303 = vmatpush.xpose.msk.msrb.mxu0 %vm1635_vm1, %v3931_v9 }
0x1c64   : > { %v4011_v8 = vpop.permute.xlu1 %4010 }
0x1cdb   : > { %v3793_v11 = vpop.f32.mrf.mxu2 }
0x1cdc   : > { %v3796_v12 = vmul.f32 0.35355338, %v3793_v11 }
0x1cde   : > { %v3797_v13 = vsel %vm7617_vm2, %v3796_v12, -inf }
0x1cdf   : > { %3798 = vmax.xlane.f32.xlu2 %v3797_v13 }
0x1cf7   : > { %3850 = vrot.lane.b32.xlu2 %v7246_v6, %s7590_s10 }
0x1cff   : > { %3928 = vrot.lane.b32.xlu2 %v7246_v6, %s7591_s6 }
0x1d52   : > { %v3799_v16 = vpop.xlane.xlu2 %3798 }
0x1d53   : > { %v3800_v17 = vsub.f32 %v3796_v12, %v3799_v16 }
0x1d55   : > { %v3801_v18 = vmul.f32 1.442695, %v3800_v17 }
0x1d57   : > { %5699 = vpow2.f32 %v3801_v18 }
0x1d5a   : > { %v3851_v19 = vpop.permute.xlu2 %3850 }
0x1d5b   : > { %5299 = vmatpush.xpose.msk.msra.mxu1 %vm1635_vm1, %v3851_v19  ;;  %v5611_v19 = vld [vmem:[%s7609_s17 + $0x1] ss:$0 sm:$0xff] }
0x1d5d   : > { %v5700_v21 = vpop.eup %5699 }
0x1d5e   : > { %5300 = vmatmul.msk.f32.vlgmr.msra.gmra.mxu1 %vm1635_vm1, %v3849_v14  ;;  %v3803_v22 = vsel %vm7618_vm4, %v5700_v21, 0.0  ;;  %vm7623_vm4 = vmmov %vm7617_vm2 }
0x1d5f   : > { %5307 = vmatpush.xpose.msk.msrb.mxu1 %vm1635_vm1, %v4011_v8  ;;  %3804 = vadd.xlane.f32.xlu0 %v3803_v22 }
0x1d62   : > { %v3929_v40 = vpop.permute.xlu2 %3928 }
0x1d63   : > { %4220 = vmatpush.msra.mxu1 %v4169_v23 }
0x1d65   : > { %4221 = vmatpush.msra.mxu1 %v4168_v25 }
0x1d67   : > { %4222 = vmatpush.msra.mxu1 %v4167_v10 }
0x1d69   : > { %4223 = vmatpush.msra.mxu1 %v4166_v26 }
0x1d73   : > { %4008 = vrot.lane.b32.xlu0 %v7246_v6, %s7589_s11 }
0x1dd2   : > { %v3805_v15 = vpop.xlane.xlu0 %3804 }
0x1dd3   : > { %5701 = vrcp.f32 %v3805_v15  ;;  %v3817_v3 = vand.u32 2147483648, %v3805_v15  ;;  %v3815_v32 = vand.u32 2147483647, %v3805_v15  ;;  %vm3811_vm3 = vweird.f32 %v3805_v15 }
0x1dd5   : > { %v3818_v34 = vor.u32 1.1754944e-38, %v3817_v3  ;;  %vm3816_vm5 = vcmp.eq.f32.partialorder %v3815_v32, 8.507059e+37 }
0x1dd9   : > { %v5702_v28 = vpop.eup %5701 }
0x1dda   : > { %v3807_v29 = vmul.f32 %v5702_v28, %v3805_v15  ;;  %vm3812_vm6 = vweird.f32 %v5702_v28 }
0x1ddb   : > { %v3873_v30 = vpop.f32.mrf.mxu1  ;;  %vm3813_vm9 = vmor %vm3811_vm3, %vm3812_vm6  ;;  %vm7624_vm6 = vcmask 1043456  }
0x1ddc   : > { %v3808_v61 = vsub.f32 1.0, %v3807_v29  ;;  %v3876_v62 = vmul.f32 0.35355338, %v3873_v30 }
0x1dde   : > { %v3809_v31 = vmul.f32 %v5702_v28, %v3808_v61  ;;  %v3877_v24 = vsel %vm7619_vm13, %v3876_v62, -inf  ;;  %vm7625_vm13 = vmmov %vm7617_vm2 }
0x1ddf   : > { %3878 = vmax.xlane.f32.xlu1 %v3877_v24 }
0x1de0   : > { %v3810_v33 = vadd.f32 %v5702_v28, %v3809_v31 }
0x1de2   : > { %v3814_v35 = vsel %vm3813_vm9, %v5702_v28, %v3810_v33 }
0x1de3   : > { %v3819_v36 = vsel %vm3816_vm5, %v3818_v34, %v3814_v35 }
0x1de4   : > { %v3820_v37 = vmul.f32 %v5700_v21, %v3819_v36 }
0x1de5   : > { %v4009_v38 = vpop.permute.xlu0 %4008 }
0x1de6   : > { %5298 = vmatmul.msk.f32.vlgmr.msra.gmra.mxu0 %vm7620_vm12, %v3820_v37  ;;  %5308 = vmatmul.msk.f32.vlgmr.msrb.gmra.mxu1 %vm1635_vm1, %v4009_v38 }
0x1dee   : > { %5304 = vmatmul.msk.f32.vlgmr.msrb.gmra.mxu0 %vm1635_vm1, %v3929_v40  ;;  %5317 = vmatmul.msk.f32.vlgmr.msra.gmra.mxu1 %vm1676_vm7, %v7158_v47 }
0x1e52   : > { %v3879_v41 = vpop.xlane.xlu1 %3878 }
0x1e53   : > { %v3880_v45 = vsub.f32 %v3876_v62, %v3879_v41 }
0x1e55   : > { %v3881_v48 = vmul.f32 1.442695, %v3880_v45 }
0x1e57   : > { %5703 = vpow2.f32 %v3881_v48  ;;  %v4162_v48 = vld [vmem:[#allocation16 + $0x38] sm:$0xff] }
0x1e5d   : > { %v5704_v51 = vpop.eup %5703 }
0x1e5e   : > { %v3883_v52 = vsel %vm7617_vm2, %v5704_v51, 0.0 }
0x1e63   : > { %v7280_v44 = vpop.f32.mrf.mxu0  ;;  %v4033_v27 = vpop.f32.mrf.mxu1 }
0x1e64   : > { %v4036_v39 = vmul.f32 0.35355338, %v4033_v27 }
0x1e66   : > { %v4037_v46 = vsel %vm7621_vm14, %v4036_v39, -inf  ;;  %vm7626_vm14 = vcmask 31744  }
0x1e67   : > { %4038 = vmax.xlane.f32.xlu0 %v4037_v46 }
0x1e6b   : > { %v3953_v42 = vpop.f32.mrf.mxu0  ;;  %v4225_v8 = vpop.f32.mrf.mxu1 }
0x1e6c   : > { %v3956_v49 = vmul.f32 0.35355338, %v3953_v42  ;;  %v7299_v22 = vadd.f32 %v5611_v19, %v4225_v8  ;;  %v4161_v42 = vld [vmem:[#allocation16 + $0x30] sm:$0xff] }
0x1e6d   : > { %v5312_v8 = vld [vmem:[%s7608_s16 + $0x2] sm:$0x3] }
0x1e6e   : > { %v3957_v50 = vsel %vm7622_vm15, %v3956_v49, -inf  ;;  %vm7627_vm15 = vmmov %vm7624_vm6 }
0x1e6f   : > { %3958 = vmax.xlane.f32.xlu2 %v3957_v50  ;;  %v4159_v50 = vld [vmem:[#allocation16 + $0x20] sm:$0xff] }
0x1e77   : > { %3884 = vadd.xlane.f32.xlu2 %v3883_v52  ;;  %v3739_v52 = vld [vmem:[#allocation14 + $0x30] sm:$0xff] }
0x1e7b   : > { %3901 = vrot.lane.b32.xlu0 %v7246_v6, %s7594_s3  ;;  %s7639_s3 = sld [smem:[#allocation73_spill]] }
0x1eda   : > { %v4039_v47 = vpop.xlane.xlu0 %4038 }
0x1edb   : > { %v4040_v53 = vsub.f32 %v4036_v39, %v4039_v47  ;;  %v3738_v47 = vld [vmem:[#allocation14 + $0x28] sm:$0xff] }
0x1edd   : > { %v4041_v54 = vmul.f32 1.442695, %v4040_v53  ;;  %v3737_v53 = vld [vmem:[#allocation14 + $0x20] sm:$0xff] }
0x1edf   : > { %5705 = vpow2.f32 %v4041_v54 }
0x1ee2   : > { %v3959_v55 = vpop.xlane.xlu2 %3958 }
0x1ee3   : > { %v3960_v56 = vsub.f32 %v3956_v49, %v3959_v55  ;;  %v4160_v49 = vld [vmem:[#allocation16 + $0x28] sm:$0xff] }
0x1ee5   : > { %v5706_v57 = vpop.eup %5705  ;;  %v3961_v58 = vmul.f32 1.442695, %v3960_v56 }
0x1ee6   : > { %v4043_v59 = vsel %vm7623_vm4, %v5706_v57, 0.0 }
0x1ee7   : > { %5707 = vpow2.f32 %v3961_v58  ;;  %4044 = vadd.xlane.f32.xlu2 %v4043_v59 }
0x1eea   : > { %v3885_v60 = vpop.xlane.xlu2 %3884 }
0x1eeb   : > { %5709 = vrcp.f32 %v3885_v60  ;;  %v3897_v43 = vand.u32 2147483648, %v3885_v60  ;;  %v3895_v11 = vand.u32 2147483647, %v3885_v60  ;;  %vm3891_vm9 = vweird.f32 %v3885_v60 }
0x1eed   : > { %v7288_v63 = vpop.eup %5707  ;;  %v3902_v0 = vpop.permute.xlu0 %3901  ;;  %v3898_v13 = vor.u32 1.1754944e-38, %v3897_v43  ;;  %vm3896_vm12 = vcmp.eq.f32.partialorder %v3895_v11, 8.507059e+37 }
0x1eee   : > { %5301 = vmatpush.msk.msra.mxu2 %vm7624_vm6, %v3902_v0  ;;  %v3963_v1 = vsel %vm7625_vm13, %v7288_v63, 0.0  ;;  %v5612_v0 = vld [vmem:[%s7607_s9 + $0x1] ss:$0 sm:$0xff] }
0x1eef   : > { %3964 = vadd.xlane.f32.xlu1 %v3963_v1 }
0x1ef1   : > { %v5710_v4 = vpop.eup %5709 }
0x1ef2   : > { %v3887_v5 = vmul.f32 %v5710_v4, %v3885_v60  ;;  %vm3892_vm3 = vweird.f32 %v5710_v4 }
0x1ef3   : > { %vm3893_vm5 = vmor %vm3891_vm9, %vm3892_vm3 }
0x1ef4   : > { %v3888_v7 = vsub.f32 1.0, %v3887_v5  ;;  %vm7628_vm3 = vmmov %vm7626_vm14 }
0x1ef6   : > { %v3889_v9 = vmul.f32 %v5710_v4, %v3888_v7 }
0x1ef8   : > { %v3890_v12 = vadd.f32 %v5710_v4, %v3889_v9 }
0x1efa   : > { %v3894_v14 = vsel %vm3893_vm5, %v5710_v4, %v3890_v12 }
0x1efb   : > { %v3899_v16 = vsel %vm3896_vm12, %v3898_v13, %v3894_v14 }
0x1efc   : > { %v3900_v17 = vmul.f32 %v5704_v51, %v3899_v16  ;;  %v3740_v51 = vld [vmem:[#allocation14 + $0x38] sm:$0xff] }
0x1efd   : > { %4121 = vmatpush.msra.mxu0 %v3740_v51 }
0x1efe   : > { %5302 = vmatmul.msk.f32.vlgmr.msra.gmra.mxu2 %vm7626_vm14, %v3900_v17 }
0x1eff   : > { %4061 = vrot.lane.b32.xlu2 %v7246_v6, %s7595_s4  ;;  %4122 = vmatpush.msra.mxu0 %v3739_v52 }
0x1f01   : > { %4123 = vmatpush.msra.mxu0 %v3738_v47 }
0x1f03   : > { %4124 = vmatpush.msra.mxu0 %v3737_v53 }
0x1f08   : > { %3981 = vrot.lane.b32.xlu1 %v7246_v6, %s7596_s1 }
0x1f5a   : > { %v4045_v18 = vpop.xlane.xlu2 %4044 }
0x1f5b   : > { %5711 = vrcp.f32 %v4045_v18  ;;  %v4057_v15 = vand.u32 2147483648, %v4045_v18  ;;  %v4055_v6 = vand.u32 2147483647, %v4045_v18  ;;  %vm4051_vm4 = vweird.f32 %v4045_v18 }
0x1f5d   : > { %v4058_v61 = vor.u32 1.1754944e-38, %v4057_v15  ;;  %vm4056_vm13 = vcmp.eq.f32.partialorder %v4055_v6, 8.507059e+37  ;;  %v4156_v15 = vperm.slane %v5312_v8, 1 }
0x1f61   : > { %v5712_v21 = vpop.eup %5711 }
0x1f62   : > { %v4047_v23 = vmul.f32 %v5712_v21, %v4045_v18  ;;  %v4062_v25 = vpop.permute.xlu2 %4061  ;;  %v3965_v10 = vpop.xlane.xlu1 %3964  ;;  %vm4052_vm2 = vweird.f32 %v5712_v21 }
0x1f63   : > { %5713 = vrcp.f32 %v3965_v10  ;;  %5309 = vmatpush.msk.msrb.mxu2 %vm7627_vm15, %v4062_v25  ;;  %vm4053_vm6 = vmor %vm4051_vm4, %vm4052_vm2  ;;  %v3977_v35 = vand.u32 2147483648, %v3965_v10  ;;  %vm3971_vm5 = vweird.f32 %v3965_v10  ;;  %v3975_v36 = vand.u32 2147483647, %v3965_v10 }
0x1f64   : > { %v4048_v26 = vsub.f32 1.0, %v4047_v23  ;;  %vm7629_vm2 = vmmov %vm7628_vm3  ;;  %v4154_v25 = vperm.slane %v5312_v8, 0 }
0x1f65   : > { %5318 = vmatpush.xpose.msk.msra.mxu2 %vm1635_vm1, %v7299_v22  ;;  %v3978_v38 = vor.u32 1.1754944e-38, %v3977_v35  ;;  %vm3976_vm14 = vcmp.eq.f32.partialorder %v3975_v36, 8.507059e+37 }
0x1f66   : > { %v4049_v28 = vmul.f32 %v5712_v21, %v4048_v26 }
0x1f68   : > { %v4050_v29 = vadd.f32 %v5712_v21, %v4049_v28 }
0x1f69   : > { %v5714_v30 = vpop.eup %5713 }
0x1f6a   : > { %v4054_v62 = vsel %vm4053_vm6, %v5712_v21, %v4050_v29  ;;  %v3967_v3 = vmul.f32 %v5714_v30, %v3965_v10  ;;  %vm3972_vm9 = vweird.f32 %v5714_v30 }
0x1f6b   : > { %v4059_v31 = vsel %vm4056_vm13, %v4058_v61, %v4054_v62  ;;  %vm3973_vm12 = vmor %vm3971_vm5, %vm3972_vm9 }
0x1f6c   : > { %v3968_v32 = vsub.f32 1.0, %v3967_v3  ;;  %v4060_v24 = vmul.f32 %v5706_v57, %v4059_v31 }
0x1f6e   : > { %v3969_v33 = vmul.f32 %v5714_v30, %v3968_v32  ;;  %5310 = vmatmul.msk.f32.vlgmr.msrb.gmra.mxu2 %vm7628_vm3, %v4060_v24  ;;  %vm7630_vm3 = vcmask 60416  }
0x1f6f   : > { %vm7631_vm9 = vmmov %vm7630_vm3 }
0x1f70   : > { %v3970_v34 = vadd.f32 %v5714_v30, %v3969_v33  ;;  %vm7632_vm5 = vmmov %vm7630_vm3 }
0x1f72   : > { %v3974_v37 = vsel %vm3973_vm12, %v5714_v30, %v3970_v34  ;;  %v5613_v30 = vld [vmem:[%s7610_s18 + $0x1] ss:$0 sm:$0xff]  ;;  %vm7633_vm12 = vmmov %vm7630_vm3 }
0x1f73   : > { %v3979_v40 = vsel %vm3976_vm14, %v3978_v38, %v3974_v37  ;;  %vm7634_vm14 = vmmov %vm7630_vm3 }
0x1f74   : > { %v3980_v27 = vmul.f32 %v7288_v63, %v3979_v40 }
0x1f7a   : > { %v3982_v41 = vpop.permute.xlu1 %3981 }
0x1f7b   : > { %5305 = vmatpush.msk.msra.mxu3 %vm7627_vm15, %v3982_v41  ;;  %vm7635_vm15 = vmmov %vm7630_vm3 }
0x1f7c   : > { %5306 = vmatmul.msk.f32.vlgmr.msra.gmra.mxu3 %vm7629_vm2, %v3980_v27  ;;  %vm7636_vm2 = vmmov %vm7630_vm3 }
0x1f7d   : > { %4197 = vmatpush.msrb.mxu3 %v4162_v48 }
0x1f7f   : > { %4198 = vmatpush.msrb.mxu3 %v4161_v42 }
0x1f81   : > { %v3925_v39 = vpop.f32.mrf.mxu2  ;;  %4199 = vmatpush.msrb.mxu3 %v4160_v49 }
0x1f82   : > { %4089 = vrot.lane.b32.xlu0 %v3925_v39, %s7601_s8 }
0x1f83   : > { %4200 = vmatpush.msrb.mxu3 %v4159_v50 }
0x1ff1   : > { %v4085_v45 = vpop.f32.mrf.mxu2 }
0x1ff2   : > { %4097 = vrot.lane.b32.xlu0 %v4085_v45, %s7602_s12 }
0x1ff4   : > { %v4090_v54 = vpop.permute.xlu0 %4089 }
0x1ff5   : > { %v4100_v57 = vsel %vm1635_vm1, %v7280_v44, %v4090_v54 }
0x1ffa   : > { %4307 = vrot.lane.b32.xlu0 %v7299_v22, %s7605_s13 }
0x1fff   : > { %v4005_v46 = vpop.f32.mrf.mxu3 }
0x2000   : > { %4093 = vrot.lane.b32.xlu1 %v4005_v46, %s7604_s23 }
0x2002   : > { %4386 = vrot.lane.b32.xlu0 %v7299_v22, %s7591_s6 }
0x200a   : > { %4465 = vrot.lane.b32.xlu0 %v7299_v22, %s7589_s11 }
0x2064   : > { %v4098_v55 = vpop.permute.xlu0 %4097 }
0x206c   : > { %v4308_v56 = vpop.permute.xlu0 %4307 }
0x206d   : > { %5321 = vmatpush.xpose.msk.msra.mxu3 %vm1635_vm1, %v4308_v56 }
0x2072   : > { %v4094_v58 = vpop.permute.xlu1 %4093 }
0x2073   : > { %v4101_v59 = vsel %vm2028_vm10, %v4100_v57, %v4094_v58 }
0x2074   : > { %v4102_v60 = vsel %vm2030_vm11, %v4101_v59, %v4098_v55  ;;  %v4387_v63 = vpop.permute.xlu0 %4386 }
0x2075   : > { %5311 = vmatmul.msk.f32.vlgmr.msra.gmra.mxu0 %vm1676_vm7, %v4102_v60  ;;  %5324 = vmatpush.xpose.msk.msrb.mxu2 %vm1635_vm1, %v4387_v63 }
0x207c   : > { %v4466_v29 = vpop.permute.xlu0 %4465 }
0x20f2   : > { %v4126_v1 = vpop.f32.mrf.mxu0 }
0x20f3   : > { %v4127_v4 = vadd.f32 %v5612_v0, %v4126_v1 }
0x20f5   : > { %v4129_v5 = vadd.f32 %v4127_v4, %v7241_v2 }
0x20f7   : > { %v4132_v7 = vsel %vm3156_vm8, %v4129_v5, 0.0 }
0x20f8   : > { %4133 = vadd.xlane.f32.xlu2 %v4132_v7 }
0x216b   : > { %v4134_v44 = vpop.xlane.xlu2 %4133 }
0x216c   : > { %v4135_v43 = vmul.f32 %v4134_v44, %v6963_v20 }
0x216e   : > { %v4136_v9 = vsub.f32 %v4129_v5, %v4135_v43 }
0x2170   : > { %v4137_v11 = vmul.f32 %v4136_v9, %v4136_v9 }
0x2172   : > { %v4138_v12 = vsel %vm3156_vm8, %v4137_v11, 0.0 }
0x2173   : > { %4139 = vadd.xlane.f32.xlu1 %v4138_v12 }
0x21e6   : > { %v4140_v13 = vpop.xlane.xlu1 %4139 }
0x21e7   : > { %v4141_v14 = vmul.f32 %v4140_v13, %v6963_v20 }
0x21e9   : > { %v4142_v16 = vadd.f32 1e-05, %v4141_v14 }
0x21eb   : > { %5715 = vrsqrt.f32 %v4142_v16  ;;  %vm4149_vm6 = vweird.f32 %v4142_v16 }
0x21f1   : > { %v5716_v17 = vpop.eup %5715 }
0x21f2   : > { %v4144_v18 = vmul.f32 %v5716_v17, %v4142_v16  ;;  %vm4150_vm4 = vweird.f32 %v5716_v17 }
0x21f3   : > { %vm4151_vm13 = vmor %vm4149_vm6, %vm4150_vm4 }
0x21f4   : > { %v4145_v2 = vmul.f32 %v5716_v17, %v4144_v18 }
0x21f6   : > { %v4146_v19 = vmul.f32 0.5, %v4145_v2 }
0x21f8   : > { %v4147_v21 = vsub.f32 1.5, %v4146_v19 }
0x21fa   : > { %v4148_v23 = vmul.f32 %v5716_v17, %v4147_v21 }
0x21fc   : > { %v4152_v10 = vsel %vm4151_vm13, %v5716_v17, %v4148_v23  ;;  %vm7637_vm13 = vmmov %vm7636_vm2 }
0x21fd   : > { %v4153_v26 = vmul.f32 %v4152_v10, %v4136_v9 }
0x21ff   : > { %v4155_v28 = vmul.f32 %v4154_v25, %v4153_v26 }
0x2201   : > { %v7331_v6 = vadd.f32 %v4156_v15, %v4155_v28 }
0x2203   : > { %5316 = vmatmul.msk.f32.vlgmr.msrb.gmra.mxu3 %vm1676_vm7, %v7331_v6 }
0x2204   : > { %5327 = vmatpush.xpose.msk.msrb.mxu3 %vm1635_vm1, %v4466_v29 }
0x2286   : > { %v4202_v61 = vpop.f32.mrf.mxu3 }
0x2287   : > { %v4203_v62 = vadd.f32 %v5613_v30, %v4202_v61 }
0x2289   : > { %4463 = vrot.lane.b32.xlu2 %v4203_v62, %s7589_s11  ;;  %4305 = vrot.lane.b32.xlu0 %v4203_v62, %s7605_s13  ;;  %s7638_s13 = sld [smem:[#allocation75_spill]] }
0x228a   : > { %5319 = vmatmul.msk.f32.vlgmr.msra.gmra.mxu2 %vm1635_vm1, %v4203_v62 }
0x228f   : > { %s1532_s14 = sand.u32 1, %s7638_s13  }
0x2290   : > { %s4855_s4 = scalar_lea.sflag [#allocation4], %s1532_s14 }
0x2291   : > { %4384 = vrot.lane.b32.xlu0 %v4203_v62, %s7591_s6  ;;  %s4863_s6 = scalar_lea.hbm %s7639_s3, %s6596_s0 }
0x2292   : > { %s4867_s11 = sshll.u32 %s4863_s6, 4  ;;  %s4868_s11 = int_to_ptr.hbm [resolvable:$true] %s4867_s11 }
0x2293   : > { %s6203_s1 = sshra.s32 %s4868_s11, 4  ;;  %s6204_s1 = int_to_ptr.hbm [resolvable:$true] %s6203_s1 }
0x2294   : > { %s6205_s0 = scalar_lea.hbm %s6204_s1, 1  ;;  %p6210_p1 = scmp.lt.s32.totalorder %s6204_s1, %s7639_s3 }
0x2295   : > { %p6206_p9 = scmp.ne.s32.totalorder %s6204_s1, %s6205_s0 }
0x2297   : > { %p6207_p12 = pnand %p6206_p9, %p6613_p5 }
0x2299   : > { %p6208_p0 = pneg %p6207_p12 }
0x22e3   : > { %v4464_v31 = vpop.permute.xlu2 %4463 }
0x22fb   : > { %v4306_v3 = vpop.permute.xlu0 %4305 }
0x22fc   : > { %5322 = vmatmul.msk.f32.vlgmr.msra.gmra.mxu3 %vm1635_vm1, %v4306_v3 }
0x2303   : > { %v4385_v32 = vpop.permute.xlu0 %4384 }
0x2304   : > { %5325 = vmatmul.msk.f32.vlgmr.msrb.gmra.mxu2 %vm1635_vm1, %v4385_v32  ;;  %5328 = vmatmul.msk.f32.vlgmr.msrb.gmra.mxu3 %vm1635_vm1, %v4464_v31 }
0x230d   : > { %v4251_v24 = vpop.f32.mrf.mxu2 }
0x230e   : > { %v4254_v33 = vmul.f32 0.35355338, %v4251_v24 }
0x2310   : > { %v4255_v34 = vsel %vm7630_vm3, %v4254_v33, -inf }
0x2311   : > { %4256 = vmax.xlane.f32.xlu1 %v4255_v34 }
0x237f   : > { %v4330_v35 = vpop.f32.mrf.mxu3 }
0x2380   : > { %v4333_v36 = vmul.f32 0.35355338, %v4330_v35 }
0x2382   : > { %v4334_v37 = vsel %vm7631_vm9, %v4333_v36, -inf }
0x2383   : > { %4335 = vmax.xlane.f32.xlu0 %v4334_v37 }
0x2384   : > { %v4257_v38 = vpop.xlane.xlu1 %4256 }
0x2385   : > { %v4258_v40 = vsub.f32 %v4254_v33, %v4257_v38 }
0x2387   : > { %v4259_v41 = vmul.f32 1.442695, %v4258_v40  ;;  %v4409_v27 = vpop.f32.mrf.mxu2  ;;  %v4488_v46 = vpop.f32.mrf.mxu3 }
0x2388   : > { %v4412_v39 = vmul.f32 0.35355338, %v4409_v27  ;;  %v4491_v48 = vmul.f32 0.35355338, %v4488_v46 }
0x2389   : > { %5717 = vpow2.f32 %v4259_v41 }
0x238a   : > { %v4413_v45 = vsel %vm7632_vm5, %v4412_v39, -inf  ;;  %v4492_v50 = vsel %vm7634_vm14, %v4491_v48, -inf }
0x238b   : > { %4414 = vmax.xlane.f32.xlu1 %v4413_v45 }
0x238f   : > { %v5718_v42 = vpop.eup %5717 }
0x2390   : > { %v4261_v49 = vsel %vm7633_vm12, %v5718_v42, 0.0 }
0x2391   : > { %4262 = vadd.xlane.f32.xlu2 %v4261_v49 }
0x2393   : > { %4493 = vmax.xlane.f32.xlu1 %v4492_v50 }
0x2397   : > { %4279 = vrot.lane.b32.xlu0 %v7299_v22, %s7603_s2 }
0x239f   : > { %4516 = vrot.lane.b32.xlu0 %v7299_v22, %s7592_s7 }
0x23a9   : > { %4437 = vrot.lane.b32.xlu2 %v7299_v22, %s7588_s15 }
0x23f6   : > { %v4336_v51 = vpop.xlane.xlu0 %4335 }
0x23f7   : > { %v4337_v52 = vsub.f32 %v4333_v36, %v4336_v51 }
0x23f9   : > { %v4338_v47 = vmul.f32 1.442695, %v4337_v52 }
0x23fb   : > { %5719 = vpow2.f32 %v4338_v47 }
0x23fe   : > { %v4415_v53 = vpop.xlane.xlu1 %4414 }
0x23ff   : > { %v4416_v54 = vsub.f32 %v4412_v39, %v4415_v53 }
0x2401   : > { %v7355_v55 = vpop.eup %5719  ;;  %v4417_v56 = vmul.f32 1.442695, %v4416_v54 }
0x2402   : > { %v4340_v57 = vsel %vm7635_vm15, %v7355_v55, 0.0 }
0x2403   : > { %5721 = vpow2.f32 %v4417_v56  ;;  %4341 = vadd.xlane.f32.xlu1 %v4340_v57 }
0x2404   : > { %v4263_v58 = vpop.xlane.xlu2 %4262 }
0x2405   : > { %5723 = vrcp.f32 %v4263_v58  ;;  %v4275_v9 = vand.u32 2147483648, %v4263_v58  ;;  %v4273_v12 = vand.u32 2147483647, %v4263_v58  ;;  %vm4269_vm6 = vweird.f32 %v4263_v58 }
0x2406   : > { %v4494_v59 = vpop.xlane.xlu1 %4493 }
0x2407   : > { %v4495_v60 = vsub.f32 %v4491_v48, %v4494_v59  ;;  %v4276_v17 = vor.u32 1.1754944e-38, %v4275_v9  ;;  %vm4274_vm9 = vcmp.eq.f32.partialorder %v4273_v12, 8.507059e+37  ;;  %v4176_v59 = vld [vmem:[#allocation19 + $0x38] sm:$0xff]  ;;  %v5614_v9 = vld [vmem:[%s7611_s19 + $0x1] ss:$0 sm:$0xff] }
0x2408   : > { %4575 = vmatpush.msra.mxu2 %v4176_v59 }
0x2409   : > { %v5722_v63 = vpop.eup %5721  ;;  %v4496_v0 = vmul.f32 1.442695, %v4495_v60  ;;  %v4280_v1 = vpop.permute.xlu0 %4279  ;;  %v4175_v60 = vld [vmem:[#allocation19 + $0x30] sm:$0xff] }
0x240a   : > { %4300 = vmatpush.msrb.mxu0 %v4280_v1  ;;  %v4419_v4 = vsel %vm7636_vm2, %v5722_v63, 0.0  ;;  %4576 = vmatpush.msra.mxu2 %v4175_v60 }
0x240b   : > { %v5724_v5 = vpop.eup %5723  ;;  %5725 = vpow2.f32 %v4496_v0  ;;  %4420 = vadd.xlane.f32.xlu1 %v4419_v4  ;;  %v4173_v0 = vld [vmem:[#allocation19 + $0x20] sm:$0xff] }
0x240c   : > { %v4265_v7 = vmul.f32 %v5724_v5, %v4263_v58  ;;  %v4438_v44 = vpop.permute.xlu2 %4437  ;;  %vm4270_vm4 = vweird.f32 %v5724_v5 }
0x240d   : > { %4458 = vmatpush.msra.mxu0 %v4438_v44  ;;  %vm4271_vm3 = vmor %vm4269_vm6, %vm4270_vm4 }
0x240e   : > { %v4266_v43 = vsub.f32 1.0, %v4265_v7 }
0x2410   : > { %v4267_v11 = vmul.f32 %v5724_v5, %v4266_v43 }
0x2411   : > { %v7360_v13 = vpop.eup %5725  ;;  %v4517_v51 = vpop.permute.xlu0 %4516 }
0x2412   : > { %v4268_v14 = vadd.f32 %v5724_v5, %v4267_v11  ;;  %v4498_v16 = vsel %vm7637_vm13, %v7360_v13, 0.0 }
0x2413   : > { %4499 = vadd.xlane.f32.xlu1 %v4498_v16 }
0x2414   : > { %v4272_v18 = vsel %vm4271_vm3, %v5724_v5, %v4268_v14 }
0x2415   : > { %v4277_v2 = vsel %vm4274_vm9, %v4276_v17, %v4272_v18 }
0x2416   : > { %v4278_v19 = vmul.f32 %v5718_v42, %v4277_v2 }
0x2418   : > { %5320 = vmatmul.msk.f32.vlgmr.msrb.gmra.mxu0 %vm1635_vm1, %v4278_v19 }
0x242c   : > { %4358 = vrot.lane.b32.xlu1 %v7299_v22, %s7590_s10  ;;  %s1533_s10 = scalar_lea.vmem [#allocation26], %s1532_s14 }
0x242d   : > { %s4865_s15 = sshll.u32 %s1533_s10, 4  ;;  %s4866_s15 = int_to_ptr.vmem [resolvable:$true] %s4865_s15 }
0x2476   : > { %v4342_v8 = vpop.xlane.xlu1 %4341 }
0x2477   : > { %5727 = vrcp.f32 %v4342_v8  ;;  %v4354_v38 = vand.u32 2147483648, %v4342_v8  ;;  %vm4348_vm4 = vweird.f32 %v4342_v8  ;;  %v4352_v40 = vand.u32 2147483647, %v4342_v8 }
0x2479   : > { %v4355_v39 = vor.u32 1.1754944e-38, %v4354_v38  ;;  %vm4353_vm13 = vcmp.eq.f32.partialorder %v4352_v40, 8.507059e+37 }
0x247d   : > { %v5728_v23 = vpop.eup %5727 }
0x247e   : > { %v4421_v21 = vpop.xlane.xlu1 %4420  ;;  %v4344_v15 = vmul.f32 %v5728_v23, %v4342_v8  ;;  %vm4349_vm2 = vweird.f32 %v5728_v23  ;;  %v4616_v8 = vld [vmem:[#allocation20 + $0x38] sm:$0xff] }
0x247f   : > { %5729 = vrcp.f32 %v4421_v21  ;;  %v4433_v29 = vand.u32 2147483648, %v4421_v21  ;;  %v4431_v61 = vand.u32 2147483647, %v4421_v21  ;;  %vm4427_vm12 = vweird.f32 %v4421_v21  ;;  %vm4350_vm6 = vmor %vm4348_vm4, %vm4349_vm2  ;;  %4648 = vmatpush.msrb.mxu0 %v4616_v8 }
0x2480   : > { %v4345_v62 = vsub.f32 1.0, %v4344_v15 }
0x2481   : > { %v4434_v22 = vor.u32 1.1754944e-38, %v4433_v29  ;;  %vm4432_vm15 = vcmp.eq.f32.partialorder %v4431_v61, 8.507059e+37  ;;  %v4624_v29 = vld [vmem:[#allocation22 + $0x60] sm:$0xff]  ;;  %v4623_v61 = vld [vmem:[#allocation22 + $0x58] sm:$0xff] }
0x2482   : > { %v4346_v33 = vmul.f32 %v5728_v23, %v4345_v62 }
0x2484   : > { %v4347_v36 = vadd.f32 %v5728_v23, %v4346_v33 }
0x2485   : > { %v5730_v25 = vpop.eup %5729 }
0x2486   : > { %v4423_v10 = vmul.f32 %v5730_v25, %v4421_v21  ;;  %v4500_v26 = vpop.xlane.xlu1 %4499  ;;  %vm4428_vm5 = vweird.f32 %v5730_v25  ;;  %v4351_v41 = vsel %vm4350_vm6, %v5728_v23, %v4347_v36  ;;  %v4615_v21 = vld [vmem:[#allocation20 + $0x30] sm:$0xff]  ;;  %v4614_v23 = vld [vmem:[#allocation20 + $0x28] sm:$0xff]  ;;  %vm4852_vm6 = vcmask 16384  }
0x2487   : > { %5731 = vrcp.f32 %v4500_v26  ;;  %vm4429_vm14 = vmor %vm4427_vm12, %vm4428_vm5  ;;  %v4356_v45 = vsel %vm4353_vm13, %v4355_v39, %v4351_v41  ;;  %v4512_v48 = vand.u32 2147483648, %v4500_v26  ;;  %vm4506_vm9 = vweird.f32 %v4500_v26  ;;  %4649 = vmatpush.msrb.mxu0 %v4615_v21  ;;  %v4622_v41 = vld [vmem:[#allocation22 + $0x50] sm:$0xff]  ;;  %v4620_v39 = vld [vmem:[#allocation22 + $0x40] sm:$0xff] }
0x2488   : > { %v4424_v28 = vsub.f32 1.0, %v4423_v10  ;;  %v4510_v42 = vand.u32 2147483647, %v4500_v26  ;;  %v4357_v50 = vmul.f32 %v7355_v55, %v4356_v45  ;;  %v4626_v10 = vld [vmem:[#allocation22 + $0x70] sm:$0xff]  ;;  %v5615_v45 = vld [vmem:[%s7613_s21 + $0x1] ss:$0 sm:$0xff] }
0x2489   : > { %v4513_v47 = vor.u32 1.1754944e-38, %v4512_v48  ;;  %4650 = vmatpush.msrb.mxu0 %v4614_v23  ;;  %v4743_v21 = vld [vmem:[#allocation25 + $0x18] sm:$0xff]  ;;  %v4742_v23 = vld [vmem:[#allocation25 + $0x10] sm:$0xff] }
0x248a   : > { %v4425_v30 = vmul.f32 %v5730_v25, %v4424_v28  ;;  %vm4511_vm12 = vcmp.eq.f32.partialorder %v4510_v42, 8.507059e+37 }
0x248c   : > { %v4426_v3 = vadd.f32 %v5730_v25, %v4425_v30 }
0x248d   : > { %v5732_v31 = vpop.eup %5731 }
0x248e   : > { %v4430_v32 = vsel %vm4429_vm14, %v5730_v25, %v4426_v3  ;;  %v4502_v34 = vmul.f32 %v5732_v31, %v4500_v26  ;;  %vm4507_vm3 = vweird.f32 %v5732_v31  ;;  %v4613_v25 = vld [vmem:[#allocation20 + $0x20] sm:$0xff]  ;;  %v4625_v26 = vld [vmem:[#allocation22 + $0x68] sm:$0xff] }
0x248f   : > { %v4435_v24 = vsel %vm4432_vm15, %v4434_v22, %v4430_v32  ;;  %vm4508_vm5 = vmor %vm4506_vm9, %vm4507_vm3  ;;  %4651 = vmatpush.msrb.mxu0 %v4613_v25  ;;  %v5331_v32 = vld [vmem:[%s7612_s20 + $0x2] sm:$0x3]  ;;  %v4771_v25 = vld [vmem:[#allocation25 + $0x38] sm:$0xff] }
0x2490   : > { %v4436_v35 = vmul.f32 %v5722_v63, %v4435_v24  ;;  %v4503_v37 = vsub.f32 1.0, %v4502_v34  ;;  %v4174_v63 = vld [vmem:[#allocation19 + $0x28] sm:$0xff]  ;;  %v4608_v34 = vperm.slane %v5331_v32, 0 }
0x2491   : > { %4577 = vmatpush.msra.mxu2 %v4174_v63 }
0x2492   : > { %5326 = vmatmul.msk.f32.vlgmr.msra.gmra.mxu0 %vm1635_vm1, %v4436_v35  ;;  %v4504_v27 = vmul.f32 %v5732_v31, %v4503_v37  ;;  %v4610_v37 = vperm.slane %v5331_v32, 1 }
0x2493   : > { %4578 = vmatpush.msra.mxu2 %v4173_v0 }
0x2494   : > { %v4505_v46 = vadd.f32 %v5732_v31, %v4504_v27  ;;  %v4621_v27 = vld [vmem:[#allocation22 + $0x48] sm:$0xff] }
0x2495   : > { %v4302_v56 = vpop.f32.mrf.mxu0  ;;  %4787 = vmatpush.msrb.mxu2 %v4771_v25 }
0x2496   : > { %v4509_v52 = vsel %vm4508_vm5, %v5732_v31, %v4505_v46 }
0x2497   : > { %v4514_v53 = vsel %vm4511_vm12, %v4513_v47, %v4509_v52 }
0x2498   : > { %v4515_v54 = vmul.f32 %v7360_v13, %v4514_v53 }
0x249e   : > { %v4359_v49 = vpop.permute.xlu1 %4358 }
0x249f   : > { %4379 = vmatpush.msrb.mxu1 %v4359_v49  ;;  %v5616_v49 = vld [vmem:[%s7614_s22 + $0x1] ss:$0 sm:$0xff] }
0x24a0   : > { %5323 = vmatmul.msk.f32.vlgmr.msrb.gmra.mxu1 %vm1635_vm1, %v4357_v50 }
0x24a1   : > { %4537 = vmatpush.msra.mxu1 %v4517_v51 }
0x24a3   : > { %4759 = vmatpush.msrb.mxu1 %v4743_v21 }
0x24a5   : > { %4760 = vmatpush.msrb.mxu1 %v4742_v23 }
0x24a8   : > { %5329 = vmatmul.msk.f32.vlgmr.msra.gmra.mxu1 %vm1635_vm1, %v4515_v54 }
0x250f   : > { %v4460_v57 = vpop.f32.mrf.mxu0 }
0x2510   : > { %4547 = vrot.lane.b32.xlu1 %v4460_v57, %s7604_s23 }
0x251d   : > { %v4381_v58 = vpop.f32.mrf.mxu1 }
0x251e   : > { %4543 = vrot.lane.b32.xlu0 %v4381_v58, %s7601_s8  ;;  %s6209_s8 = scalar_lea.hbm %s7639_s3, 2 }
0x251f   : > { %p6211_p2 = scmp.lt.s32.totalorder %s6209_s8, %s6205_s0 }
0x2521   : > { %p6212_p3 = por %p6211_p2, %p6210_p1 }
0x2523   : > { %p6213_p4 = pnand %p6212_p3, %p6208_p0 }
0x2525   : > { %v4539_v55 = vpop.f32.mrf.mxu1 }
0x2526   : > { %4551 = vrot.lane.b32.xlu0 %v4539_v55, %s7602_s12 }
0x2582   : > { %v4548_v5 = vpop.permute.xlu1 %4547 }
0x2590   : > { %v4544_v1 = vpop.permute.xlu0 %4543 }
0x2591   : > { %v4554_v4 = vsel %vm1635_vm1, %v4302_v56, %v4544_v1 }
0x2592   : > { %v4555_v44 = vsel %vm2028_vm10, %v4554_v4, %v4548_v5 }
0x2598   : > { %v4552_v7 = vpop.permute.xlu0 %4551 }
0x2599   : > { %v4556_v43 = vsel %vm2030_vm11, %v4555_v44, %v4552_v7  ;;  %v5336_v7 = vld [vmem:[%s7615_s24 + $0x2] sm:$0x3] }
0x259a   : > { %5330 = vmatmul.msk.f32.vlgmr.msra.gmra.mxu2 %vm1676_vm7, %v4556_v43  ;;  %v4708_v43 = vperm.slane %v5336_v7, 0 }
0x261d   : > { %v4580_v11 = vpop.f32.mrf.mxu2 }
0x261e   : > { %v4581_v12 = vadd.f32 %v5614_v9, %v4580_v11 }
0x2620   : > { %v4583_v13 = vadd.f32 %v4581_v12, %v7331_v6  ;;  %v4627_v6 = vld [vmem:[#allocation22 + $0x78] sm:$0xff]  ;;  %v4710_v12 = vperm.slane %v5336_v7, 1 }
0x2621   : > { %4671 = vmatpush.msra.mxu3 %v4627_v6  ;;  %v4799_v6 = vld [vmem:[#allocation25 + $0x58] sm:$0xff] }
0x2622   : > { %v4586_v14 = vsel %vm3156_vm8, %v4583_v13, 0.0  ;;  %4815 = vmatpush.msra.mxu0 %v4799_v6 }
0x2623   : > { %4587 = vadd.xlane.f32.xlu1 %v4586_v14  ;;  %4672 = vmatpush.msra.mxu3 %v4626_v10  ;;  %v4741_v10 = vld [vmem:[#allocation25 + $0x8] sm:$0xff] }
0x2624   : > { %4761 = vmatpush.msrb.mxu1 %v4741_v10 }
0x2625   : > { %4673 = vmatpush.msra.mxu3 %v4625_v26  ;;  %v4770_v26 = vld [vmem:[#allocation25 + $0x30] sm:$0xff] }
0x2626   : > { %4788 = vmatpush.msrb.mxu2 %v4770_v26 }
0x2627   : > { %4674 = vmatpush.msra.mxu3 %v4624_v29  ;;  %v4769_v29 = vld [vmem:[#allocation25 + $0x28] sm:$0xff] }
0x2628   : > { %4789 = vmatpush.msrb.mxu2 %v4769_v29 }
0x2629   : > { %4675 = vmatpush.msra.mxu3 %v4623_v61  ;;  %v4768_v61 = vld [vmem:[#allocation25 + $0x20] sm:$0xff] }
0x262a   : > { %4790 = vmatpush.msrb.mxu2 %v4768_v61 }
0x262b   : > { %4676 = vmatpush.msra.mxu3 %v4622_v41 }
0x262d   : > { %4677 = vmatpush.msra.mxu3 %v4621_v27 }
0x262f   : > { %4678 = vmatpush.msra.mxu3 %v4620_v39 }
0x2696   : > { %v4588_v16 = vpop.xlane.xlu1 %4587 }
0x2697   : > { %v4589_v17 = vmul.f32 %v4588_v16, %v6963_v20 }
0x2699   : > { %v4590_v18 = vsub.f32 %v4583_v13, %v4589_v17 }
0x269b   : > { %v4591_v2 = vmul.f32 %v4590_v18, %v4590_v18 }
0x269d   : > { %v4592_v19 = vsel %vm3156_vm8, %v4591_v2, 0.0 }
0x269e   : > { %4593 = vadd.xlane.f32.xlu2 %v4592_v19 }
0x2711   : > { %v4594_v15 = vpop.xlane.xlu2 %4593 }
0x2712   : > { %v4595_v28 = vmul.f32 %v4594_v15, %v6963_v20  ;;  %v4798_v15 = vld [vmem:[#allocation25 + $0x50] sm:$0xff] }
0x2713   : > { %4816 = vmatpush.msra.mxu0 %v4798_v15 }
0x2714   : > { %v4596_v30 = vadd.f32 1e-05, %v4595_v28  ;;  %v4740_v28 = vld [vmem:[#allocation25] sm:$0xff] }
0x2715   : > { %4762 = vmatpush.msrb.mxu1 %v4740_v28 }
0x2716   : > { %5733 = vrsqrt.f32 %v4596_v30  ;;  %vm4603_vm10 = vweird.f32 %v4596_v30 }
0x271c   : > { %v5734_v62 = vpop.eup %5733 }
0x271d   : > { %v4598_v3 = vmul.f32 %v5734_v62, %v4596_v30  ;;  %vm4604_vm1 = vweird.f32 %v5734_v62  ;;  %v4797_v30 = vld [vmem:[#allocation25 + $0x48] sm:$0xff] }
0x271e   : > { %vm4605_vm11 = vmor %vm4603_vm10, %vm4604_vm1  ;;  %4817 = vmatpush.msra.mxu0 %v4797_v30 }
0x271f   : > { %v4599_v31 = vmul.f32 %v5734_v62, %v4598_v3  ;;  %v4827_v3 = vld [vmem:[#allocation25 + $0x78] sm:$0xff] }
0x2720   : > { %4843 = vmatpush.msra.mxu1 %v4827_v3 }
0x2721   : > { %v4600_v22 = vmul.f32 0.5, %v4599_v31  ;;  %v4826_v31 = vld [vmem:[#allocation25 + $0x70] sm:$0xff] }
0x2722   : > { %4844 = vmatpush.msra.mxu1 %v4826_v31 }
0x2723   : > { %v4601_v24 = vsub.f32 1.5, %v4600_v22  ;;  %v4825_v22 = vld [vmem:[#allocation25 + $0x68] sm:$0xff] }
0x2724   : > { %4845 = vmatpush.msra.mxu1 %v4825_v22 }
0x2725   : > { %v4602_v33 = vmul.f32 %v5734_v62, %v4601_v24 }
0x2727   : > { %v4606_v35 = vsel %vm4605_vm11, %v5734_v62, %v4602_v33  ;;  %v4796_v62 = vld [vmem:[#allocation25 + $0x40] sm:$0xff] }
0x2728   : > { %v4607_v36 = vmul.f32 %v4606_v35, %v4590_v18  ;;  %4818 = vmatpush.msra.mxu0 %v4796_v62  ;;  %v4824_v33 = vld [vmem:[#allocation25 + $0x60] sm:$0xff] }
0x2729   : > { %4846 = vmatpush.msra.mxu1 %v4824_v33 }
0x272a   : > { %v4609_v38 = vmul.f32 %v4608_v34, %v4607_v36 }
0x272c   : > { %v4611_v40 = vadd.f32 %v4610_v37, %v4609_v38 }
0x272e   : > { %5334 = vmatmul.msk.f32.vlgmr.msrb.gmra.mxu0 %vm1676_vm7, %v4611_v40 }
0x27ab   : > { %v4653_v46 = vpop.f32.mrf.mxu0 }
0x27ac   : > { %v4654_v48 = vadd.f32 %v5615_v45, %v4653_v46 }
0x27ae   : > { %v4656_v42 = vmax.f32 %v4654_v48, 0.0 }
0x27b0   : > { %5335 = vmatmul.msk.f32.vlgmr.msra.gmra.mxu3 %vm2137_vm0, %v4656_v42 }
0x2833   : > { %v4680_v50 = vpop.f32.mrf.mxu3 }
0x2834   : > { %v4681_v51 = vadd.f32 %v5616_v49, %v4680_v50 }
0x2836   : > { %v4683_v52 = vadd.f32 %v4681_v51, %v4611_v40  ;;  %v4712_v40 = vld [vmem:[#allocation23] sm:$0x3] }
0x2837   : > { %v4735_v39 = vperm.slane %v4712_v40, 0  ;;  %v4737_v46 = vperm.slane %v4712_v40, 1 }
0x2838   : > { %v4686_v47 = vsel %vm3156_vm8, %v4683_v52, 0.0 }
0x2839   : > { %4687 = vadd.xlane.f32.xlu0 %v4686_v47  ;;  %v4739_v47 = vld [vmem:[%s6568_s27] sm:$0x1] }
0x28ac   : > { %v4688_v53 = vpop.xlane.xlu0 %4687 }
0x28ad   : > { %v4689_v54 = vmul.f32 %v4688_v53, %v6963_v20 }
0x28af   : > { %v4690_v56 = vsub.f32 %v4683_v52, %v4689_v54 }
0x28b1   : > { %v4691_v57 = vmul.f32 %v4690_v56, %v4690_v56 }
0x28b3   : > { %v4692_v58 = vsel %vm3156_vm8, %v4691_v57, 0.0 }
0x28b4   : > { %4693 = vadd.xlane.f32.xlu1 %v4692_v58 }
0x2927   : > { %v4694_v55 = vpop.xlane.xlu1 %4693 }
0x2928   : > { %v4695_v59 = vmul.f32 %v4694_v55, %v6963_v20 }
0x292a   : > { %v4696_v60 = vadd.f32 1e-05, %v4695_v59 }
0x292c   : > { %5735 = vrsqrt.f32 %v4696_v60  ;;  %vm4703_vm14 = vweird.f32 %v4696_v60 }
0x2932   : > { %v5736_v63 = vpop.eup %5735 }
0x2933   : > { %v4698_v0 = vmul.f32 %v5736_v63, %v4696_v60  ;;  %vm4704_vm0 = vweird.f32 %v5736_v63 }
0x2934   : > { %vm4705_vm15 = vmor %vm4703_vm14, %vm4704_vm0 }
0x2935   : > { %v4699_v1 = vmul.f32 %v5736_v63, %v4698_v0 }
0x2937   : > { %v4700_v4 = vmul.f32 0.5, %v4699_v1 }
0x2939   : > { %v4701_v5 = vsub.f32 1.5, %v4700_v4 }
0x293b   : > { %v4702_v44 = vmul.f32 %v5736_v63, %v4701_v5 }
0x293d   : > { %v4706_v9 = vsel %vm4705_vm15, %v5736_v63, %v4702_v44 }
0x293e   : > { %v4707_v11 = vmul.f32 %v4706_v9, %v4690_v56 }
0x2940   : > { %v4709_v13 = vmul.f32 %v4708_v43, %v4707_v11 }
0x2942   : > { %v4711_v14 = vadd.f32 %v4710_v12, %v4709_v13 }
0x2944   : > { %v4713_v16 = vsel %vm3156_vm8, %v4711_v14, 0.0 }
0x2945   : > { %4714 = vadd.xlane.f32.xlu2 %v4713_v16 }
0x29b8   : > { %v4715_v17 = vpop.xlane.xlu2 %4714 }
0x29b9   : > { %v4716_v18 = vmul.f32 %v4715_v17, %v6963_v20 }
0x29bb   : > { %v4717_v2 = vsub.f32 %v4711_v14, %v4716_v18 }
0x29bd   : > { %v4718_v19 = vmul.f32 %v4717_v2, %v4717_v2 }
0x29bf   : > { %v4719_v8 = vsel %vm3156_vm8, %v4718_v19, 0.0 }
0x29c0   : > { %4720 = vadd.xlane.f32.xlu0 %v4719_v8 }
0x2a33   : > { %v4721_v32 = vpop.xlane.xlu0 %4720 }
0x2a34   : > { %v4722_v24 = vmul.f32 %v4721_v32, %v6963_v20 }
0x2a36   : > { %v4723_v34 = vadd.f32 1e-05, %v4722_v24 }
0x2a38   : > { %5737 = vrsqrt.f32 %v4723_v34  ;;  %vm4730_vm2 = vweird.f32 %v4723_v34 }
0x2a3e   : > { %v5738_v35 = vpop.eup %5737 }
0x2a3f   : > { %v4725_v36 = vmul.f32 %v5738_v35, %v4723_v34  ;;  %vm4731_vm8 = vweird.f32 %v5738_v35 }
0x2a40   : > { %vm4732_vm4 = vmor %vm4730_vm2, %vm4731_vm8 }
0x2a41   : > { %v4726_v37 = vmul.f32 %v5738_v35, %v4725_v36 }
0x2a43   : > { %v4727_v38 = vmul.f32 0.5, %v4726_v37 }
0x2a45   : > { %v4728_v41 = vsub.f32 1.5, %v4727_v38 }
0x2a47   : > { %v4729_v27 = vmul.f32 %v5738_v35, %v4728_v41 }
0x2a49   : > { %v4733_v45 = vsel %vm4732_vm4, %v5738_v35, %v4729_v27 }
0x2a4a   : > { %v4734_v20 = vmul.f32 %v4733_v45, %v4717_v2 }
0x2a4c   : > { %v4736_v48 = vmul.f32 %v4735_v39, %v4734_v20 }
0x2a4e   : > { %v4738_v42 = vadd.f32 %v4737_v46, %v4736_v48 }
0x2a50   : > { %5337 = vmatmul.msk.f32.vlgmr.msrb.gmra.mxu1 %vm1676_vm7, %v4738_v42  ;;  %v4772_v49 = vrot.slane %v4738_v42, 1  ;;  %v4800_v50 = vrot.slane %v4738_v42, 2  ;;  %v4828_v51 = vrot.slane %v4738_v42, 3 }
0x2a52   : > { %5338 = vmatmul.msk.f32.vlgmr.msrb.gmra.mxu2 %vm1676_vm7, %v4772_v49  ;;  %5339 = vmatmul.msk.f32.vlgmr.msra.gmra.mxu0 %vm1676_vm7, %v4800_v50 }
0x2a58   : > { %5340 = vmatmul.msk.f32.vlgmr.msra.gmra.mxu1 %vm1676_vm7, %v4828_v51 }
0x2acd   : > { %v4764_v52 = vpop.f32.mrf.mxu1 }
0x2ace   : > { %v4767_v53 = vadd.f32 %v4764_v52, %v4739_v47 }
0x2acf   : > { %v4820_v57 = vpop.f32.mrf.mxu0 }
0x2ad5   : > { %v4792_v54 = vpop.f32.mrf.mxu2  ;;  %v4848_v55 = vpop.f32.mrf.mxu1 }
0x2ad6   : > { %v4795_v56 = vadd.f32 %v4792_v54, %v4767_v53 }
0x2ad8   : > { %v4823_v58 = vadd.f32 %v4820_v57, %v4795_v56 }
0x2ada   : > { %v4851_v59 = vadd.f32 %v4848_v55, %v4823_v58 }
0x2adc   : > { %4853 = vst.msk [vmem:[%s1533_s10] sm:$0x1] %vm4852_vm6, %v4851_v59 }
0x2add   : > { %6216 = shalt.err (!%p6213_p4)
}
0x2ade   : > { %5403 = dma.vmem_to_hbm [thread:$0]  (%p6613_p5), %s4866_s15, 16, %s4868_s11, %s4855_s4  }
0x2adf PF: > { %s7641_s12 = sld [smem:[#allocation77_spill]] }
0x2ae0   : > { %s7642_s2 = sld [smem:[#allocation74_spill]] }
0x2ae5   : > { %p5485_p7 = scmp.ge.s32.totalorder %s7641_s12, 2 }
0x2ae6   : > { %s4879_s13 = sand.u32 1, %s7642_s2  }
0x2ae7   : > { %p5452_p8 = pnand %p5485_p7, %p6617_p6  ;;  %s4880_s14 = scalar_lea.sflag [#allocation4], %s4879_s13 }
0x2ae9   : > { %p5453_p11 = pneg %p5452_p8 }
0x2aeb   : > { %6266 = dma.done.wait (%p5453_p11), %s4880_s14, 16  }
0x2aec   : > { %6268 = vsyncadd (%p5453_p11), %s4880_s14, 4294967280  ;;  %s7644_s15 = sld [smem:[#allocation78_spill]] }
0x2aed   : > { %s7645_s7 = sld [smem:[#allocation75_spill]] }
0x2aee   : > { %s7646_s10 = sld [smem:[#allocation76_spill]] }
0x2aef   : > { %s7647_s11 = sld [smem:[#allocation79_spill]] }
0x2af2   : > { %p101_p13 = scmp.ge.s32.totalorder %s7644_s15, 4  }
0x2af4   :  { %103 = sbr.rel (!%p101_p13) target bundleno = 95 (0x5f), region = 363 }
0x2af9   :  { %4885 = vsyncpa [#allocation3], 1 }
0x2afa   :  { %4887 = vsyncpa [#allocation3 + $0x1], 1 }
0x2afb   :  { %4888 = vsyncpa [#allocation6], 1 }
0x2afc   :  { %4889 = vsyncpa [#allocation9], 1 }
0x2afd   :  { %4890 = vsyncpa [#allocation12], 1 }
0x2afe   :  { %4891 = vsyncpa [#allocation15], 1 }
0x2aff   :  { %4892 = vsyncpa [#allocation18], 1 }
0x2b00   :  { %4893 = vsyncpa [#allocation21], 1 }
0x2b01   :  { %4894 = vsyncpa [#allocation24], 1 }
0x2b02   :  { %4895 = vsyncpa [#allocation4], 1 }
0x2b03   :  { %4897 = vsyncpa [#allocation4 + $0x1], 1 }

</bundles_post_ra>
